<compile_context>
chip_gen: v7x
topology: tpu7x:2x2x1
jax: 0.10.0
libtpu: 0.0.40
codegen_flags: <defaults>
</compile_context>

<pallas_src>
import jax
import jax.numpy as jnp
from jax.experimental import pallas as pl
from jax.experimental.pallas import tpu as pltpu

_LANES = 128


def _round_up(x, m):
    return (x + m - 1) // m * m


def _basic_block_kernel(x_ref, w1_ref, b1_ref, w2_ref, b2_ref,
                        o_ref, xs_ref, ms_ref):
    """Fused BasicBlock for one batch element.

    x_ref : (1, H, W, C)      unpadded input tile (true channel count C)
    w1_ref: (9*CP, CP)        conv1 weight, im2col layout, BN1 scale folded in
    b1_ref: (1, CP)           folded BN1 bias (zeros in padded lanes)
    w2_ref: (9*CP, CP)        conv2 weight, im2col layout, BN2 scale folded in
    b2_ref: (1, CP)           folded BN2 bias
    o_ref : (1, H, W, CP)     channel-padded, lane-dense output tile
    xs_ref: (H+2, W+2, CP)    VMEM scratch: spatially padded, channel-padded x
    ms_ref: (H+2, W+2, CP)    VMEM scratch: spatially padded conv1 activation
    """
    _, H, W, CP = o_ref.shape
    C = x_ref.shape[-1]
    HW = H * W
    pc = CP - C

    def zero_halo(ref):
        hp, wp, cp = ref.shape
        zrow = jnp.zeros((1, wp, cp), jnp.float32)
        zcol = jnp.zeros((hp, 1, cp), jnp.float32)
        ref[0:1, :, :] = zrow
        ref[hp - 1:hp, :, :] = zrow
        ref[:, 0:1, :] = zcol
        ref[:, wp - 1:wp, :] = zcol

    # Only the 1-pixel halo needs zeros; the interiors are fully overwritten
    # below each grid step (no full-buffer zero fill, safe under "parallel"
    # megacore sharding since every step re-establishes its own halo).
    zero_halo(xs_ref)
    zero_halo(ms_ref)

    # Stage the (channel-unpadded) input into the lane-dense padded buffer.
    xcp = x_ref[0].astype(jnp.float32)
    if pc:
        xcp = jnp.concatenate(
            [xcp, jnp.zeros((H, W, pc), jnp.float32)], axis=-1)
    xs_ref[1:H + 1, 1:W + 1, :] = xcp

    def im2col(src_ref):
        # (H*W, 9*CP) patch matrix: 9 shifted lane-dense windows concatenated
        # along the lane axis, consumed by one MXU matmul.
        cols = [src_ref[kh:kh + H, kw:kw + W, :]
                for kh in range(3) for kw in range(3)]
        return jnp.concatenate(cols, axis=-1).reshape(HW, 9 * CP)

    # ---- conv1 (single matmul, K = 9*CP, BN1 scale pre-folded) + bias + ReLU
    acc1 = jnp.dot(im2col(xs_ref), w1_ref[...],
                   preferred_element_type=jnp.float32)
    out1 = jnp.maximum(acc1 + b1_ref[...], 0.0)
    ms_ref[1:H + 1, 1:W + 1, :] = out1.reshape(H, W, CP)

    # ---- conv2 (single matmul, BN2 scale pre-folded) + bias + residual + ReLU
    acc2 = jnp.dot(im2col(ms_ref), w2_ref[...],
                   preferred_element_type=jnp.float32)
    out2 = (acc2 + b2_ref[...]).reshape(H, W, CP)
    out = jnp.maximum(out2 + xs_ref[1:H + 1, 1:W + 1, :], 0.0)
    o_ref[...] = out[None].astype(o_ref.dtype)


@jax.jit
def basic_block(x_nhwc, w1, s1, b1, w2, s2, b2):
    """x_nhwc: (N, H, W, C) float32. w1/w2 HWIO (3,3,C,C). s*/b*: (C,) folded BN."""
    N, H, W, C = x_nhwc.shape
    assert w1.shape == (3, 3, C, C), \
        "stride=1 / downsample=None path requires planes == inplanes"
    CP = _round_up(C, _LANES)
    pc = CP - C

    # Fold the BN output-channel scale directly into the (tiny) conv weights,
    # pad everything to lane-dense 128 multiples, and reshape the conv weights
    # into im2col layout (9*CP, CP).  Done once per call on O(9*C*C) data.
    def fold_w(w, s):
        ws = w * s[None, None, None, :]
        wp = jnp.pad(ws, ((0, 0), (0, 0), (0, pc), (0, pc)))
        return wp.reshape(9 * CP, CP)

    def pad_v(v):
        return jnp.pad(v, (0, pc))[None, :]

    w1r, w2r = fold_w(w1, s1), fold_w(w2, s2)
    b1p, b2p = pad_v(b1), pad_v(b2)

    flops = 2 * N * (2 * H * W * 9 * CP * CP)               # two 3x3 convs
    bytes_accessed = 4 * (x_nhwc.size + N * H * W * CP      # in + padded out
                          + 2 * 9 * CP * CP + 2 * CP)       # weights + biases

    grid_spec = pltpu.PrefetchScalarGridSpec(
        num_scalar_prefetch=0,
        grid=(N,),
        in_specs=[
            pl.BlockSpec((1, H, W, C), lambda n: (n, 0, 0, 0)),
            pl.BlockSpec((9 * CP, CP), lambda n: (0, 0)),
            pl.BlockSpec((1, CP), lambda n: (0, 0)),
            pl.BlockSpec((9 * CP, CP), lambda n: (0, 0)),
            pl.BlockSpec((1, CP), lambda n: (0, 0)),
        ],
        out_specs=pl.BlockSpec((1, H, W, CP), lambda n: (n, 0, 0, 0)),
        scratch_shapes=[
            pltpu.VMEM((H + 2, W + 2, CP), jnp.float32),  # padded input
            pltpu.VMEM((H + 2, W + 2, CP), jnp.float32),  # padded conv1 act
        ],
    )

    y_pad = pl.pallas_call(
        _basic_block_kernel,
        out_shape=jax.ShapeDtypeStruct((N, H, W, CP), x_nhwc.dtype),
        grid_spec=grid_spec,
        compiler_params=pltpu.CompilerParams(
            dimension_semantics=("parallel",),
            vmem_limit_bytes=32 * 1024 * 1024,
        ),
        cost_estimate=pl.CostEstimate(
            flops=flops, transcendentals=0, bytes_accessed=bytes_accessed),
    )(x_nhwc, w1r, b1p, w2r, b2p)

    # Unpad the lane-dense output back to the true channel count.
    return y_pad[..., :C]


def _fold_bn(gamma, beta, mean, var, eps=1e-5):
    scale = gamma / jnp.sqrt(var + eps)
    bias = beta - mean * scale
    return scale, bias


def _reference(x_nhwc, w1, s1, b1, w2, s2, b2):
    dn = ("NHWC", "HWIO", "NHWC")
    out = jax.lax.conv_general_dilated(x_nhwc, w1, (1, 1), "SAME",
                                       dimension_numbers=dn)
    out = jnp.maximum(out * s1 + b1, 0.0)
    out = jax.lax.conv_general_dilated(out, w2, (1, 1), "SAME",
                                       dimension_numbers=dn)
    out = out * s2 + b2 + x_nhwc
    return jnp.maximum(out, 0.0)


if __name__ == "__main__":
    key = jax.random.PRNGKey(0)
    N, C, H, W = 2, 8, 16, 16  # inplanes = planes = 8, stride = 1

    ks = jax.random.split(key, 11)
    # Input in PyTorch NCHW convention, transposed to NHWC for the kernel.
    x_nchw = jax.random.normal(ks[0], (N, C, H, W), jnp.float32)
    x_nhwc = jnp.transpose(x_nchw, (0, 2, 3, 1))

    # Conv weights (PyTorch OIHW -> HWIO).
    w1_oihw = 0.1 * jax.random.normal(ks[1], (C, C, 3, 3), jnp.float32)
    w2_oihw = 0.1 * jax.random.normal(ks[2], (C, C, 3, 3), jnp.float32)
    w1 = jnp.transpose(w1_oihw, (2, 3, 1, 0))
    w2 = jnp.transpose(w2_oihw, (2, 3, 1, 0))

    # BatchNorm params (inference / running stats), deterministic & non-trivial.
    g1 = 1.0 + 0.1 * jax.random.normal(ks[3], (C,), jnp.float32)
    be1 = 0.1 * jax.random.normal(ks[4], (C,), jnp.float32)
    m1 = 0.1 * jax.random.normal(ks[5], (C,), jnp.float32)
    v1 = 1.0 + 0.1 * jax.random.uniform(ks[6], (C,), jnp.float32)
    g2 = 1.0 + 0.1 * jax.random.normal(ks[7], (C,), jnp.float32)
    be2 = 0.1 * jax.random.normal(ks[8], (C,), jnp.float32)
    m2 = 0.1 * jax.random.normal(ks[9], (C,), jnp.float32)
    v2 = 1.0 + 0.1 * jax.random.uniform(ks[10], (C,), jnp.float32)

    s1, b1 = _fold_bn(g1, be1, m1, v1)
    s2, b2 = _fold_bn(g2, be2, m2, v2)

    out = basic_block(x_nhwc, w1, s1, b1, w2, s2, b2)
    out = jax.block_until_ready(out)

    ref = _reference(x_nhwc, w1, s1, b1, w2, s2, b2)
    assert out.shape == (N, H, W, C)
    assert jnp.allclose(out, ref, atol=1e-4, rtol=1e-4), \
        f"max err {jnp.max(jnp.abs(out - ref))}"
    print("KERNEL_OK")
</pallas_src>

<mosaic_0001>
module attributes {stable_mosaic.version = 11 : i64} {
  func.func @_basic_block_kernel(%arg0: i32, %arg1: memref<1x16x16x8xf32, #tpu.memory_space<vmem>>, %arg2: memref<1152x128xf32, #tpu.memory_space<vmem>>, %arg3: memref<1x128xf32, #tpu.memory_space<vmem>>, %arg4: memref<1152x128xf32, #tpu.memory_space<vmem>>, %arg5: memref<1x128xf32, #tpu.memory_space<vmem>>, %arg6: memref<1x16x16x128xf32, #tpu.memory_space<vmem>>, %arg7: memref<18x18x128xf32, #tpu.memory_space<vmem>>, %arg8: memref<18x18x128xf32, #tpu.memory_space<vmem>>) attributes {dimension_semantics = [#tpu.dimension_semantics<parallel>], iteration_bounds = array<i64: 2>, scalar_prefetch = 0 : i64, scratch_operands = 2 : i64, tpu.core_type = #tpu.core_type<tc>, window_params = [{transform_indices = @transform_0, window_bounds = array<i64: 1, 16, 16, 8>}, {pipeline_mode = #tpu.pipeline_mode<synchronous>, transform_indices = @transform_1, window_bounds = array<i64: 1152, 128>}, {pipeline_mode = #tpu.pipeline_mode<synchronous>, transform_indices = @transform_2, window_bounds = array<i64: 1, 128>}, {pipeline_mode = #tpu.pipeline_mode<synchronous>, transform_indices = @transform_3, window_bounds = array<i64: 1152, 128>}, {pipeline_mode = #tpu.pipeline_mode<synchronous>, transform_indices = @transform_4, window_bounds = array<i64: 1, 128>}, {transform_indices = @transform_5, window_bounds = array<i64: 1, 16, 16, 128>}]} {
    %cst = arith.constant 0.000000e+00 : f32
    %0 = vector.broadcast %cst : f32 to vector<1x18x128xf32>
    %cst_0 = arith.constant 0.000000e+00 : f32
    %1 = vector.broadcast %cst_0 : f32 to vector<18x1x128xf32>
    %c0 = arith.constant 0 : index
    %c0_1 = arith.constant 0 : index
    %c0_2 = arith.constant 0 : index
    %2 = vector.load %arg7[%c0, %c0_1, %c0_2] : memref<18x18x128xf32, #tpu.memory_space<vmem>>, vector<1x18x128xf32>
    tpu.vector_store %arg7[%c0, %c0_1, %c0_2], %0 {strides = array<i32>} : memref<18x18x128xf32, #tpu.memory_space<vmem>>, vector<1x18x128xf32>,
    %c17 = arith.constant 17 : index
    %c0_3 = arith.constant 0 : index
    %c0_4 = arith.constant 0 : index
    %3 = vector.load %arg7[%c17, %c0_3, %c0_4] : memref<18x18x128xf32, #tpu.memory_space<vmem>>, vector<1x18x128xf32>
    tpu.vector_store %arg7[%c17, %c0_3, %c0_4], %0 {strides = array<i32>} : memref<18x18x128xf32, #tpu.memory_space<vmem>>, vector<1x18x128xf32>,
    %c0_5 = arith.constant 0 : index
    %c0_6 = arith.constant 0 : index
    %c0_7 = arith.constant 0 : index
    %4 = vector.load %arg7[%c0_5, %c0_6, %c0_7] : memref<18x18x128xf32, #tpu.memory_space<vmem>>, vector<18x1x128xf32>
    tpu.vector_store %arg7[%c0_5, %c0_6, %c0_7], %1 {strides = array<i32>} : memref<18x18x128xf32, #tpu.memory_space<vmem>>, vector<18x1x128xf32>,
    %c0_8 = arith.constant 0 : index
    %c17_9 = arith.constant 17 : index
    %c0_10 = arith.constant 0 : index
    %5 = vector.load %arg7[%c0_8, %c17_9, %c0_10] : memref<18x18x128xf32, #tpu.memory_space<vmem>>, vector<18x1x128xf32>
    tpu.vector_store %arg7[%c0_8, %c17_9, %c0_10], %1 {strides = array<i32>} : memref<18x18x128xf32, #tpu.memory_space<vmem>>, vector<18x1x128xf32>,
    %cst_11 = arith.constant 0.000000e+00 : f32
    %6 = vector.broadcast %cst_11 : f32 to vector<1x18x128xf32>
    %cst_12 = arith.constant 0.000000e+00 : f32
    %7 = vector.broadcast %cst_12 : f32 to vector<18x1x128xf32>
    %c0_13 = arith.constant 0 : index
    %c0_14 = arith.constant 0 : index
    %c0_15 = arith.constant 0 : index
    %8 = vector.load %arg8[%c0_13, %c0_14, %c0_15] : memref<18x18x128xf32, #tpu.memory_space<vmem>>, vector<1x18x128xf32>
    tpu.vector_store %arg8[%c0_13, %c0_14, %c0_15], %6 {strides = array<i32>} : memref<18x18x128xf32, #tpu.memory_space<vmem>>, vector<1x18x128xf32>,
    %c17_16 = arith.constant 17 : index
    %c0_17 = arith.constant 0 : index
    %c0_18 = arith.constant 0 : index
    %9 = vector.load %arg8[%c17_16, %c0_17, %c0_18] : memref<18x18x128xf32, #tpu.memory_space<vmem>>, vector<1x18x128xf32>
    tpu.vector_store %arg8[%c17_16, %c0_17, %c0_18], %6 {strides = array<i32>} : memref<18x18x128xf32, #tpu.memory_space<vmem>>, vector<1x18x128xf32>,
    %c0_19 = arith.constant 0 : index
    %c0_20 = arith.constant 0 : index
    %c0_21 = arith.constant 0 : index
    %10 = vector.load %arg8[%c0_19, %c0_20, %c0_21] : memref<18x18x128xf32, #tpu.memory_space<vmem>>, vector<18x1x128xf32>
    tpu.vector_store %arg8[%c0_19, %c0_20, %c0_21], %7 {strides = array<i32>} : memref<18x18x128xf32, #tpu.memory_space<vmem>>, vector<18x1x128xf32>,
    %c0_22 = arith.constant 0 : index
    %c17_23 = arith.constant 17 : index
    %c0_24 = arith.constant 0 : index
    %11 = vector.load %arg8[%c0_22, %c17_23, %c0_24] : memref<18x18x128xf32, #tpu.memory_space<vmem>>, vector<18x1x128xf32>
    tpu.vector_store %arg8[%c0_22, %c17_23, %c0_24], %7 {strides = array<i32>} : memref<18x18x128xf32, #tpu.memory_space<vmem>>, vector<18x1x128xf32>,
    %c0_25 = arith.constant 0 : index
    %c0_26 = arith.constant 0 : index
    %c0_27 = arith.constant 0 : index
    %c0_28 = arith.constant 0 : index
    %12 = vector.load %arg1[%c0_25, %c0_26, %c0_27, %c0_28] : memref<1x16x16x8xf32, #tpu.memory_space<vmem>>, vector<1x16x16x8xf32>
    %13 = vector.shape_cast %12 : vector<1x16x16x8xf32> to vector<16x16x8xf32>
    %cst_29 = arith.constant 0.000000e+00 : f32
    %14 = vector.broadcast %cst_29 : f32 to vector<16x16x120xf32>
    %15 = tpu.concatenate %13, %14 in 2 : vector<16x16x8xf32>, vector<16x16x120xf32> -> vector<16x16x128xf32>
    %c1 = arith.constant 1 : index
    %c1_30 = arith.constant 1 : index
    %c0_31 = arith.constant 0 : index
    %16 = vector.load %arg7[%c1, %c1_30, %c0_31] : memref<18x18x128xf32, #tpu.memory_space<vmem>>, vector<16x16x128xf32>
    tpu.vector_store %arg7[%c1, %c1_30, %c0_31], %15 {strides = array<i32>} : memref<18x18x128xf32, #tpu.memory_space<vmem>>, vector<16x16x128xf32>,
    %c0_32 = arith.constant 0 : index
    %c0_33 = arith.constant 0 : index
    %c0_34 = arith.constant 0 : index
    %17 = vector.load %arg7[%c0_32, %c0_33, %c0_34] : memref<18x18x128xf32, #tpu.memory_space<vmem>>, vector<16x16x128xf32>
    %c0_35 = arith.constant 0 : index
    %c1_36 = arith.constant 1 : index
    %c0_37 = arith.constant 0 : index
    %18 = vector.load %arg7[%c0_35, %c1_36, %c0_37] : memref<18x18x128xf32, #tpu.memory_space<vmem>>, vector<16x16x128xf32>
    %c0_38 = arith.constant 0 : index
    %c2 = arith.constant 2 : index
    %c0_39 = arith.constant 0 : index
    %19 = vector.load %arg7[%c0_38, %c2, %c0_39] : memref<18x18x128xf32, #tpu.memory_space<vmem>>, vector<16x16x128xf32>
    %c1_40 = arith.constant 1 : index
    %c0_41 = arith.constant 0 : index
    %c0_42 = arith.constant 0 : index
    %20 = vector.load %arg7[%c1_40, %c0_41, %c0_42] : memref<18x18x128xf32, #tpu.memory_space<vmem>>, vector<16x16x128xf32>
    %c1_43 = arith.constant 1 : index
    %c1_44 = arith.constant 1 : index
    %c0_45 = arith.constant 0 : index
    %21 = vector.load %arg7[%c1_43, %c1_44, %c0_45] : memref<18x18x128xf32, #tpu.memory_space<vmem>>, vector<16x16x128xf32>
    %c1_46 = arith.constant 1 : index
    %c2_47 = arith.constant 2 : index
    %c0_48 = arith.constant 0 : index
    %22 = vector.load %arg7[%c1_46, %c2_47, %c0_48] : memref<18x18x128xf32, #tpu.memory_space<vmem>>, vector<16x16x128xf32>
    %c2_49 = arith.constant 2 : index
    %c0_50 = arith.constant 0 : index
    %c0_51 = arith.constant 0 : index
    %23 = vector.load %arg7[%c2_49, %c0_50, %c0_51] : memref<18x18x128xf32, #tpu.memory_space<vmem>>, vector<16x16x128xf32>
    %c2_52 = arith.constant 2 : index
    %c1_53 = arith.constant 1 : index
    %c0_54 = arith.constant 0 : index
    %24 = vector.load %arg7[%c2_52, %c1_53, %c0_54] : memref<18x18x128xf32, #tpu.memory_space<vmem>>, vector<16x16x128xf32>
    %c2_55 = arith.constant 2 : index
    %c2_56 = arith.constant 2 : index
    %c0_57 = arith.constant 0 : index
    %25 = vector.load %arg7[%c2_55, %c2_56, %c0_57] : memref<18x18x128xf32, #tpu.memory_space<vmem>>, vector<16x16x128xf32>
    %26 = tpu.concatenate %17, %18, %19, %20, %21, %22, %23, %24, %25 in 2 : vector<16x16x128xf32>, vector<16x16x128xf32>, vector<16x16x128xf32>, vector<16x16x128xf32>, vector<16x16x128xf32>, vector<16x16x128xf32>, vector<16x16x128xf32>, vector<16x16x128xf32>, vector<16x16x128xf32> -> vector<16x16x1152xf32>
    %27 = vector.shape_cast %26 : vector<16x16x1152xf32> to vector<256x1152xf32>
    %c0_58 = arith.constant 0 : index
    %c0_59 = arith.constant 0 : index
    %28 = vector.load %arg2[%c0_58, %c0_59] : memref<1152x128xf32, #tpu.memory_space<vmem>>, vector<1152x128xf32>
    %cst_60 = arith.constant dense<0.000000e+00> : vector<256x128xf32>
    %29 = tpu.matmul %27, %28, %cst_60 {dimension_numbers = #tpu.dot_dimension_numbers<[1], [0], [0], [1], [0, 0, 1, 1], [], []>} : vector<256x1152xf32>, vector<1152x128xf32>, vector<256x128xf32> -> vector<256x128xf32>
    %c0_61 = arith.constant 0 : index
    %c0_62 = arith.constant 0 : index
    %30 = vector.load %arg3[%c0_61, %c0_62] : memref<1x128xf32, #tpu.memory_space<vmem>>, vector<1x128xf32>
    %31 = vector.broadcast %30 : vector<1x128xf32> to vector<256x128xf32>
    %32 = arith.addf %29, %31 : vector<256x128xf32>
    %cst_63 = arith.constant 0.000000e+00 : f32
    %33 = vector.broadcast %cst_63 : f32 to vector<256x128xf32>
    %34 = arith.maximumf %32, %33 : vector<256x128xf32>
    %35 = vector.shape_cast %34 : vector<256x128xf32> to vector<16x16x128xf32>
    %c1_64 = arith.constant 1 : index
    %c1_65 = arith.constant 1 : index
    %c0_66 = arith.constant 0 : index
    %36 = vector.load %arg8[%c1_64, %c1_65, %c0_66] : memref<18x18x128xf32, #tpu.memory_space<vmem>>, vector<16x16x128xf32>
    tpu.vector_store %arg8[%c1_64, %c1_65, %c0_66], %35 {strides = array<i32>} : memref<18x18x128xf32, #tpu.memory_space<vmem>>, vector<16x16x128xf32>,
    %c0_67 = arith.constant 0 : index
    %c0_68 = arith.constant 0 : index
    %c0_69 = arith.constant 0 : index
    %37 = vector.load %arg8[%c0_67, %c0_68, %c0_69] : memref<18x18x128xf32, #tpu.memory_space<vmem>>, vector<16x16x128xf32>
    %c0_70 = arith.constant 0 : index
    %c1_71 = arith.constant 1 : index
    %c0_72 = arith.constant 0 : index
    %38 = vector.load %arg8[%c0_70, %c1_71, %c0_72] : memref<18x18x128xf32, #tpu.memory_space<vmem>>, vector<16x16x128xf32>
    %c0_73 = arith.constant 0 : index
    %c2_74 = arith.constant 2 : index
    %c0_75 = arith.constant 0 : index
    %39 = vector.load %arg8[%c0_73, %c2_74, %c0_75] : memref<18x18x128xf32, #tpu.memory_space<vmem>>, vector<16x16x128xf32>
    %c1_76 = arith.constant 1 : index
    %c0_77 = arith.constant 0 : index
    %c0_78 = arith.constant 0 : index
    %40 = vector.load %arg8[%c1_76, %c0_77, %c0_78] : memref<18x18x128xf32, #tpu.memory_space<vmem>>, vector<16x16x128xf32>
    %c1_79 = arith.constant 1 : index
    %c1_80 = arith.constant 1 : index
    %c0_81 = arith.constant 0 : index
    %41 = vector.load %arg8[%c1_79, %c1_80, %c0_81] : memref<18x18x128xf32, #tpu.memory_space<vmem>>, vector<16x16x128xf32>
    %c1_82 = arith.constant 1 : index
    %c2_83 = arith.constant 2 : index
    %c0_84 = arith.constant 0 : index
    %42 = vector.load %arg8[%c1_82, %c2_83, %c0_84] : memref<18x18x128xf32, #tpu.memory_space<vmem>>, vector<16x16x128xf32>
    %c2_85 = arith.constant 2 : index
    %c0_86 = arith.constant 0 : index
    %c0_87 = arith.constant 0 : index
    %43 = vector.load %arg8[%c2_85, %c0_86, %c0_87] : memref<18x18x128xf32, #tpu.memory_space<vmem>>, vector<16x16x128xf32>
    %c2_88 = arith.constant 2 : index
    %c1_89 = arith.constant 1 : index
    %c0_90 = arith.constant 0 : index
    %44 = vector.load %arg8[%c2_88, %c1_89, %c0_90] : memref<18x18x128xf32, #tpu.memory_space<vmem>>, vector<16x16x128xf32>
    %c2_91 = arith.constant 2 : index
    %c2_92 = arith.constant 2 : index
    %c0_93 = arith.constant 0 : index
    %45 = vector.load %arg8[%c2_91, %c2_92, %c0_93] : memref<18x18x128xf32, #tpu.memory_space<vmem>>, vector<16x16x128xf32>
    %46 = tpu.concatenate %37, %38, %39, %40, %41, %42, %43, %44, %45 in 2 : vector<16x16x128xf32>, vector<16x16x128xf32>, vector<16x16x128xf32>, vector<16x16x128xf32>, vector<16x16x128xf32>, vector<16x16x128xf32>, vector<16x16x128xf32>, vector<16x16x128xf32>, vector<16x16x128xf32> -> vector<16x16x1152xf32>
    %47 = vector.shape_cast %46 : vector<16x16x1152xf32> to vector<256x1152xf32>
    %c0_94 = arith.constant 0 : index
    %c0_95 = arith.constant 0 : index
    %48 = vector.load %arg4[%c0_94, %c0_95] : memref<1152x128xf32, #tpu.memory_space<vmem>>, vector<1152x128xf32>
    %cst_96 = arith.constant dense<0.000000e+00> : vector<256x128xf32>
    %49 = tpu.matmul %47, %48, %cst_96 {dimension_numbers = #tpu.dot_dimension_numbers<[1], [0], [0], [1], [0, 0, 1, 1], [], []>} : vector<256x1152xf32>, vector<1152x128xf32>, vector<256x128xf32> -> vector<256x128xf32>
    %c0_97 = arith.constant 0 : index
    %c0_98 = arith.constant 0 : index
    %50 = vector.load %arg5[%c0_97, %c0_98] : memref<1x128xf32, #tpu.memory_space<vmem>>, vector<1x128xf32>
    %51 = vector.broadcast %50 : vector<1x128xf32> to vector<256x128xf32>
    %52 = arith.addf %49, %51 : vector<256x128xf32>
    %53 = vector.shape_cast %52 : vector<256x128xf32> to vector<16x16x128xf32>
    %c1_99 = arith.constant 1 : index
    %c1_100 = arith.constant 1 : index
    %c0_101 = arith.constant 0 : index
    %54 = vector.load %arg7[%c1_99, %c1_100, %c0_101] : memref<18x18x128xf32, #tpu.memory_space<vmem>>, vector<16x16x128xf32>
    %55 = arith.addf %53, %54 : vector<16x16x128xf32>
    %cst_102 = arith.constant 0.000000e+00 : f32
    %56 = vector.broadcast %cst_102 : f32 to vector<16x16x128xf32>
    %57 = arith.maximumf %55, %56 : vector<16x16x128xf32>
    %58 = vector.shape_cast %57 : vector<16x16x128xf32> to vector<1x16x16x128xf32>
    %c0_103 = arith.constant 0 : index
    %c0_104 = arith.constant 0 : index
    %c0_105 = arith.constant 0 : index
    %c0_106 = arith.constant 0 : index
    %59 = vector.load %arg6[%c0_103, %c0_104, %c0_105, %c0_106] : memref<1x16x16x128xf32, #tpu.memory_space<vmem>>, vector<1x16x16x128xf32>
    tpu.vector_store %arg6[%c0_103, %c0_104, %c0_105, %c0_106], %58 {strides = array<i32>} : memref<1x16x16x128xf32, #tpu.memory_space<vmem>>, vector<1x16x16x128xf32>,
    return
  }
  func.func @transform_0(%arg0: i32) -> (i32, i32, i32, i32) {
    %c0_i32 = arith.constant 0 : i32
    %c0_i32_0 = arith.constant 0 : i32
    %c0_i32_1 = arith.constant 0 : i32
    %c0_i32_2 = arith.constant 0 : i32
    return %arg0, %c0_i32, %c0_i32_0, %c0_i32_1 : i32, i32, i32, i32
  }
  func.func @transform_1(%arg0: i32) -> (i32, i32) {
    %c0_i32 = arith.constant 0 : i32
    %c0_i32_0 = arith.constant 0 : i32
    %c0_i32_1 = arith.constant 0 : i32
    return %c0_i32, %c0_i32_0 : i32, i32
  }
  func.func @transform_2(%arg0: i32) -> (i32, i32) {
    %c0_i32 = arith.constant 0 : i32
    %c0_i32_0 = arith.constant 0 : i32
    %c0_i32_1 = arith.constant 0 : i32
    return %c0_i32, %c0_i32_0 : i32, i32
  }
  func.func @transform_3(%arg0: i32) -> (i32, i32) {
    %c0_i32 = arith.constant 0 : i32
    %c0_i32_0 = arith.constant 0 : i32
    %c0_i32_1 = arith.constant 0 : i32
    return %c0_i32, %c0_i32_0 : i32, i32
  }
  func.func @transform_4(%arg0: i32) -> (i32, i32) {
    %c0_i32 = arith.constant 0 : i32
    %c0_i32_0 = arith.constant 0 : i32
    %c0_i32_1 = arith.constant 0 : i32
    return %c0_i32, %c0_i32_0 : i32, i32
  }
  func.func @transform_5(%arg0: i32) -> (i32, i32, i32, i32) {
    %c0_i32 = arith.constant 0 : i32
    %c0_i32_0 = arith.constant 0 : i32
    %c0_i32_1 = arith.constant 0 : i32
    %c0_i32_2 = arith.constant 0 : i32
    return %arg0, %c0_i32, %c0_i32_0, %c0_i32_1 : i32, i32, i32, i32
  }
}

</mosaic_0001>

<bundles_post_ra>
// kernel: basic_block.1
= control target key start
LH: loop header
LB: loop body
LE: loop exit
PB: predicated region body
PF: predicated region fallthrough
CT: control target
= control target key end

     0   :  { %s5086_s18 = smov 0   ;;  %s7444_s0 = inlined_call_operand.vmem [shape: f32[2,16,16,8], index: 0, kind: input, shape index: {}]   ;;  %s7445_s1 = inlined_call_operand.vmem [shape: f32[1152,128], index: 1, kind: input, shape index: {}]   ;;  %s7446_s2 = inlined_call_operand.vmem [shape: f32[1,128], index: 2, kind: input, shape index: {}]   ;;  %s7447_s3 = inlined_call_operand.vmem [shape: f32[1152,128], index: 3, kind: input, shape index: {}]   ;;  %s7448_s4 = inlined_call_operand.vmem [shape: f32[1,128], index: 4, kind: input, shape index: {}]   ;;  %s7449_s5 = inlined_call_operand.vmem [shape: f32[2,16,16,128], index: 5, kind: output, shape index: {}]  }
   0x1 LB: > { %s3787_s19 = sadd.s32 4294967295, %s5052_s18   ;;  %p3791_p0 = scmp.ge.s32.totalorder %s5052_s18, 1  ;;  %s5052_s18 = sphi %s5086_s18, %s15_s18  }
   0x2   : > { %p187_p1 = scmp.lt.s32.totalorder %s5052_s18, 3 }
   0x4   : > { %p188_p2 = pnand %p3791_p0, %p187_p1 }
   0x6   : > { %191 = sbr.rel (%p188_p2) target bundleno = 1430 (0x596), region = 40 }
   0xd   : > { %v5097_v0 = vld [vmem:[%s7445_s1] sm:$0xff]  ;;  %v5102_v1 = vld [vmem:[%s7445_s1 + $0x8] sm:$0xff]  ;;  %v5107_v2 = vld [vmem:[%s7445_s1 + $0x10] sm:$0xff]  ;;  %p5111_p3 = scmp.lt.s32.totalorder %s3787_s19, 1  ;;  %v7450_v3 = vmov 0.0|0.0   ;;  %v5055_v6 = vmov 0.0  }
   0xe   : > { %4058 = vmatprep.subr.bf16.mxu0 %v7450_v3  ;;  %v4059_v4 = vpack.c.bf16 %v5102_v1, %v5097_v0  ;;  %v5121_v5 = vld [vmem:[%s7445_s1 + $0x18] sm:$0xff]  ;;  %225 = vst [vmem:[#allocation2] sm:$0xff] %v5055_v6  ;;  %226 = vst [vmem:[#allocation2 + $0x8] sm:$0xff] %v5055_v6  ;;  %v702_v8 = vld [vmem:[%s7445_s1 + $0x20] sm:$0xff]  ;;  %vm343_vm0 = vcmask 64512  }
   0xf   : > { %227 = vst [vmem:[#allocation2 + $0x10] sm:$0x3] %v5055_v6  ;;  %229 = vst [vmem:[#allocation2 + $0x198] sm:$0xff] %v5055_v6  ;;  %s7514_s19 = smov (!%p5111_p3, %s3787_s19), 1  ;;  %v4062_v7 = vpack.c.bf16 %v5121_v5, %v5107_v2  ;;  %v703_v9 = vld [vmem:[%s7445_s1 + $0x28] sm:$0xff]  ;;  %v704_v11 = vld [vmem:[%s7445_s1 + $0x30] sm:$0xff] }
  0x10   : > { %230 = vst [vmem:[#allocation2 + $0x1a0] sm:$0xff] %v5055_v6  ;;  %231 = vst [vmem:[#allocation2 + $0x1a8] sm:$0x3] %v5055_v6  ;;  %4060 = vmatpush1.bf16.msra.mxu0 %v4059_v4  ;;  %s3800_s8 = sshll.u32 %s7514_s19, 8  ;;  %v4065_v10 = vpack.c.bf16 %v703_v9, %v702_v8  ;;  %v705_v12 = vld [vmem:[%s7445_s1 + $0x38] sm:$0xff]  ;;  %v706_v15 = vld [vmem:[%s7445_s1 + $0x40] sm:$0xff] }
  0x11   : > { %233 = vst [vmem:[#allocation2 + $0x18] sm:$0x1] %v5055_v6  ;;  %234 = vst [vmem:[#allocation2 + $0x30] sm:$0x1] %v5055_v6  ;;  %4061 = vmatprep.subr.bf16.mxu0 %v7450_v3  ;;  %s5238_s15 = scalar_lea.vmem %s7444_s0, %s3800_s8  ;;  %v4068_v14 = vpack.c.bf16 %v705_v12, %v704_v11  ;;  %v707_v16 = vld [vmem:[%s7445_s1 + $0x48] sm:$0xff]  ;;  %v708_v25 = vld [vmem:[%s7445_s1 + $0x50] sm:$0xff]  ;;  %s7354_s14 = scalar_lea.vmem %s7449_s5, %s3800_s8 }
  0x12   : > { %235 = vst [vmem:[#allocation2 + $0x48] sm:$0x1] %v5055_v6  ;;  %236 = vst [vmem:[#allocation2 + $0x60] sm:$0x1] %v5055_v6  ;;  %v5248_v17 = vld [vmem:[%s5238_s15] sm:$0xff]  ;;  %v5253_v19 = vld [vmem:[%s5238_s15 + $0x8] sm:$0xff]  ;;  %v4071_v24 = vpack.c.bf16 %v707_v16, %v706_v15 }
  0x13   : > { %237 = vst [vmem:[#allocation2 + $0x78] sm:$0x1] %v5055_v6  ;;  %238 = vst [vmem:[#allocation2 + $0x90] sm:$0x1] %v5055_v6  ;;  %v344_v18 = vsel %vm343_vm0, %v5248_v17, 0.0  ;;  %v5256_v20 = vld [vmem:[%s5238_s15 + $0x10] sm:$0xff] }
  0x14   : > { %239 = vst [vmem:[#allocation2 + $0xa8] sm:$0x1] %v5055_v6  ;;  %240 = vst [vmem:[#allocation2 + $0xc0] sm:$0x1] %v5055_v6  ;;  %4063 = vmatpush1.bf16.msra.mxu0 %v4062_v7  ;;  %v345_v21 = vsel %vm343_vm0, %v5253_v19, 0.0  ;;  %v346_v22 = vsel %vm343_vm0, %v5256_v20, 0.0 }
  0x15   : > { %241 = vst [vmem:[#allocation2 + $0xd8] sm:$0x1] %v5055_v6  ;;  %242 = vst [vmem:[#allocation2 + $0xf0] sm:$0x1] %v5055_v6  ;;  %4064 = vmatprep.subr.bf16.mxu0 %v7450_v3  ;;  %v441_v13 = vld [vmem:[#allocation2 + $0x1] sm:$0xff]  ;;  %v5263_v23 = vld [vmem:[%s5238_s15 + $0x18] sm:$0xff] }
  0x16   : > { %243 = vst [vmem:[#allocation2 + $0x108] sm:$0x1] %v5055_v6  ;;  %244 = vst [vmem:[#allocation2 + $0x120] sm:$0x1] %v5055_v6  ;;  %913 = vmatprep.mubr.f32.mxu0 %v441_v13  ;;  %v347_v26 = vsel %vm343_vm0, %v5263_v23, 0.0  ;;  %v5271_v27 = vld [vmem:[%s5238_s15 + $0x20] sm:$0xff] }
  0x17   : > { %245 = vst [vmem:[#allocation2 + $0x138] sm:$0x1] %v5055_v6  ;;  %246 = vst [vmem:[#allocation2 + $0x150] sm:$0x1] %v5055_v6  ;;  %v709_v28 = vld [vmem:[%s7445_s1 + $0x58] sm:$0xff]  ;;  %v348_v29 = vsel %vm343_vm0, %v5271_v27, 0.0 }
  0x18   : > { %247 = vst [vmem:[#allocation2 + $0x168] sm:$0x1] %v5055_v6  ;;  %248 = vst [vmem:[#allocation2 + $0x180] sm:$0x1] %v5055_v6  ;;  %4066 = vmatpush1.bf16.msra.mxu0 %v4065_v10  ;;  %v5280_v30 = vld [vmem:[%s5238_s15 + $0x28] sm:$0xff]  ;;  %v5283_v31 = vld [vmem:[%s5238_s15 + $0x30] sm:$0xff]  ;;  %v4074_v39 = vpack.c.bf16 %v709_v28, %v708_v25 }
  0x19   : > { %251 = vst [vmem:[#allocation2 + $0x29] sm:$0x1] %v5055_v6  ;;  %252 = vst [vmem:[#allocation2 + $0x41] sm:$0x1] %v5055_v6  ;;  %4067 = vmatprep.subr.bf16.mxu0 %v7450_v3  ;;  %v349_v32 = vsel %vm343_vm0, %v5280_v30, 0.0  ;;  %v350_v33 = vsel %vm343_vm0, %v5283_v31, 0.0 }
  0x1a   : > { %253 = vst [vmem:[#allocation2 + $0x59] sm:$0x1] %v5055_v6  ;;  %254 = vst [vmem:[#allocation2 + $0x71] sm:$0x1] %v5055_v6  ;;  %v5290_v34 = vld [vmem:[%s5238_s15 + $0x38] sm:$0xff]  ;;  %v5293_v35 = vld [vmem:[%s5238_s15 + $0x40] sm:$0xff] }
  0x1b   : > { %255 = vst [vmem:[#allocation2 + $0x89] sm:$0x1] %v5055_v6  ;;  %256 = vst [vmem:[#allocation2 + $0xa1] sm:$0x1] %v5055_v6  ;;  %v351_v36 = vsel %vm343_vm0, %v5290_v34, 0.0  ;;  %v352_v37 = vsel %vm343_vm0, %v5293_v35, 0.0 }
  0x1c   : > { %257 = vst [vmem:[#allocation2 + $0xb9] sm:$0x1] %v5055_v6  ;;  %258 = vst [vmem:[#allocation2 + $0xd1] sm:$0x1] %v5055_v6  ;;  %4069 = vmatpush1.bf16.msra.mxu0 %v4068_v14  ;;  %v5300_v38 = vld [vmem:[%s5238_s15 + $0x48] sm:$0xff]  ;;  %v710_v40 = vld [vmem:[%s7445_s1 + $0x60] sm:$0xff] }
  0x1d   : > { %259 = vst [vmem:[#allocation2 + $0xe9] sm:$0x1] %v5055_v6  ;;  %260 = vst [vmem:[#allocation2 + $0x101] sm:$0x1] %v5055_v6  ;;  %4070 = vmatprep.subr.bf16.mxu0 %v7450_v3  ;;  %v353_v41 = vsel %vm343_vm0, %v5300_v38, 0.0  ;;  %v5308_v42 = vld [vmem:[%s5238_s15 + $0x50] sm:$0xff] }
  0x1e   : > { %261 = vst [vmem:[#allocation2 + $0x119] sm:$0x1] %v5055_v6  ;;  %262 = vst [vmem:[#allocation2 + $0x131] sm:$0x1] %v5055_v6  ;;  %v711_v43 = vld [vmem:[%s7445_s1 + $0x68] sm:$0xff]  ;;  %v354_v44 = vsel %vm343_vm0, %v5308_v42, 0.0 }
  0x1f   : > { %263 = vst [vmem:[#allocation2 + $0x149] sm:$0x1] %v5055_v6  ;;  %264 = vst [vmem:[#allocation2 + $0x161] sm:$0x1] %v5055_v6  ;;  %v5317_v45 = vld [vmem:[%s5238_s15 + $0x58] sm:$0xff]  ;;  %v5320_v46 = vld [vmem:[%s5238_s15 + $0x60] sm:$0xff]  ;;  %v4077_v52 = vpack.c.bf16 %v711_v43, %v710_v40 }
  0x20   : > { %265 = vst [vmem:[#allocation2 + $0x179] sm:$0x1] %v5055_v6  ;;  %266 = vst [vmem:[#allocation2 + $0x191] sm:$0x1] %v5055_v6  ;;  %4072 = vmatpush1.bf16.msra.mxu0 %v4071_v24  ;;  %v355_v47 = vsel %vm343_vm0, %v5317_v45, 0.0  ;;  %v356_v48 = vsel %vm343_vm0, %v5320_v46, 0.0 }
  0x21   : > { %268 = vst [vmem:[#allocation3] sm:$0xff] %v5055_v6  ;;  %269 = vst [vmem:[#allocation3 + $0x8] sm:$0xff] %v5055_v6  ;;  %4073 = vmatprep.subr.bf16.mxu0 %v7450_v3  ;;  %v5327_v49 = vld [vmem:[%s5238_s15 + $0x68] sm:$0xff]  ;;  %v5332_v51 = vld [vmem:[%s5238_s15 + $0x70] sm:$0xff] }
  0x22   : > { %270 = vst [vmem:[#allocation3 + $0x10] sm:$0x3] %v5055_v6  ;;  %272 = vst [vmem:[#allocation3 + $0x198] sm:$0xff] %v5055_v6  ;;  %v357_v50 = vsel %vm343_vm0, %v5327_v49, 0.0  ;;  %v712_v53 = vld [vmem:[%s7445_s1 + $0x70] sm:$0xff]  ;;  %v358_v54 = vsel %vm343_vm0, %v5332_v51, 0.0 }
  0x23   : > { %273 = vst [vmem:[#allocation3 + $0x1a0] sm:$0xff] %v5055_v6  ;;  %274 = vst [vmem:[#allocation3 + $0x1a8] sm:$0x3] %v5055_v6  ;;  %v713_v55 = vld [vmem:[%s7445_s1 + $0x78] sm:$0xff]  ;;  %v5347_v57 = vld [vmem:[%s5238_s15 + $0x80] sm:$0xff] }
  0x24   : > { %276 = vst [vmem:[#allocation3 + $0x18] sm:$0x1] %v5055_v6  ;;  %277 = vst [vmem:[#allocation3 + $0x30] sm:$0x1] %v5055_v6  ;;  %4075 = vmatpush1.bf16.msra.mxu0 %v4074_v39  ;;  %v5344_v56 = vld [vmem:[%s5238_s15 + $0x78] sm:$0xff]  ;;  %v360_v59 = vsel %vm343_vm0, %v5347_v57, 0.0  ;;  %v4080_v60 = vpack.c.bf16 %v713_v55, %v712_v53 }
  0x25   : > { %278 = vst [vmem:[#allocation3 + $0x48] sm:$0x1] %v5055_v6  ;;  %279 = vst [vmem:[#allocation3 + $0x60] sm:$0x1] %v5055_v6  ;;  %4076 = vmatprep.subr.bf16.mxu0 %v7450_v3  ;;  %v359_v58 = vsel %vm343_vm0, %v5344_v56, 0.0  ;;  %v5354_v61 = vld [vmem:[%s5238_s15 + $0x88] sm:$0xff] }
  0x26   : > { %280 = vst [vmem:[#allocation3 + $0x78] sm:$0x1] %v5055_v6  ;;  %281 = vst [vmem:[#allocation3 + $0x90] sm:$0x1] %v5055_v6  ;;  %v5357_v62 = vld [vmem:[%s5238_s15 + $0x90] sm:$0xff]  ;;  %v714_v63 = vld [vmem:[%s7445_s1 + $0x80] sm:$0xff] }
  0x27   : > { %282 = vst [vmem:[#allocation3 + $0xa8] sm:$0x1] %v5055_v6  ;;  %283 = vst [vmem:[#allocation3 + $0xc0] sm:$0x1] %v5055_v6  ;;  %v715_v0 = vld [vmem:[%s7445_s1 + $0x88] sm:$0xff]  ;;  %v361_v1 = vsel %vm343_vm0, %v5354_v61, 0.0 }
  0x28   : > { %284 = vst [vmem:[#allocation3 + $0xd8] sm:$0x1] %v5055_v6  ;;  %285 = vst [vmem:[#allocation3 + $0xf0] sm:$0x1] %v5055_v6  ;;  %4078 = vmatpush1.bf16.msra.mxu0 %v4077_v52  ;;  %v362_v2 = vsel %vm343_vm0, %v5357_v62, 0.0  ;;  %v5371_v4 = vld [vmem:[%s5238_s15 + $0x98] sm:$0xff]  ;;  %v4083_v8 = vpack.c.bf16 %v715_v0, %v714_v63 }
  0x29   : > { %286 = vst [vmem:[#allocation3 + $0x108] sm:$0x1] %v5055_v6  ;;  %287 = vst [vmem:[#allocation3 + $0x120] sm:$0x1] %v5055_v6  ;;  %4079 = vmatprep.subr.bf16.mxu0 %v7450_v3  ;;  %v363_v5 = vsel %vm343_vm0, %v5371_v4, 0.0  ;;  %v5376_v7 = vld [vmem:[%s5238_s15 + $0xa0] sm:$0xff] }
  0x2a   : > { %288 = vst [vmem:[#allocation3 + $0x138] sm:$0x1] %v5055_v6  ;;  %289 = vst [vmem:[#allocation3 + $0x150] sm:$0x1] %v5055_v6  ;;  %v716_v9 = vld [vmem:[%s7445_s1 + $0x90] sm:$0xff]  ;;  %v717_v10 = vld [vmem:[%s7445_s1 + $0x98] sm:$0xff] }
  0x2b   : > { %290 = vst [vmem:[#allocation3 + $0x168] sm:$0x1] %v5055_v6  ;;  %291 = vst [vmem:[#allocation3 + $0x180] sm:$0x1] %v5055_v6  ;;  %v364_v11 = vsel %vm343_vm0, %v5376_v7, 0.0  ;;  %v5387_v12 = vld [vmem:[%s5238_s15 + $0xa8] sm:$0xff]  ;;  %v4086_v24 = vpack.c.bf16 %v717_v10, %v716_v9 }
  0x2c   : > { %294 = vst [vmem:[#allocation3 + $0x29] sm:$0x1] %v5055_v6  ;;  %295 = vst [vmem:[#allocation3 + $0x41] sm:$0x1] %v5055_v6  ;;  %4081 = vmatpush1.bf16.msra.mxu0 %v4080_v60  ;;  %v365_v13 = vsel %vm343_vm0, %v5387_v12, 0.0  ;;  %v5393_v14 = vld [vmem:[%s5238_s15 + $0xb0] sm:$0xff] }
  0x2d   : > { %296 = vst [vmem:[#allocation3 + $0x59] sm:$0x1] %v5055_v6  ;;  %297 = vst [vmem:[#allocation3 + $0x71] sm:$0x1] %v5055_v6  ;;  %4082 = vmatprep.subr.bf16.mxu0 %v7450_v3  ;;  %v5396_v15 = vld [vmem:[%s5238_s15 + $0xb8] sm:$0xff]  ;;  %v5399_v16 = vld [vmem:[%s5238_s15 + $0xc0] sm:$0xff] }
  0x2e   : > { %298 = vst [vmem:[#allocation3 + $0x89] sm:$0x1] %v5055_v6  ;;  %299 = vst [vmem:[#allocation3 + $0xa1] sm:$0x1] %v5055_v6  ;;  %v718_v25 = vld [vmem:[%s7445_s1 + $0xa0] sm:$0xff]  ;;  %v5415_v28 = vld [vmem:[%s5238_s15 + $0xc8] sm:$0xff] }
  0x2f   : > { %300 = vst [vmem:[#allocation3 + $0xb9] sm:$0x1] %v5055_v6  ;;  %301 = vst [vmem:[#allocation3 + $0xd1] sm:$0x1] %v5055_v6  ;;  %v723_v43 = vld [vmem:[%s7445_s1 + $0xc8] sm:$0xff]  ;;  %v725_v52 = vld [vmem:[%s7445_s1 + $0xd8] sm:$0xff] }
  0x30   : > { %302 = vst [vmem:[#allocation3 + $0xe9] sm:$0x1] %v5055_v6  ;;  %303 = vst [vmem:[#allocation3 + $0x101] sm:$0x1] %v5055_v6  ;;  %4084 = vmatpush1.bf16.msra.mxu0 %v4083_v8  ;;  %v5451_v53 = vld [vmem:[%s5238_s15 + $0xe0] sm:$0xff]  ;;  %v5463_v60 = vld [vmem:[%s5238_s15 + $0xe8] sm:$0xff] }
  0x31   : > { %304 = vst [vmem:[#allocation3 + $0x119] sm:$0x1] %v5055_v6  ;;  %305 = vst [vmem:[#allocation3 + $0x131] sm:$0x1] %v5055_v6  ;;  %4085 = vmatprep.subr.bf16.mxu0 %v7450_v3  ;;  %v373_v63 = vsel %vm343_vm0, %v5463_v60, 0.0  ;;  %v730_v8 = vld [vmem:[%s7445_s1 + $0x100] sm:$0xff] }
  0x32   : > { %306 = vst [vmem:[#allocation3 + $0x149] sm:$0x1] %v5055_v6  ;;  %307 = vst [vmem:[#allocation3 + $0x161] sm:$0x1] %v5055_v6  ;;  %v731_v9 = vld [vmem:[%s7445_s1 + $0x108] sm:$0xff] }
  0x33   : > { %308 = vst [vmem:[#allocation3 + $0x179] sm:$0x1] %v5055_v6  ;;  %309 = vst [vmem:[#allocation3 + $0x191] sm:$0x1] %v5055_v6 }
  0x34   : > { %232 = vst [vmem:[#allocation2] sm:$0x1] %v5055_v6  ;;  %249 = vst [vmem:[#allocation2 + $0x198] sm:$0x1] %v5055_v6  ;;  %4087 = vmatpush1.bf16.msra.mxu0 %v4086_v24  ;;  %v734_v24 = vld [vmem:[%s7445_s1 + $0x120] sm:$0xff] }
  0x35   : > { %250 = vst [vmem:[#allocation2 + $0x11] sm:$0x1] %v5055_v6  ;;  %267 = vst [vmem:[#allocation2 + $0x1a9] sm:$0x1] %v5055_v6  ;;  %4088 = vmatprep.subr.bf16.mxu0 %v7450_v3 }
  0x36   : > { %275 = vst [vmem:[#allocation3] sm:$0x1] %v5055_v6  ;;  %292 = vst [vmem:[#allocation3 + $0x198] sm:$0x1] %v5055_v6 }
  0x37   : > { %293 = vst [vmem:[#allocation3 + $0x11] sm:$0x1] %v5055_v6  ;;  %310 = vst [vmem:[#allocation3 + $0x1a9] sm:$0x1] %v5055_v6 }
  0x38   : > { %377 = vst [vmem:[#allocation2 + $0x19] sm:$0xff] %v344_v18  ;;  %378 = vst [vmem:[#allocation2 + $0x21] sm:$0xff] %v345_v21  ;;  %v366_v18 = vsel %vm343_vm0, %v5393_v14, 0.0  ;;  %v367_v21 = vsel %vm343_vm0, %v5396_v15, 0.0 }
  0x39   : > { %379 = vst [vmem:[#allocation2 + $0x31] sm:$0xff] %v346_v22  ;;  %380 = vst [vmem:[#allocation2 + $0x39] sm:$0xff] %v347_v26  ;;  %v368_v22 = vsel %vm343_vm0, %v5399_v16, 0.0  ;;  %v719_v26 = vld [vmem:[%s7445_s1 + $0xa8] sm:$0xff] }
  0x3a   : > { %381 = vst [vmem:[#allocation2 + $0x49] sm:$0xff] %v348_v29  ;;  %382 = vst [vmem:[#allocation2 + $0x51] sm:$0xff] %v349_v32  ;;  %v369_v29 = vsel %vm343_vm0, %v5415_v28, 0.0  ;;  %v4089_v32 = vpack.c.bf16 %v719_v26, %v718_v25  ;;  %v735_v25 = vld [vmem:[%s7445_s1 + $0x128] sm:$0xff] }
  0x3b   : > { %383 = vst [vmem:[#allocation2 + $0x61] sm:$0xff] %v350_v33  ;;  %384 = vst [vmem:[#allocation2 + $0x69] sm:$0xff] %v351_v36  ;;  %v720_v33 = vld [vmem:[%s7445_s1 + $0xb0] sm:$0xff]  ;;  %v721_v36 = vld [vmem:[%s7445_s1 + $0xb8] sm:$0xff] }
  0x3c   : > { %385 = vst [vmem:[#allocation2 + $0x79] sm:$0xff] %v352_v37  ;;  %386 = vst [vmem:[#allocation2 + $0x81] sm:$0xff] %v353_v41  ;;  %v5427_v37 = vld [vmem:[%s5238_s15 + $0xd0] sm:$0xff]  ;;  %4090 = vmatpush1.bf16.msra.mxu0 %v4089_v32  ;;  %v4092_v40 = vpack.c.bf16 %v721_v36, %v720_v33  ;;  %v722_v41 = vld [vmem:[%s7445_s1 + $0xc0] sm:$0xff] }
  0x3d   : > { %387 = vst [vmem:[#allocation2 + $0x91] sm:$0xff] %v354_v44  ;;  %388 = vst [vmem:[#allocation2 + $0x99] sm:$0xff] %v355_v47  ;;  %v370_v39 = vsel %vm343_vm0, %v5427_v37, 0.0  ;;  %4091 = vmatprep.subr.bf16.mxu0 %v7450_v3  ;;  %v5439_v44 = vld [vmem:[%s5238_s15 + $0xd8] sm:$0xff]  ;;  %v409_v10 = vld [vmem:[#allocation2] sm:$0xff] }
  0x3e   : > { %389 = vst [vmem:[#allocation2 + $0xa9] sm:$0xff] %v356_v48  ;;  %390 = vst [vmem:[#allocation2 + $0xb1] sm:$0xff] %v357_v50  ;;  %v371_v47 = vsel %vm343_vm0, %v5439_v44, 0.0  ;;  %v4095_v48 = vpack.c.bf16 %v723_v43, %v722_v41  ;;  %v724_v50 = vld [vmem:[%s7445_s1 + $0xd0] sm:$0xff]  ;;  %v737_v33 = vld [vmem:[%s7445_s1 + $0x138] sm:$0xff] }
  0x3f   : > { %391 = vst [vmem:[#allocation2 + $0xc1] sm:$0xff] %v358_v54  ;;  %392 = vst [vmem:[#allocation2 + $0xc9] sm:$0xff] %v359_v58  ;;  %v372_v54 = vsel %vm343_vm0, %v5451_v53, 0.0  ;;  %v4098_v55 = vpack.c.bf16 %v725_v52, %v724_v50  ;;  %v726_v58 = vld [vmem:[%s7445_s1 + $0xe0] sm:$0xff]  ;;  %v5498_v26 = vld [vmem:[#allocation2 + $0x18] sm:$0xff] }
  0x40   : > { %393 = vst [vmem:[#allocation2 + $0xd9] sm:$0xff] %v360_v59  ;;  %394 = vst [vmem:[#allocation2 + $0xe1] sm:$0xff] %v361_v1  ;;  %4093 = vmatpush1.bf16.msra.mxu0 %v4092_v40  ;;  %v727_v59 = vld [vmem:[%s7445_s1 + $0xe8] sm:$0xff]  ;;  %v728_v1 = vld [vmem:[%s7445_s1 + $0xf0] sm:$0xff] }
  0x41   : > { %395 = vst [vmem:[#allocation2 + $0xf1] sm:$0xff] %v362_v2  ;;  %396 = vst [vmem:[#allocation2 + $0xf9] sm:$0xff] %v363_v5  ;;  %4094 = vmatprep.subr.bf16.mxu0 %v7450_v3  ;;  %v4101_v0 = vpack.c.bf16 %v727_v59, %v726_v58  ;;  %v729_v2 = vld [vmem:[%s7445_s1 + $0xf8] sm:$0xff]  ;;  %v736_v32 = vld [vmem:[%s7445_s1 + $0x130] sm:$0xff] }
  0x42   : > { %397 = vst [vmem:[#allocation2 + $0x109] sm:$0xff] %v364_v11  ;;  %398 = vst [vmem:[#allocation2 + $0x111] sm:$0xff] %v365_v13  ;;  %v4104_v5 = vpack.c.bf16 %v729_v2, %v728_v1  ;;  %v4107_v11 = vpack.c.bf16 %v731_v9, %v730_v8  ;;  %v442_v13 = vld [vmem:[#allocation2 + $0x9] sm:$0xff]  ;;  %v738_v36 = vld [vmem:[%s7445_s1 + $0x140] sm:$0xff] }
  0x43   : > { %399 = vst [vmem:[#allocation2 + $0x121] sm:$0xff] %v366_v18  ;;  %400 = vst [vmem:[#allocation2 + $0x129] sm:$0xff] %v367_v21  ;;  %v732_v18 = vld [vmem:[%s7445_s1 + $0x110] sm:$0xff]  ;;  %v733_v21 = vld [vmem:[%s7445_s1 + $0x118] sm:$0xff] }
  0x44   : > { %401 = vst [vmem:[#allocation2 + $0x139] sm:$0xff] %v368_v22  ;;  %402 = vst [vmem:[#allocation2 + $0x141] sm:$0xff] %v369_v29  ;;  %4096 = vmatpush1.bf16.msra.mxu0 %v4095_v48  ;;  %v4110_v22 = vpack.c.bf16 %v733_v21, %v732_v18  ;;  %v4113_v29 = vpack.c.bf16 %v735_v25, %v734_v24  ;;  %v5524_v41 = vld [vmem:[#allocation2 + $0x32] sm:$0xff]  ;;  %v742_v50 = vld [vmem:[%s7445_s1 + $0x160] sm:$0xff] }
  0x45   : > { %403 = vst [vmem:[#allocation2 + $0x151] sm:$0xff] %v370_v39  ;;  %404 = vst [vmem:[#allocation2 + $0x159] sm:$0xff] %v371_v47  ;;  %4097 = vmatprep.subr.bf16.mxu0 %v7450_v3  ;;  %v739_v39 = vld [vmem:[%s7445_s1 + $0x148] sm:$0xff]  ;;  %v740_v43 = vld [vmem:[%s7445_s1 + $0x150] sm:$0xff]  ;;  %3930 = vmatprep.mubr.f32.mxu1 %v5524_v41 }
  0x46   : > { %405 = vst [vmem:[#allocation2 + $0x169] sm:$0xff] %v372_v54  ;;  %406 = vst [vmem:[#allocation2 + $0x171] sm:$0xff] %v373_v63  ;;  %v4119_v40 = vpack.c.bf16 %v739_v39, %v738_v36  ;;  %v741_v47 = vld [vmem:[%s7445_s1 + $0x158] sm:$0xff]  ;;  %v743_v52 = vld [vmem:[%s7445_s1 + $0x168] sm:$0xff] }
  0x47   : > { %v4122_v48 = vpack.c.bf16 %v741_v47, %v740_v43  ;;  %v4125_v54 = vpack.c.bf16 %v743_v52, %v742_v50  ;;  %v745_v58 = vld [vmem:[%s7445_s1 + $0x178] sm:$0xff]  ;;  %v746_v63 = vld [vmem:[%s7445_s1 + $0x180] sm:$0xff]  ;;  %v748_v2 = vld [vmem:[%s7445_s1 + $0x190] sm:$0xff] }
  0x48   : > { %4099 = vmatpush1.bf16.msra.mxu0 %v4098_v55  ;;  %v744_v55 = vld [vmem:[%s7445_s1 + $0x170] sm:$0xff]  ;;  %v750_v9 = vld [vmem:[%s7445_s1 + $0x1a0] sm:$0xff]  ;;  %v753_v18 = vld [vmem:[%s7445_s1 + $0x1b8] sm:$0xff] }
  0x49   : > { %4100 = vmatprep.subr.bf16.mxu0 %v7450_v3  ;;  %v4128_v59 = vpack.c.bf16 %v745_v58, %v744_v55  ;;  %v755_v24 = vld [vmem:[%s7445_s1 + $0x1c8] sm:$0xff]  ;;  %v761_v43 = vld [vmem:[%s7445_s1 + $0x1f8] sm:$0xff]  ;;  %v5727_v52 = vld [vmem:[%s5238_s15 + $0xf0] sm:$0xff] }
  0x4a   : > { %v759_v36 = vld [vmem:[%s7445_s1 + $0x1e8] sm:$0xff]  ;;  %v5674_v50 = vld [vmem:[#allocation2 + $0xd8] sm:$0xff]  ;;  %v762_v58 = vld [vmem:[%s7445_s1 + $0x200] sm:$0xff] }
  0x4c   : > { %4102 = vmatpush1.bf16.msra.mxu0 %v4101_v0  ;;  %v747_v0 = vld [vmem:[%s7445_s1 + $0x188] sm:$0xff] }
  0x4d   : > { %4103 = vmatprep.subr.bf16.mxu0 %v7450_v3  ;;  %v4131_v1 = vpack.c.bf16 %v747_v0, %v746_v63  ;;  %v5744_v55 = vld [vmem:[#allocation2 + $0x168] sm:$0xff]  ;;  %v765_v0 = vld [vmem:[%s7445_s1 + $0x218] sm:$0xff] }
  0x50   : > { %4105 = vmatpush1.bf16.msra.mxu0 %v4104_v5  ;;  %v749_v5 = vld [vmem:[%s7445_s1 + $0x198] sm:$0xff] }
  0x51   : > { %4106 = vmatprep.subr.bf16.mxu0 %v7450_v3  ;;  %v4134_v8 = vpack.c.bf16 %v749_v5, %v748_v2  ;;  %v767_v5 = vld [vmem:[%s7445_s1 + $0x228] sm:$0xff] }
  0x53   : > { %914 = vmatmul.mubr.f32.vlgmr.msra.gmra.mrb[0].mxu0 %v409_v10  ;;  %v751_v10 = vld [vmem:[%s7445_s1 + $0x1a8] sm:$0xff] }
  0x54   : > { %4108 = vmatpush1.bf16.msra.mxu0 %v4107_v11  ;;  %918 = vmatprep.mubr.f32.mxu0 %v442_v13  ;;  %v4137_v11 = vpack.c.bf16 %v751_v10, %v750_v9  ;;  %v752_v13 = vld [vmem:[%s7445_s1 + $0x1b0] sm:$0xff]  ;;  %v769_v10 = vld [vmem:[%s7445_s1 + $0x238] sm:$0xff] }
  0x55   : > { %4109 = vmatprep.subr.bf16.mxu0 %v7450_v3  ;;  %v4140_v21 = vpack.c.bf16 %v753_v18, %v752_v13  ;;  %v770_v13 = vld [vmem:[%s7445_s1 + $0x240] sm:$0xff]  ;;  %v771_v18 = vld [vmem:[%s7445_s1 + $0x248] sm:$0xff] }
  0x57   : > { %919 = vmatmul.mubr.f32.gmra.mrb[2].mxu0 %v5055_v6  ;;  %v5510_v6 = vld [vmem:[#allocation2 + $0x20] sm:$0xff] }
  0x58   : > { %5014 = vmatprep.mubr.msk.f32.mxu0 %vm343_vm0, %v5248_v17  ;;  %4111 = vmatpush1.bf16.msra.mxu0 %v4110_v22  ;;  %v4116_v17 = vpack.c.bf16 %v737_v33, %v736_v32  ;;  %v754_v22 = vld [vmem:[%s7445_s1 + $0x1c0] sm:$0xff]  ;;  %v757_v32 = vld [vmem:[%s7445_s1 + $0x1d8] sm:$0xff] }
  0x59   : > { %4112 = vmatprep.subr.bf16.mxu0 %v7450_v3  ;;  %v4143_v25 = vpack.c.bf16 %v755_v24, %v754_v22  ;;  %v773_v22 = vld [vmem:[%s7445_s1 + $0x258] sm:$0xff] }
  0x5a   : > { %v5805_v24 = vld [vmem:[#allocation2 + $0x3a] sm:$0xff] }
  0x5b   : > { %924 = vmatmul.mubr.f32.gmra.mrb[4].mxu0 %v5498_v26 }
  0x5c   : > { %5015 = vmatprep.mubr.msk.f32.mxu0 %vm343_vm0, %v5253_v19  ;;  %4114 = vmatpush1.bf16.msra.mxu0 %v4113_v29  ;;  %v5522_v19 = vld [vmem:[#allocation2 + $0x30] sm:$0xff] }
  0x5d   : > { %4115 = vmatprep.subr.bf16.mxu0 %v7450_v3  ;;  %v756_v29 = vld [vmem:[%s7445_s1 + $0x1d0] sm:$0xff] }
  0x5e   : > { %v4146_v33 = vpack.c.bf16 %v757_v32, %v756_v29  ;;  %v775_v29 = vld [vmem:[%s7445_s1 + $0x268] sm:$0xff] }
  0x5f   : > { %929 = vmatmul.mubr.f32.gmra.mrb[6].mxu0 %v5510_v6  ;;  %v5816_v32 = vld [vmem:[#allocation2 + $0x4a] sm:$0xff] }
  0x60   : > { %5016 = vmatprep.mubr.msk.f32.mxu0 %vm343_vm0, %v5256_v20  ;;  %4117 = vmatpush1.bf16.msra.mxu0 %v4116_v17  ;;  %v5537_v20 = vld [vmem:[#allocation2 + $0x38] sm:$0xff]  ;;  %v758_v17 = vld [vmem:[%s7445_s1 + $0x1e0] sm:$0xff] }
  0x61   : > { %4118 = vmatprep.subr.bf16.mxu0 %v7450_v3  ;;  %v4149_v39 = vpack.c.bf16 %v759_v36, %v758_v17  ;;  %v777_v17 = vld [vmem:[%s7445_s1 + $0x278] sm:$0xff] }
  0x62   : > { %v5827_v36 = vld [vmem:[#allocation2 + $0x52] sm:$0xff] }
  0x63   : > { %934 = vmatmul.mubr.f32.gmra.mrb[8].mxu0 %v5522_v19 }
  0x64   : > { %5017 = vmatprep.mubr.msk.f32.mxu0 %vm343_vm0, %v5263_v23  ;;  %4120 = vmatpush1.bf16.msra.mxu0 %v4119_v40  ;;  %v5549_v23 = vld [vmem:[#allocation2 + $0x48] sm:$0xff]  ;;  %v760_v40 = vld [vmem:[%s7445_s1 + $0x1f0] sm:$0xff] }
  0x65   : > { %4121 = vmatprep.subr.bf16.mxu0 %v7450_v3  ;;  %v4152_v47 = vpack.c.bf16 %v761_v43, %v760_v40  ;;  %v779_v40 = vld [vmem:[%s7445_s1 + $0x288] sm:$0xff] }
  0x66   : > { %v5838_v43 = vld [vmem:[#allocation2 + $0x62] sm:$0xff] }
  0x67   : > { %939 = vmatmul.mubr.f32.gmra.mrb[10].mxu0 %v5537_v20 }
  0x68   : > { %5018 = vmatprep.mubr.msk.f32.mxu0 %vm343_vm0, %v5271_v27  ;;  %4123 = vmatpush1.bf16.msra.mxu0 %v4122_v48  ;;  %v5561_v27 = vld [vmem:[#allocation2 + $0x50] sm:$0xff]  ;;  %v5663_v48 = vld [vmem:[#allocation2 + $0xc0] sm:$0xff] }
  0x69   : > { %4124 = vmatprep.subr.bf16.mxu0 %v7450_v3 }
  0x6b   : > { %944 = vmatmul.mubr.f32.gmra.mrb[12].mxu0 %v5549_v23 }
  0x6c   : > { %5019 = vmatprep.mubr.msk.f32.mxu0 %vm343_vm0, %v5280_v30  ;;  %4126 = vmatpush1.bf16.msra.mxu0 %v4125_v54  ;;  %v5573_v30 = vld [vmem:[#allocation2 + $0x60] sm:$0xff]  ;;  %v5737_v54 = vld [vmem:[%s5238_s15 + $0xf8] sm:$0xff] }
  0x6d   : > { %4127 = vmatprep.subr.bf16.mxu0 %v7450_v3 }
  0x6f   : > { %949 = vmatmul.mubr.f32.gmra.mrb[14].mxu0 %v5561_v27 }
  0x70   : > { %5020 = vmatprep.mubr.msk.f32.mxu0 %vm343_vm0, %v5283_v31  ;;  %4129 = vmatpush1.bf16.msra.mxu0 %v4128_v59  ;;  %v5585_v31 = vld [vmem:[#allocation2 + $0x68] sm:$0xff] }
  0x71   : > { %4130 = vmatprep.subr.bf16.mxu0 %v7450_v3  ;;  %v763_v59 = vld [vmem:[%s7445_s1 + $0x208] sm:$0xff] }
  0x72   : > { %v4155_v63 = vpack.c.bf16 %v763_v59, %v762_v58  ;;  %v782_v58 = vld [vmem:[%s7445_s1 + $0x2a0] sm:$0xff]  ;;  %v783_v59 = vld [vmem:[%s7445_s1 + $0x2a8] sm:$0xff] }
  0x73   : > { %954 = vmatmul.mubr.f32.gmra.mrb[16].mxu0 %v5573_v30 }
  0x74   : > { %5021 = vmatprep.mubr.msk.f32.mxu0 %vm343_vm0, %v5290_v34  ;;  %4132 = vmatpush1.bf16.msra.mxu0 %v4131_v1  ;;  %v5597_v34 = vld [vmem:[#allocation2 + $0x78] sm:$0xff]  ;;  %v474_v1 = vld [vmem:[#allocation2 + $0xa] sm:$0xff] }
  0x75   : > { %4133 = vmatprep.subr.bf16.mxu0 %v7450_v3 }
  0x77   : > { %959 = vmatmul.mubr.f32.gmra.mrb[18].mxu0 %v5585_v31 }
  0x78   : > { %5022 = vmatprep.mubr.msk.f32.mxu0 %vm343_vm0, %v5293_v35  ;;  %4135 = vmatpush1.bf16.msra.mxu0 %v4134_v8  ;;  %v5609_v35 = vld [vmem:[#allocation2 + $0x80] sm:$0xff] }
  0x79   : > { %4136 = vmatprep.subr.bf16.mxu0 %v7450_v3  ;;  %v5774_v8 = vld [vmem:[#allocation2 + $0x1a] sm:$0xff] }
  0x7b   : > { %964 = vmatmul.mubr.f32.gmra.mrb[20].mxu0 %v5597_v34 }
  0x7c   : > { %5023 = vmatprep.mubr.msk.f32.mxu0 %vm343_vm0, %v5300_v38  ;;  %4138 = vmatpush1.bf16.msra.mxu0 %v4137_v11  ;;  %v5621_v38 = vld [vmem:[#allocation2 + $0x90] sm:$0xff]  ;;  %v5785_v11 = vld [vmem:[#allocation2 + $0x22] sm:$0xff] }
  0x7d   : > { %4139 = vmatprep.subr.bf16.mxu0 %v7450_v3 }
  0x7f   : > { %969 = vmatmul.mubr.f32.gmra.mrb[22].mxu0 %v5609_v35 }
  0x80   : > { %5024 = vmatprep.mubr.msk.f32.mxu0 %vm343_vm0, %v5308_v42  ;;  %4141 = vmatpush1.bf16.msra.mxu0 %v4140_v21  ;;  %v5633_v42 = vld [vmem:[#allocation2 + $0x98] sm:$0xff]  ;;  %v772_v21 = vld [vmem:[%s7445_s1 + $0x250] sm:$0xff] }
  0x81   : > { %4142 = vmatprep.subr.bf16.mxu0 %v7450_v3 }
  0x83   : > { %974 = vmatmul.mubr.f32.gmra.mrb[24].mxu0 %v5621_v38 }
  0x84   : > { %5025 = vmatprep.mubr.msk.f32.mxu0 %vm343_vm0, %v5317_v45  ;;  %4144 = vmatpush1.bf16.msra.mxu0 %v4143_v25  ;;  %v5645_v45 = vld [vmem:[#allocation2 + $0xa8] sm:$0xff]  ;;  %v774_v25 = vld [vmem:[%s7445_s1 + $0x260] sm:$0xff] }
  0x85   : > { %4145 = vmatprep.subr.bf16.mxu0 %v7450_v3 }
  0x87   : > { %979 = vmatmul.mubr.f32.gmra.mrb[26].mxu0 %v5633_v42 }
  0x88   : > { %5026 = vmatprep.mubr.msk.f32.mxu0 %vm343_vm0, %v5320_v46  ;;  %4147 = vmatpush1.bf16.msra.mxu0 %v4146_v33  ;;  %v5657_v46 = vld [vmem:[#allocation2 + $0xb0] sm:$0xff] }
  0x89   : > { %4148 = vmatprep.subr.bf16.mxu0 %v7450_v3  ;;  %v776_v33 = vld [vmem:[%s7445_s1 + $0x270] sm:$0xff] }
  0x8b   : > { %984 = vmatmul.mubr.f32.gmra.mrb[28].mxu0 %v5645_v45 }
  0x8c   : > { %5027 = vmatprep.mubr.msk.f32.mxu0 %vm343_vm0, %v5327_v49  ;;  %4150 = vmatpush1.bf16.msra.mxu0 %v4149_v39  ;;  %v5669_v49 = vld [vmem:[#allocation2 + $0xc8] sm:$0xff]  ;;  %v778_v39 = vld [vmem:[%s7445_s1 + $0x280] sm:$0xff] }
  0x8d   : > { %4151 = vmatprep.subr.bf16.mxu0 %v7450_v3 }
  0x8f   : > { %989 = vmatmul.mubr.f32.gmra.mrb[30].mxu0 %v5657_v46 }
  0x90   : > { %5028 = vmatprep.mubr.msk.f32.mxu0 %vm343_vm0, %v5332_v51  ;;  %4153 = vmatpush1.bf16.msra.mxu0 %v4152_v47  ;;  %v5679_v51 = vld [vmem:[#allocation2 + $0xe0] sm:$0xff]  ;;  %v780_v47 = vld [vmem:[%s7445_s1 + $0x290] sm:$0xff] }
  0x91   : > { %4154 = vmatprep.subr.bf16.mxu0 %v7450_v3 }
  0x93   : > { %994 = vmatmul.mubr.f32.gmra.mrb[32].mxu0 %v5663_v48 }
  0x94   : > { %5029 = vmatprep.mubr.msk.f32.mxu0 %vm343_vm0, %v5344_v56  ;;  %v5684_v56 = vld [vmem:[#allocation2 + $0xf0] sm:$0xff] }
  0x97   : > { %999 = vmatmul.mubr.f32.gmra.mrb[34].mxu0 %v5669_v49 }
  0x98   : > { %5030 = vmatprep.mubr.msk.f32.mxu0 %vm343_vm0, %v5347_v57  ;;  %v5689_v57 = vld [vmem:[#allocation2 + $0xf8] sm:$0xff] }
  0x9b   : > { %1004 = vmatmul.mubr.f32.gmra.mrb[36].mxu0 %v5674_v50 }
  0x9c   : > { %5031 = vmatprep.mubr.msk.f32.mxu0 %vm343_vm0, %v5354_v61  ;;  %v5694_v61 = vld [vmem:[#allocation2 + $0x108] sm:$0xff] }
  0x9f   : > { %1009 = vmatmul.mubr.f32.gmra.mrb[38].mxu0 %v5679_v51 }
  0xa0   : > { %5032 = vmatprep.mubr.msk.f32.mxu0 %vm343_vm0, %v5357_v62  ;;  %v5699_v62 = vld [vmem:[#allocation2 + $0x110] sm:$0xff] }
  0xa3   : > { %1014 = vmatmul.mubr.f32.gmra.mrb[40].mxu0 %v5684_v56 }
  0xa4   : > { %5033 = vmatprep.mubr.msk.f32.mxu0 %vm343_vm0, %v5371_v4  ;;  %v5704_v4 = vld [vmem:[#allocation2 + $0x120] sm:$0xff] }
  0xa7   : > { %1019 = vmatmul.mubr.f32.gmra.mrb[42].mxu0 %v5689_v57 }
  0xa8   : > { %5034 = vmatprep.mubr.msk.f32.mxu0 %vm343_vm0, %v5376_v7  ;;  %v5709_v7 = vld [vmem:[#allocation2 + $0x128] sm:$0xff] }
  0xab   : > { %1024 = vmatmul.mubr.f32.gmra.mrb[44].mxu0 %v5694_v61 }
  0xac   : > { %5035 = vmatprep.mubr.msk.f32.mxu0 %vm343_vm0, %v5387_v12  ;;  %v5714_v12 = vld [vmem:[#allocation2 + $0x138] sm:$0xff] }
  0xaf   : > { %1029 = vmatmul.mubr.f32.gmra.mrb[46].mxu0 %v5699_v62 }
  0xb0   : > { %5036 = vmatprep.mubr.msk.f32.mxu0 %vm343_vm0, %v5393_v14  ;;  %v5719_v14 = vld [vmem:[#allocation2 + $0x140] sm:$0xff] }
  0xb3   : > { %1034 = vmatmul.mubr.f32.gmra.mrb[48].mxu0 %v5704_v4 }
  0xb4   : > { %5037 = vmatprep.mubr.msk.f32.mxu0 %vm343_vm0, %v5396_v15  ;;  %v5724_v15 = vld [vmem:[#allocation2 + $0x150] sm:$0xff] }
  0xb7   : > { %1039 = vmatmul.mubr.f32.gmra.mrb[50].mxu0 %v5709_v7 }
  0xb8   : > { %5038 = vmatprep.mubr.msk.f32.mxu0 %vm343_vm0, %v5399_v16  ;;  %v374_v16 = vsel %vm343_vm0, %v5727_v52, 0.0 }
  0xb9   : > { %407 = vst [vmem:[#allocation2 + $0x181] sm:$0xff] %v374_v16  ;;  %v781_v16 = vld [vmem:[%s7445_s1 + $0x298] sm:$0xff] }
  0xbb   : > { %1044 = vmatmul.mubr.f32.gmra.mrb[52].mxu0 %v5714_v12 }
  0xbc   : > { %5039 = vmatprep.mubr.msk.f32.mxu0 %vm343_vm0, %v5415_v28  ;;  %v5734_v28 = vld [vmem:[#allocation2 + $0x158] sm:$0xff] }
  0xbf   : > { %1049 = vmatmul.mubr.f32.gmra.mrb[54].mxu0 %v5719_v14 }
  0xc0   : > { %5040 = vmatprep.mubr.msk.f32.mxu0 %vm343_vm0, %v5427_v37  ;;  %v375_v37 = vsel %vm343_vm0, %v5737_v54, 0.0 }
  0xc1   : > { %408 = vst [vmem:[#allocation2 + $0x189] sm:$0xff] %v375_v37  ;;  %v5849_v37 = vld [vmem:[#allocation2 + $0x6a] sm:$0xff] }
  0xc3   : > { %1054 = vmatmul.mubr.f32.gmra.mrb[56].mxu0 %v5724_v15 }
  0xc4   : > { %5041 = vmatprep.mubr.msk.f32.mxu0 %vm343_vm0, %v5439_v44  ;;  %v5749_v44 = vld [vmem:[#allocation2 + $0x170] sm:$0xff] }
  0xc7   : > { %1059 = vmatmul.mubr.f32.gmra.mrb[58].mxu0 %v5734_v28 }
  0xc8   : > { %5042 = vmatprep.mubr.msk.f32.mxu0 %vm343_vm0, %v5451_v53  ;;  %v473_v53 = vld [vmem:[#allocation2 + $0x2] sm:$0xff] }
  0xcb   : > { %1064 = vmatmul.mubr.f32.gmra.mrb[60].mxu0 %v5744_v55 }
  0xcc   : > { %5043 = vmatprep.mubr.msk.f32.mxu0 %vm343_vm0, %v5463_v60  ;;  %v764_v60 = vld [vmem:[%s7445_s1 + $0x210] sm:$0xff] }
  0xcd   : > { %v4158_v2 = vpack.c.bf16 %v765_v0, %v764_v60  ;;  %v785_v60 = vld [vmem:[%s7445_s1 + $0x2b8] sm:$0xff]  ;;  %v5871_v0 = vld [vmem:[#allocation2 + $0x82] sm:$0xff] }
  0xcf   : > { %1069 = vmatmul.mubr.f32.gmra.mrb[62].mxu0 %v5749_v44 }
  0xd0   : > { %1138 = vmatprep.mubr.f32.mxu0 %v5498_v26  ;;  %v766_v26 = vld [vmem:[%s7445_s1 + $0x220] sm:$0xff] }
  0xd1   : > { %v4161_v9 = vpack.c.bf16 %v767_v5, %v766_v26  ;;  %v5882_v26 = vld [vmem:[#allocation2 + $0x92] sm:$0xff] }
  0xd2   : > { %v788_v5 = vld [vmem:[%s7445_s1 + $0x2d0] sm:$0xff] }
  0xd3   : > { %1139 = vmatmul.mubr.f32.vlgmr.msra.gmra.mrb[0].mxu0 %v473_v53  ;;  %v5860_v53 = vld [vmem:[#allocation2 + $0x7a] sm:$0xff] }
  0xd4   : > { %4156 = vmatpush1.bf16.msra.mxu0 %v4155_v63  ;;  %1143 = vmatprep.mubr.f32.mxu0 %v5510_v6  ;;  %v768_v6 = vld [vmem:[%s7445_s1 + $0x230] sm:$0xff] }
  0xd5   : > { %4157 = vmatprep.subr.bf16.mxu0 %v7450_v3  ;;  %v784_v63 = vld [vmem:[%s7445_s1 + $0x2b0] sm:$0xff] }
  0xd7   : > { %1144 = vmatmul.mubr.f32.gmra.mrb[2].mxu0 %v474_v1  ;;  %v786_v1 = vld [vmem:[%s7445_s1 + $0x2c0] sm:$0xff] }
  0xd8   : > { %1148 = vmatprep.mubr.f32.mxu0 %v5522_v19  ;;  %4159 = vmatpush1.bf16.msra.mxu0 %v4158_v2  ;;  %v4164_v19 = vpack.c.bf16 %v769_v10, %v768_v6  ;;  %v787_v2 = vld [vmem:[%s7445_s1 + $0x2c8] sm:$0xff]  ;;  %v5893_v6 = vld [vmem:[#allocation2 + $0x9a] sm:$0xff] }
  0xd9   : > { %4160 = vmatprep.subr.bf16.mxu0 %v7450_v3  ;;  %v790_v10 = vld [vmem:[%s7445_s1 + $0x2e0] sm:$0xff] }
  0xdb   : > { %1149 = vmatmul.mubr.f32.gmra.mrb[4].mxu0 %v5774_v8 }
  0xdc   : > { %1153 = vmatprep.mubr.f32.mxu0 %v5537_v20  ;;  %4162 = vmatpush1.bf16.msra.mxu0 %v4161_v9  ;;  %v4167_v20 = vpack.c.bf16 %v771_v18, %v770_v13  ;;  %v789_v9 = vld [vmem:[%s7445_s1 + $0x2d8] sm:$0xff]  ;;  %v5904_v13 = vld [vmem:[#allocation2 + $0xaa] sm:$0xff] }
  0xdd   : > { %4163 = vmatprep.subr.bf16.mxu0 %v7450_v3  ;;  %v792_v18 = vld [vmem:[%s7445_s1 + $0x2f0] sm:$0xff] }
  0xdf   : > { %1154 = vmatmul.mubr.f32.gmra.mrb[6].mxu0 %v5785_v11 }
  0xe0   : > { %1158 = vmatprep.mubr.f32.mxu0 %v5549_v23  ;;  %4165 = vmatpush1.bf16.msra.mxu0 %v4164_v19  ;;  %v4170_v23 = vpack.c.bf16 %v773_v22, %v772_v21  ;;  %v791_v19 = vld [vmem:[%s7445_s1 + $0x2e8] sm:$0xff]  ;;  %v5915_v21 = vld [vmem:[#allocation2 + $0xb2] sm:$0xff] }
  0xe1   : > { %4166 = vmatprep.subr.bf16.mxu0 %v7450_v3  ;;  %v5920_v22 = vld [vmem:[#allocation2 + $0xc2] sm:$0xff] }
  0xe3   : > { %1159 = vmatmul.mubr.f32.gmra.mrb[8].mxu0 %v5524_v41 }
  0xe4   : > { %1163 = vmatprep.mubr.f32.mxu0 %v5561_v27  ;;  %4168 = vmatpush1.bf16.msra.mxu0 %v4167_v20  ;;  %v4173_v27 = vpack.c.bf16 %v775_v29, %v774_v25  ;;  %v793_v20 = vld [vmem:[%s7445_s1 + $0x2f8] sm:$0xff] }
  0xe5   : > { %4169 = vmatprep.subr.bf16.mxu0 %v7450_v3  ;;  %v5937_v25 = vld [vmem:[#allocation2 + $0xf2] sm:$0xff] }
  0xe7   : > { %1164 = vmatmul.mubr.f32.gmra.mrb[10].mxu0 %v5805_v24 }
  0xe8   : > { %1168 = vmatprep.mubr.f32.mxu0 %v5573_v30  ;;  %4171 = vmatpush1.bf16.msra.mxu0 %v4170_v23  ;;  %v4176_v30 = vpack.c.bf16 %v777_v17, %v776_v33  ;;  %v5929_v23 = vld [vmem:[#allocation2 + $0xda] sm:$0xff] }
  0xe9   : > { %4172 = vmatprep.subr.bf16.mxu0 %v7450_v3  ;;  %v5973_v17 = vld [vmem:[#allocation2 + $0x13a] sm:$0xff] }
  0xeb   : > { %1169 = vmatmul.mubr.f32.gmra.mrb[12].mxu0 %v5816_v32 }
  0xec   : > { %1173 = vmatprep.mubr.f32.mxu0 %v5585_v31  ;;  %4174 = vmatpush1.bf16.msra.mxu0 %v4173_v27  ;;  %v4179_v31 = vpack.c.bf16 %v779_v40, %v778_v39  ;;  %v829_v27 = vld [vmem:[%s7445_s1 + $0x418] sm:$0xff]  ;;  %v5983_v40 = vld [vmem:[#allocation2 + $0x142] sm:$0xff] }
  0xed   : > { %4175 = vmatprep.subr.bf16.mxu0 %v7450_v3 }
  0xef   : > { %1174 = vmatmul.mubr.f32.gmra.mrb[14].mxu0 %v5827_v36 }
  0xf0   : > { %1178 = vmatprep.mubr.f32.mxu0 %v5597_v34  ;;  %4177 = vmatpush1.bf16.msra.mxu0 %v4176_v30  ;;  %v4182_v34 = vpack.c.bf16 %v781_v16, %v780_v47  ;;  %v831_v30 = vld [vmem:[%s7445_s1 + $0x428] sm:$0xff]  ;;  %v5993_v16 = vld [vmem:[#allocation2 + $0x152] sm:$0xff] }
  0xf1   : > { %4178 = vmatprep.subr.bf16.mxu0 %v7450_v3 }
  0xf3   : > { %1179 = vmatmul.mubr.f32.gmra.mrb[16].mxu0 %v5838_v43 }
  0xf4   : > { %1183 = vmatprep.mubr.f32.mxu0 %v5609_v35  ;;  %4180 = vmatpush1.bf16.msra.mxu0 %v4179_v31  ;;  %v4185_v35 = vpack.c.bf16 %v783_v59, %v782_v58  ;;  %v833_v31 = vld [vmem:[%s7445_s1 + $0x438] sm:$0xff] }
  0xf5   : > { %4181 = vmatprep.subr.bf16.mxu0 %v7450_v3  ;;  %v6003_v59 = vld [vmem:[#allocation2 + $0x15a] sm:$0xff] }
  0xf7   : > { %1184 = vmatmul.mubr.f32.gmra.mrb[18].mxu0 %v5849_v37 }
  0xf8   : > { %1188 = vmatprep.mubr.f32.mxu0 %v5621_v38  ;;  %4183 = vmatpush1.bf16.msra.mxu0 %v4182_v34  ;;  %v4188_v38 = vpack.c.bf16 %v785_v60, %v784_v63  ;;  %v835_v34 = vld [vmem:[%s7445_s1 + $0x448] sm:$0xff]  ;;  %v6011_v63 = vld [vmem:[#allocation2 + $0x180] sm:$0xff] }
  0xf9   : > { %4184 = vmatprep.subr.bf16.mxu0 %v7450_v3 }
  0xfb   : > { %1189 = vmatmul.mubr.f32.gmra.mrb[20].mxu0 %v5860_v53 }
  0xfc   : > { %1193 = vmatprep.mubr.f32.mxu0 %v5633_v42  ;;  %4186 = vmatpush1.bf16.msra.mxu0 %v4185_v35  ;;  %v4191_v42 = vpack.c.bf16 %v787_v2, %v786_v1  ;;  %v837_v35 = vld [vmem:[%s7445_s1 + $0x458] sm:$0xff]  ;;  %v839_v1 = vld [vmem:[%s7445_s1 + $0x468] sm:$0xff] }
  0xfd   : > { %4187 = vmatprep.subr.bf16.mxu0 %v7450_v3  ;;  %v6023_v2 = vld [vmem:[#allocation2 + $0x188] sm:$0xff] }
  0xff   : > { %1194 = vmatmul.mubr.f32.gmra.mrb[22].mxu0 %v5871_v0 }
 0x100   : > { %1198 = vmatprep.mubr.f32.mxu0 %v5645_v45  ;;  %4189 = vmatpush1.bf16.msra.mxu0 %v4188_v38  ;;  %v4194_v45 = vpack.c.bf16 %v789_v9, %v788_v5  ;;  %v838_v38 = vld [vmem:[%s7445_s1 + $0x460] sm:$0xff]  ;;  %v6027_v5 = vld [vmem:[#allocation2 + $0x172] sm:$0xff] }
 0x101   : > { %4190 = vmatprep.subr.bf16.mxu0 %v7450_v3  ;;  %v840_v9 = vld [vmem:[%s7445_s1 + $0x470] sm:$0xff] }
 0x103   : > { %1199 = vmatmul.mubr.f32.gmra.mrb[24].mxu0 %v5882_v26 }
 0x104   : > { %1203 = vmatprep.mubr.f32.mxu0 %v5657_v46  ;;  %4192 = vmatpush1.bf16.msra.mxu0 %v4191_v42  ;;  %v4197_v46 = vpack.c.bf16 %v791_v19, %v790_v10  ;;  %v4274_v42 = vpack.c.bf16 %v839_v1, %v838_v38  ;;  %v794_v10 = vld [vmem:[%s7445_s1 + $0x300] sm:$0xff]  ;;  %v795_v19 = vld [vmem:[%s7445_s1 + $0x308] sm:$0xff] }
 0x105   : > { %4193 = vmatprep.subr.bf16.mxu0 %v7450_v3  ;;  %v4986_v38 = vld [vmem:[#allocation2 + $0x61] sm:$0xff] }
 0x106   : > { %v810_v1 = vld [vmem:[%s7445_s1 + $0x380] sm:$0xff] }
 0x107   : > { %1204 = vmatmul.mubr.f32.gmra.mrb[26].mxu0 %v5893_v6 }
 0x108   : > { %1208 = vmatprep.mubr.f32.mxu0 %v5663_v48  ;;  %4195 = vmatpush1.bf16.msra.mxu0 %v4194_v45  ;;  %v4200_v48 = vpack.c.bf16 %v793_v20, %v792_v18  ;;  %v841_v45 = vld [vmem:[%s7445_s1 + $0x478] sm:$0xff]  ;;  %v4203_v18 = vpack.c.bf16 %v795_v19, %v794_v10  ;;  %v796_v20 = vld [vmem:[%s7445_s1 + $0x310] sm:$0xff] }
 0x109   : > { %4196 = vmatprep.subr.bf16.mxu0 %v7450_v3  ;;  %v813_v10 = vld [vmem:[%s7445_s1 + $0x398] sm:$0xff] }
 0x10a   : > { %v4988_v19 = vld [vmem:[#allocation2 + $0x79] sm:$0xff] }
 0x10b   : > { %1209 = vmatmul.mubr.f32.gmra.mrb[28].mxu0 %v5904_v13 }
 0x10c   : > { %1213 = vmatprep.mubr.f32.mxu0 %v5669_v49  ;;  %4198 = vmatpush1.bf16.msra.mxu0 %v4197_v46  ;;  %v5925_v49 = vld [vmem:[#allocation2 + $0xca] sm:$0xff]  ;;  %v4278_v46 = vpack.c.bf16 %v841_v45, %v840_v9 }
 0x10d   : > { %4199 = vmatprep.subr.bf16.mxu0 %v7450_v3  ;;  %v4987_v9 = vld [vmem:[#allocation2 + $0x69] sm:$0xff] }
 0x10e   : > { %v812_v45 = vld [vmem:[%s7445_s1 + $0x390] sm:$0xff] }
 0x10f   : > { %1214 = vmatmul.mubr.f32.gmra.mrb[30].mxu0 %v5915_v21 }
 0x110   : > { %1218 = vmatprep.mubr.f32.mxu0 %v5674_v50  ;;  %4201 = vmatpush1.bf16.msra.mxu0 %v4200_v48  ;;  %v5933_v50 = vld [vmem:[#allocation2 + $0xe2] sm:$0xff]  ;;  %v797_v48 = vld [vmem:[%s7445_s1 + $0x318] sm:$0xff] }
 0x111   : > { %4202 = vmatprep.subr.bf16.mxu0 %v7450_v3 }
 0x113   : > { %1219 = vmatmul.mubr.f32.gmra.mrb[32].mxu0 %v5920_v22 }
 0x114   : > { %1223 = vmatprep.mubr.f32.mxu0 %v5679_v51  ;;  %v5941_v51 = vld [vmem:[#allocation2 + $0xfa] sm:$0xff] }
 0x117   : > { %1224 = vmatmul.mubr.f32.gmra.mrb[34].mxu0 %v5925_v49 }
 0x118   : > { %1228 = vmatprep.mubr.f32.mxu0 %v5684_v56  ;;  %v5945_v56 = vld [vmem:[#allocation2 + $0x10a] sm:$0xff] }
 0x11b   : > { %1229 = vmatmul.mubr.f32.gmra.mrb[36].mxu0 %v5929_v23 }
 0x11c   : > { %1233 = vmatprep.mubr.f32.mxu0 %v5689_v57  ;;  %v5949_v57 = vld [vmem:[#allocation2 + $0x112] sm:$0xff] }
 0x11f   : > { %1234 = vmatmul.mubr.f32.gmra.mrb[38].mxu0 %v5933_v50 }
 0x120   : > { %1238 = vmatprep.mubr.f32.mxu0 %v5694_v61  ;;  %v5953_v61 = vld [vmem:[#allocation2 + $0x122] sm:$0xff] }
 0x123   : > { %1239 = vmatmul.mubr.f32.gmra.mrb[40].mxu0 %v5937_v25 }
 0x124   : > { %1243 = vmatprep.mubr.f32.mxu0 %v5699_v62  ;;  %v826_v62 = vld [vmem:[%s7445_s1 + $0x400] sm:$0xff] }
 0x127   : > { %1244 = vmatmul.mubr.f32.gmra.mrb[42].mxu0 %v5941_v51 }
 0x128   : > { %1248 = vmatprep.mubr.f32.mxu0 %v5704_v4  ;;  %v827_v4 = vld [vmem:[%s7445_s1 + $0x408] sm:$0xff] }
 0x129   : > { %v4250_v29 = vpack.c.bf16 %v827_v4, %v826_v62  ;;  %v4980_v62 = vld [vmem:[#allocation2 + $0x19] sm:$0xff] }
 0x12a   : > { %v798_v4 = vld [vmem:[%s7445_s1 + $0x320] sm:$0xff] }
 0x12b   : > { %1249 = vmatmul.mubr.f32.gmra.mrb[44].mxu0 %v5945_v56  ;;  %4251 = vmatprep.subr.bf16.mxu1 %v4250_v29 }
 0x12c   : > { %1253 = vmatprep.mubr.f32.mxu0 %v5709_v7  ;;  %v5963_v7 = vld [vmem:[#allocation2 + $0x12a] sm:$0xff]  ;;  %4253 = vmatpush3.bf16.msra.mxu1 %v4250_v29 }
 0x12d   : > { %v799_v29 = vld [vmem:[%s7445_s1 + $0x328] sm:$0xff] }
 0x12f   : > { %1254 = vmatmul.mubr.f32.gmra.mrb[46].mxu0 %v5949_v57 }
 0x130   : > { %1258 = vmatprep.mubr.f32.mxu0 %v5714_v12  ;;  %v828_v12 = vld [vmem:[%s7445_s1 + $0x410] sm:$0xff] }
 0x131   : > { %v4254_v33 = vpack.c.bf16 %v829_v27, %v828_v12  ;;  %v4981_v12 = vld [vmem:[#allocation2 + $0x21] sm:$0xff]  ;;  %v800_v27 = vld [vmem:[%s7445_s1 + $0x330] sm:$0xff] }
 0x133   : > { %1259 = vmatmul.mubr.f32.gmra.mrb[48].mxu0 %v5953_v61  ;;  %4255 = vmatprep.subr.bf16.mxu1 %v4254_v33 }
 0x134   : > { %1263 = vmatprep.mubr.f32.mxu0 %v5719_v14  ;;  %4257 = vmatpush3.bf16.msra.mxu1 %v4254_v33  ;;  %v830_v14 = vld [vmem:[%s7445_s1 + $0x420] sm:$0xff]  ;;  %v801_v33 = vld [vmem:[%s7445_s1 + $0x338] sm:$0xff] }
 0x135   : > { %v4258_v39 = vpack.c.bf16 %v831_v30, %v830_v14  ;;  %v4982_v14 = vld [vmem:[#allocation2 + $0x31] sm:$0xff]  ;;  %v802_v30 = vld [vmem:[%s7445_s1 + $0x340] sm:$0xff] }
 0x137   : > { %1264 = vmatmul.mubr.f32.gmra.mrb[50].mxu0 %v5963_v7  ;;  %4259 = vmatprep.subr.bf16.mxu1 %v4258_v39 }
 0x138   : > { %1268 = vmatprep.mubr.f32.mxu0 %v5724_v15  ;;  %4261 = vmatpush3.bf16.msra.mxu1 %v4258_v39  ;;  %v832_v15 = vld [vmem:[%s7445_s1 + $0x430] sm:$0xff]  ;;  %v803_v39 = vld [vmem:[%s7445_s1 + $0x348] sm:$0xff] }
 0x139   : > { %v4262_v47 = vpack.c.bf16 %v833_v31, %v832_v15  ;;  %v4983_v15 = vld [vmem:[#allocation2 + $0x39] sm:$0xff]  ;;  %v804_v31 = vld [vmem:[%s7445_s1 + $0x350] sm:$0xff] }
 0x13b   : > { %1269 = vmatmul.mubr.f32.gmra.mrb[52].mxu0 %v5973_v17  ;;  %4263 = vmatprep.subr.bf16.mxu1 %v4262_v47 }
 0x13c   : > { %1273 = vmatprep.mubr.f32.mxu0 %v5734_v28  ;;  %4265 = vmatpush3.bf16.msra.mxu1 %v4262_v47  ;;  %v834_v28 = vld [vmem:[%s7445_s1 + $0x440] sm:$0xff]  ;;  %v805_v47 = vld [vmem:[%s7445_s1 + $0x358] sm:$0xff] }
 0x13d   : > { %v4266_v58 = vpack.c.bf16 %v835_v34, %v834_v28  ;;  %v4984_v28 = vld [vmem:[#allocation2 + $0x49] sm:$0xff]  ;;  %v806_v34 = vld [vmem:[%s7445_s1 + $0x360] sm:$0xff] }
 0x13f   : > { %1274 = vmatmul.mubr.f32.gmra.mrb[54].mxu0 %v5983_v40  ;;  %4267 = vmatprep.subr.bf16.mxu1 %v4266_v58 }
 0x140   : > { %1278 = vmatprep.mubr.f32.mxu0 %v5744_v55  ;;  %4269 = vmatpush3.bf16.msra.mxu1 %v4266_v58  ;;  %v836_v55 = vld [vmem:[%s7445_s1 + $0x450] sm:$0xff]  ;;  %v807_v58 = vld [vmem:[%s7445_s1 + $0x368] sm:$0xff] }
 0x141   : > { %v4270_v60 = vpack.c.bf16 %v837_v35, %v836_v55  ;;  %v4985_v55 = vld [vmem:[#allocation2 + $0x51] sm:$0xff] }
 0x142   : > { %v808_v35 = vld [vmem:[%s7445_s1 + $0x370] sm:$0xff] }
 0x143   : > { %1279 = vmatmul.mubr.f32.gmra.mrb[56].mxu0 %v5993_v16  ;;  %4271 = vmatprep.subr.bf16.mxu1 %v4270_v60 }
 0x144   : > { %1283 = vmatprep.mubr.f32.mxu0 %v5749_v44  ;;  %v6015_v44 = vld [vmem:[#allocation2 + $0x16a] sm:$0xff]  ;;  %4273 = vmatpush3.bf16.msra.mxu1 %v4270_v60  ;;  %v809_v60 = vld [vmem:[%s7445_s1 + $0x378] sm:$0xff] }
 0x145   : > { %4275 = vmatprep.subr.bf16.mxu1 %v4274_v42 }
 0x147   : > { %1284 = vmatmul.mubr.f32.gmra.mrb[58].mxu0 %v6003_v59 }
 0x148   : > { %1288 = vmatprep.mubr.f32.mxu0 %v6011_v63  ;;  %4277 = vmatpush3.bf16.msra.mxu1 %v4274_v42  ;;  %v811_v42 = vld [vmem:[%s7445_s1 + $0x388] sm:$0xff] }
 0x149   : > { %4279 = vmatprep.subr.bf16.mxu1 %v4278_v46 }
 0x14b   : > { %1289 = vmatmul.mubr.f32.gmra.mrb[60].mxu0 %v6015_v44 }
 0x14c   : > { %1293 = vmatprep.mubr.f32.mxu0 %v6023_v2  ;;  %4281 = vmatpush3.bf16.msra.mxu1 %v4278_v46  ;;  %v814_v46 = vld [vmem:[%s7445_s1 + $0x3a0] sm:$0xff] }
 0x14d   : > { %4282 = vmatprep.subr.bf16.mxu1 %v7450_v3 }
 0x14f   : > { %1294 = vmatmul.mubr.f32.gmra.mrb[62].mxu0 %v6027_v5  ;;  %3931 = vmatmul.mubr.f32.vlgmr.msra.gmra.mrb[0].mxu1 %v5805_v24 }
 0x150   : > { %1363 = vmatprep.mubr.f32.mxu0 %v5774_v8  ;;  %v4206_v8 = vpack.c.bf16 %v797_v48, %v796_v20  ;;  %3933 = vmatprep.mubr.f32.mxu1 %v5816_v32  ;;  %v4989_v20 = vld [vmem:[#allocation2 + $0x81] sm:$0xff]  ;;  %v816_v48 = vld [vmem:[%s7445_s1 + $0x3b0] sm:$0xff] }
 0x153   : > { %1364 = vmatmul.mubr.f32.vlgmr.msra.gmra.mrb[0].mxu0 %v4980_v62  ;;  %3934 = vmatmul.mubr.f32.gmra.mrb[2].mxu1 %v5827_v36  ;;  %v817_v62 = vld [vmem:[%s7445_s1 + $0x3b8] sm:$0xff] }
 0x154   : > { %4204 = vmatpush1.bf16.msra.mxu0 %v4203_v18  ;;  %1368 = vmatprep.mubr.f32.mxu0 %v5785_v11  ;;  %v4209_v11 = vpack.c.bf16 %v799_v29, %v798_v4  ;;  %v815_v18 = vld [vmem:[%s7445_s1 + $0x3a8] sm:$0xff]  ;;  %v818_v4 = vld [vmem:[%s7445_s1 + $0x3c0] sm:$0xff] }
 0x155   : > { %4205 = vmatprep.subr.bf16.mxu0 %v7450_v3  ;;  %3936 = vmatprep.mubr.f32.mxu1 %v5838_v43  ;;  %v819_v29 = vld [vmem:[%s7445_s1 + $0x3c8] sm:$0xff] }
 0x157   : > { %1369 = vmatmul.mubr.f32.gmra.mrb[2].mxu0 %v4981_v12  ;;  %3937 = vmatmul.mubr.f32.gmra.mrb[4].mxu1 %v5849_v37  ;;  %v4991_v12 = vld [vmem:[#allocation2 + $0x99] sm:$0xff] }
 0x158   : > { %1373 = vmatprep.mubr.f32.mxu0 %v5524_v41  ;;  %4207 = vmatpush1.bf16.msra.mxu0 %v4206_v8  ;;  %v4212_v41 = vpack.c.bf16 %v801_v33, %v800_v27  ;;  %v4990_v8 = vld [vmem:[#allocation2 + $0x91] sm:$0xff]  ;;  %v4992_v33 = vld [vmem:[#allocation2 + $0xa9] sm:$0xff] }
 0x159   : > { %4208 = vmatprep.subr.bf16.mxu0 %v7450_v3  ;;  %3939 = vmatprep.mubr.f32.mxu1 %v5860_v53  ;;  %v821_v27 = vld [vmem:[%s7445_s1 + $0x3d8] sm:$0xff] }
 0x15b   : > { %1374 = vmatmul.mubr.f32.gmra.mrb[4].mxu0 %v4982_v14  ;;  %3940 = vmatmul.mubr.f32.gmra.mrb[6].mxu1 %v5871_v0  ;;  %v822_v14 = vld [vmem:[%s7445_s1 + $0x3e0] sm:$0xff] }
 0x15c   : > { %1378 = vmatprep.mubr.f32.mxu0 %v5805_v24  ;;  %4210 = vmatpush1.bf16.msra.mxu0 %v4209_v11  ;;  %v4215_v24 = vpack.c.bf16 %v803_v39, %v802_v30  ;;  %v820_v11 = vld [vmem:[%s7445_s1 + $0x3d0] sm:$0xff]  ;;  %v599_v39 = vld [vmem:[#allocation2 + $0x182] sm:$0xff] }
 0x15d   : > { %4211 = vmatprep.subr.bf16.mxu0 %v7450_v3  ;;  %3942 = vmatprep.mubr.f32.mxu1 %v5882_v26  ;;  %v4993_v30 = vld [vmem:[#allocation2 + $0xb1] sm:$0xff] }
 0x15f   : > { %1379 = vmatmul.mubr.f32.gmra.mrb[6].mxu0 %v4983_v15  ;;  %3943 = vmatmul.mubr.f32.gmra.mrb[8].mxu1 %v5893_v6  ;;  %v824_v15 = vld [vmem:[%s7445_s1 + $0x3f0] sm:$0xff] }
 0x160   : > { %1383 = vmatprep.mubr.f32.mxu0 %v5816_v32  ;;  %4213 = vmatpush1.bf16.msra.mxu0 %v4212_v41  ;;  %v4218_v32 = vpack.c.bf16 %v805_v47, %v804_v31  ;;  %v823_v41 = vld [vmem:[%s7445_s1 + $0x3e8] sm:$0xff] }
 0x161   : > { %4214 = vmatprep.subr.bf16.mxu0 %v7450_v3  ;;  %3945 = vmatprep.mubr.f32.mxu1 %v5904_v13  ;;  %v600_v31 = vld [vmem:[#allocation2 + $0x18a] sm:$0xff]  ;;  %v4994_v47 = vld [vmem:[#allocation2 + $0xc1] sm:$0xff] }
 0x163   : > { %1384 = vmatmul.mubr.f32.gmra.mrb[8].mxu0 %v4984_v28  ;;  %3946 = vmatmul.mubr.f32.gmra.mrb[10].mxu1 %v5915_v21  ;;  %v4995_v28 = vld [vmem:[#allocation2 + $0xc9] sm:$0xff] }
 0x164   : > { %1388 = vmatprep.mubr.f32.mxu0 %v5827_v36  ;;  %4216 = vmatpush1.bf16.msra.mxu0 %v4215_v24  ;;  %v4221_v36 = vpack.c.bf16 %v807_v58, %v806_v34  ;;  %v825_v24 = vld [vmem:[%s7445_s1 + $0x3f8] sm:$0xff]  ;;  %v4997_v34 = vld [vmem:[#allocation2 + $0xe1] sm:$0xff] }
 0x165   : > { %4217 = vmatprep.subr.bf16.mxu0 %v7450_v3  ;;  %3948 = vmatprep.mubr.f32.mxu1 %v5920_v22  ;;  %v4998_v58 = vld [vmem:[#allocation2 + $0xf1] sm:$0xff] }
 0x167   : > { %1389 = vmatmul.mubr.f32.gmra.mrb[10].mxu0 %v4985_v55  ;;  %3949 = vmatmul.mubr.f32.gmra.mrb[12].mxu1 %v5925_v49  ;;  %v5000_v55 = vld [vmem:[#allocation2 + $0x109] sm:$0xff] }
 0x168   : > { %1393 = vmatprep.mubr.f32.mxu0 %v5838_v43  ;;  %4219 = vmatpush1.bf16.msra.mxu0 %v4218_v32  ;;  %v4224_v43 = vpack.c.bf16 %v809_v60, %v808_v35  ;;  %v4996_v32 = vld [vmem:[#allocation2 + $0xd9] sm:$0xff] }
 0x169   : > { %4220 = vmatprep.subr.bf16.mxu0 %v7450_v3  ;;  %3951 = vmatprep.mubr.f32.mxu1 %v5929_v23  ;;  %v2331_v60 = vld [vmem:[%s7447_s3 + $0x18] sm:$0xff] }
 0x16b   : > { %1394 = vmatmul.mubr.f32.gmra.mrb[12].mxu0 %v4986_v38  ;;  %3952 = vmatmul.mubr.f32.gmra.mrb[14].mxu1 %v5933_v50 }
 0x16c   : > { %1398 = vmatprep.mubr.f32.mxu0 %v5849_v37  ;;  %4222 = vmatpush1.bf16.msra.mxu0 %v4221_v36  ;;  %v4227_v37 = vpack.c.bf16 %v811_v42, %v810_v1  ;;  %v602_v36 = vld [vmem:[#allocation2 + $0x30] sm:$0xff]  ;;  %v2333_v1 = vld [vmem:[%s7447_s3 + $0x28] sm:$0xff]  ;;  %v603_v42 = vld [vmem:[#allocation2 + $0x38] sm:$0xff] }
 0x16d   : > { %4223 = vmatprep.subr.bf16.mxu0 %v7450_v3  ;;  %3954 = vmatprep.mubr.f32.mxu1 %v5937_v25 }
 0x16f   : > { %1399 = vmatmul.mubr.f32.gmra.mrb[14].mxu0 %v4987_v9  ;;  %3955 = vmatmul.mubr.f32.gmra.mrb[16].mxu1 %v5941_v51  ;;  %v636_v9 = vld [vmem:[#allocation2 + $0x49] sm:$0xff] }
 0x170   : > { %1403 = vmatprep.mubr.f32.mxu0 %v5860_v53  ;;  %4225 = vmatpush1.bf16.msra.mxu0 %v4224_v43  ;;  %v4230_v53 = vpack.c.bf16 %v813_v10, %v812_v45  ;;  %v2332_v43 = vld [vmem:[%s7447_s3 + $0x20] sm:$0xff]  ;;  %v2334_v45 = vld [vmem:[%s7447_s3 + $0x30] sm:$0xff]  ;;  %v2335_v10 = vld [vmem:[%s7447_s3 + $0x38] sm:$0xff] }
 0x171   : > { %4226 = vmatprep.subr.bf16.mxu0 %v7450_v3  ;;  %3957 = vmatprep.mubr.f32.mxu1 %v5945_v56 }
 0x173   : > { %1404 = vmatmul.mubr.f32.gmra.mrb[16].mxu0 %v4988_v19  ;;  %3958 = vmatmul.mubr.f32.gmra.mrb[18].mxu1 %v5949_v57  ;;  %v2456_v19 = vld [vmem:[%s7447_s3 + $0x400] sm:$0xff] }
 0x174   : > { %1408 = vmatprep.mubr.f32.mxu0 %v5871_v0  ;;  %4228 = vmatpush1.bf16.msra.mxu0 %v4227_v37  ;;  %v4233_v0 = vpack.c.bf16 %v815_v18, %v814_v46  ;;  %v4289_v37 = vpack.c.bf16 %v2333_v1, %v2332_v43  ;;  %v2457_v46 = vld [vmem:[%s7447_s3 + $0x408] sm:$0xff]  ;;  %v637_v18 = vld [vmem:[#allocation2 + $0x51] sm:$0xff] }
 0x175   : > { %4229 = vmatprep.subr.bf16.mxu0 %v7450_v3  ;;  %3960 = vmatprep.mubr.f32.mxu1 %v5953_v61  ;;  %v647_v43 = vld [vmem:[#allocation2 + $0xc9] sm:$0xff] }
 0x177   : > { %1409 = vmatmul.mubr.f32.gmra.mrb[18].mxu0 %v4989_v20  ;;  %3961 = vmatmul.mubr.f32.gmra.mrb[20].mxu1 %v5963_v7  ;;  %v6241_v20 = vpack.c.bf16 %v2457_v46, %v2456_v19  ;;  %v650_v19 = vld [vmem:[#allocation2 + $0xf1] sm:$0xff]  ;;  %v651_v46 = vld [vmem:[#allocation2 + $0xf9] sm:$0xff] }
 0x178   : > { %1413 = vmatprep.mubr.f32.mxu0 %v5882_v26  ;;  %4231 = vmatpush1.bf16.msra.mxu0 %v4230_v53  ;;  %v4236_v26 = vpack.c.bf16 %v817_v62, %v816_v48  ;;  %v604_v53 = vld [vmem:[#allocation2 + $0x48] sm:$0xff]  ;;  %v2336_v48 = vld [vmem:[%s7447_s3 + $0x40] sm:$0xff] }
 0x179   : > { %4232 = vmatprep.subr.bf16.mxu0 %v7450_v3  ;;  %3963 = vmatprep.mubr.f32.mxu1 %v5973_v17  ;;  %7480 = vst [vmem:[#allocation4_spill] sm:$0xff] %v6241_v20  ;;  %v2337_v62 = vld [vmem:[%s7447_s3 + $0x48] sm:$0xff] }
 0x17b   : > { %1414 = vmatmul.mubr.f32.gmra.mrb[20].mxu0 %v4990_v8  ;;  %3964 = vmatmul.mubr.f32.gmra.mrb[22].mxu1 %v5983_v40  ;;  %v605_v8 = vld [vmem:[#allocation2 + $0x50] sm:$0xff] }
 0x17c   : > { %1418 = vmatprep.mubr.f32.mxu0 %v5893_v6  ;;  %4234 = vmatpush1.bf16.msra.mxu0 %v4233_v0  ;;  %v4239_v6 = vpack.c.bf16 %v819_v29, %v818_v4  ;;  %v4292_v0 = vpack.c.bf16 %v2335_v10, %v2334_v45  ;;  %v4295_v4 = vpack.c.bf16 %v2337_v62, %v2336_v48  ;;  %v2338_v29 = vld [vmem:[%s7447_s3 + $0x50] sm:$0xff]  ;;  %v649_v45 = vld [vmem:[#allocation2 + $0xe1] sm:$0xff] }
 0x17d   : > { %4235 = vmatprep.subr.bf16.mxu0 %v7450_v3  ;;  %3966 = vmatprep.mubr.f32.mxu1 %v5993_v16  ;;  %v617_v10 = vld [vmem:[#allocation2 + $0xe0] sm:$0xff]  ;;  %v620_v48 = vld [vmem:[#allocation2 + $0x108] sm:$0xff]  ;;  %v653_v62 = vld [vmem:[#allocation2 + $0x111] sm:$0xff] }
 0x17f   : > { %1419 = vmatmul.mubr.f32.gmra.mrb[22].mxu0 %v4991_v12  ;;  %3967 = vmatmul.mubr.f32.gmra.mrb[24].mxu1 %v6003_v59  ;;  %v2339_v12 = vld [vmem:[%s7447_s3 + $0x58] sm:$0xff] }
 0x180   : > { %1423 = vmatprep.mubr.f32.mxu0 %v5904_v13  ;;  %4237 = vmatpush1.bf16.msra.mxu0 %v4236_v26  ;;  %v4242_v13 = vpack.c.bf16 %v821_v27, %v820_v11  ;;  %v638_v26 = vld [vmem:[#allocation2 + $0x61] sm:$0xff]  ;;  %v639_v11 = vld [vmem:[#allocation2 + $0x69] sm:$0xff]  ;;  %v4298_v27 = vpack.c.bf16 %v2339_v12, %v2338_v29 }
 0x181   : > { %4238 = vmatprep.subr.bf16.mxu0 %v7450_v3  ;;  %3969 = vmatprep.mubr.f32.mxu1 %v6015_v44  ;;  %v2357_v29 = vld [vmem:[%s7447_s3 + $0xe8] sm:$0xff] }
 0x183   : > { %1424 = vmatmul.mubr.f32.gmra.mrb[24].mxu0 %v4992_v33  ;;  %3970 = vmatmul.mubr.f32.gmra.mrb[26].mxu1 %v6027_v5  ;;  %v2340_v33 = vld [vmem:[%s7447_s3 + $0x60] sm:$0xff] }
 0x184   : > { %1428 = vmatprep.mubr.f32.mxu0 %v5915_v21  ;;  %4240 = vmatpush1.bf16.msra.mxu0 %v4239_v6  ;;  %v4245_v21 = vpack.c.bf16 %v823_v41, %v822_v14  ;;  %v606_v6 = vld [vmem:[#allocation2 + $0x60] sm:$0xff]  ;;  %v607_v14 = vld [vmem:[#allocation2 + $0x68] sm:$0xff] }
 0x185   : > { %4241 = vmatprep.subr.bf16.mxu0 %v7450_v3  ;;  %3972 = vmatprep.mubr.f32.mxu1 %v599_v39  ;;  %v640_v41 = vld [vmem:[#allocation2 + $0x79] sm:$0xff] }
 0x187   : > { %1429 = vmatmul.mubr.f32.gmra.mrb[26].mxu0 %v4993_v30  ;;  %3973 = vmatmul.mubr.f32.gmra.mrb[28].mxu1 %v600_v31 }
 0x188   : > { %1433 = vmatprep.mubr.f32.mxu0 %v5920_v22  ;;  %4243 = vmatpush1.bf16.msra.mxu0 %v4242_v13  ;;  %v4248_v22 = vpack.c.bf16 %v825_v24, %v824_v15  ;;  %v2341_v13 = vld [vmem:[%s7447_s3 + $0x68] sm:$0xff]  ;;  %v608_v15 = vld [vmem:[#allocation2 + $0x78] sm:$0xff] }
 0x189   : > { %4244 = vmatprep.subr.bf16.mxu0 %v7450_v3  ;;  %v4301_v30 = vpack.c.bf16 %v2341_v13, %v2340_v33  ;;  %v641_v24 = vld [vmem:[#allocation2 + $0x81] sm:$0xff]  ;;  %v2359_v33 = vld [vmem:[%s7447_s3 + $0xf8] sm:$0xff]  ;;  %v2458_v13 = vld [vmem:[%s7447_s3 + $0x410] sm:$0xff] }
 0x18b   : > { %1434 = vmatmul.mubr.f32.gmra.mrb[28].mxu0 %v4994_v47  ;;  %v2344_v47 = vld [vmem:[%s7447_s3 + $0x80] sm:$0xff] }
 0x18c   : > { %1438 = vmatprep.mubr.f32.mxu0 %v5925_v49  ;;  %4246 = vmatpush1.bf16.msra.mxu0 %v4245_v21  ;;  %v4999_v49 = vld [vmem:[#allocation2 + $0xf9] sm:$0xff]  ;;  %v2342_v21 = vld [vmem:[%s7447_s3 + $0x70] sm:$0xff] }
 0x18d   : > { %4247 = vmatprep.subr.bf16.mxu0 %v7450_v3 }
 0x18f   : > { %1439 = vmatmul.mubr.f32.gmra.mrb[30].mxu0 %v4995_v28  ;;  %v609_v28 = vld [vmem:[#allocation2 + $0x80] sm:$0xff] }
 0x190   : > { %1443 = vmatprep.mubr.f32.mxu0 %v5929_v23  ;;  %4249 = vmatpush1.bf16.msra.mxu0 %v4248_v22  ;;  %v5001_v23 = vld [vmem:[#allocation2 + $0x111] sm:$0xff]  ;;  %v2345_v22 = vld [vmem:[%s7447_s3 + $0x88] sm:$0xff] }
 0x191   : > { %4475 = vmatprep.subr.bf16.mxu0 %v6241_v20 }
 0x193   : > { %1444 = vmatmul.mubr.f32.gmra.mrb[32].mxu0 %v4996_v32  ;;  %v642_v32 = vld [vmem:[#allocation2 + $0x91] sm:$0xff] }
 0x194   : > { %1448 = vmatprep.mubr.f32.mxu0 %v5933_v50  ;;  %v5002_v50 = vld [vmem:[#allocation2 + $0x121] sm:$0xff] }
 0x197   : > { %1449 = vmatmul.mubr.f32.gmra.mrb[34].mxu0 %v4997_v34  ;;  %v4307_v34 = vpack.c.bf16 %v2345_v22, %v2344_v47  ;;  %v2460_v47 = vld [vmem:[%s7447_s3 + $0x420] sm:$0xff]  ;;  %v2461_v22 = vld [vmem:[%s7447_s3 + $0x428] sm:$0xff] }
 0x198   : > { %1453 = vmatprep.mubr.f32.mxu0 %v5937_v25  ;;  %v5003_v25 = vld [vmem:[#allocation2 + $0x129] sm:$0xff] }
 0x19b   : > { %1454 = vmatmul.mubr.f32.gmra.mrb[36].mxu0 %v4998_v58  ;;  %v2346_v58 = vld [vmem:[%s7447_s3 + $0x90] sm:$0xff] }
 0x19c   : > { %1458 = vmatprep.mubr.f32.mxu0 %v5941_v51  ;;  %v5004_v51 = vld [vmem:[#allocation2 + $0x139] sm:$0xff] }
 0x19f   : > { %1459 = vmatmul.mubr.f32.gmra.mrb[38].mxu0 %v4999_v49  ;;  %v2347_v49 = vld [vmem:[%s7447_s3 + $0x98] sm:$0xff] }
 0x1a0   : > { %1463 = vmatprep.mubr.f32.mxu0 %v5945_v56  ;;  %v5005_v56 = vld [vmem:[#allocation2 + $0x141] sm:$0xff] }
 0x1a3   : > { %1464 = vmatmul.mubr.f32.gmra.mrb[40].mxu0 %v5000_v55  ;;  %v610_v55 = vld [vmem:[#allocation2 + $0x90] sm:$0xff] }
 0x1a4   : > { %1468 = vmatprep.mubr.f32.mxu0 %v5949_v57  ;;  %v5006_v57 = vld [vmem:[#allocation2 + $0x151] sm:$0xff] }
 0x1a7   : > { %1469 = vmatmul.mubr.f32.gmra.mrb[42].mxu0 %v5001_v23  ;;  %v643_v23 = vld [vmem:[#allocation2 + $0x99] sm:$0xff] }
 0x1a8   : > { %1473 = vmatprep.mubr.f32.mxu0 %v5953_v61  ;;  %v5007_v61 = vld [vmem:[#allocation2 + $0x159] sm:$0xff] }
 0x1ab   : > { %1474 = vmatmul.mubr.f32.gmra.mrb[44].mxu0 %v5002_v50  ;;  %v4310_v50 = vpack.c.bf16 %v2347_v49, %v2346_v58  ;;  %v657_v58 = vld [vmem:[#allocation2 + $0x141] sm:$0xff]  ;;  %v2072_v49 = vld [vmem:[#allocation3 + $0x9] sm:$0xff] }
 0x1ac   : > { %1478 = vmatprep.mubr.f32.mxu0 %v5963_v7  ;;  %v5008_v7 = vld [vmem:[#allocation2 + $0x169] sm:$0xff] }
 0x1af   : > { %1479 = vmatmul.mubr.f32.gmra.mrb[46].mxu0 %v5003_v25  ;;  %v2348_v25 = vld [vmem:[%s7447_s3 + $0xa0] sm:$0xff] }
 0x1b0   : > { %1483 = vmatprep.mubr.f32.mxu0 %v5973_v17  ;;  %v5009_v17 = vld [vmem:[#allocation2 + $0x171] sm:$0xff] }
 0x1b3   : > { %1484 = vmatmul.mubr.f32.gmra.mrb[48].mxu0 %v5004_v51  ;;  %v2349_v51 = vld [vmem:[%s7447_s3 + $0xa8] sm:$0xff] }
 0x1b4   : > { %1488 = vmatprep.mubr.f32.mxu0 %v5983_v40  ;;  %v696_v40 = vld [vmem:[#allocation2 + $0x19a] sm:$0xff] }
 0x1b5   : > { %3975 = vmatprep.mubr.f32.mxu1 %v696_v40  ;;  %v612_v40 = vld [vmem:[#allocation2 + $0xa8] sm:$0xff] }
 0x1b7   : > { %1489 = vmatmul.mubr.f32.gmra.mrb[50].mxu0 %v5005_v56  ;;  %v611_v56 = vld [vmem:[#allocation2 + $0x98] sm:$0xff] }
 0x1b8   : > { %1493 = vmatprep.mubr.f32.mxu0 %v5993_v16  ;;  %v697_v16 = vld [vmem:[#allocation2 + $0x1a2] sm:$0xff] }
 0x1b9   : > { %3976 = vmatmul.mubr.f32.gmra.mrb[30].mxu1 %v697_v16  ;;  %v645_v16 = vld [vmem:[#allocation2 + $0xb1] sm:$0xff] }
 0x1bb   : > { %1494 = vmatmul.mubr.f32.gmra.mrb[52].mxu0 %v5006_v57  ;;  %v644_v57 = vld [vmem:[#allocation2 + $0xa9] sm:$0xff] }
 0x1bc   : > { %1498 = vmatprep.mubr.f32.mxu0 %v6003_v59  ;;  %v634_v59 = vld [vmem:[#allocation2 + $0x31] sm:$0xff] }
 0x1bf   : > { %1499 = vmatmul.mubr.f32.gmra.mrb[54].mxu0 %v5007_v61  ;;  %v4313_v61 = vpack.c.bf16 %v2349_v51, %v2348_v25  ;;  %v658_v51 = vld [vmem:[#allocation2 + $0x151] sm:$0xff] }
 0x1c0   : > { %1503 = vmatprep.mubr.f32.mxu0 %v6015_v44  ;;  %v2328_v44 = vld [vmem:[%s7447_s3] sm:$0xff] }
 0x1c3   : > { %1504 = vmatmul.mubr.f32.gmra.mrb[56].mxu0 %v5008_v7  ;;  %v2350_v7 = vld [vmem:[%s7447_s3 + $0xb0] sm:$0xff] }
 0x1c4   : > { %1508 = vmatprep.mubr.f32.mxu0 %v6027_v5  ;;  %v2329_v5 = vld [vmem:[%s7447_s3 + $0x8] sm:$0xff] }
 0x1c5   : > { %v4283_v35 = vpack.c.bf16 %v2329_v5, %v2328_v44  ;;  %v2352_v44 = vld [vmem:[%s7447_s3 + $0xc0] sm:$0xff]  ;;  %v2353_v5 = vld [vmem:[%s7447_s3 + $0xc8] sm:$0xff] }
 0x1c7   : > { %1509 = vmatmul.mubr.f32.gmra.mrb[58].mxu0 %v5009_v17  ;;  %4284 = vmatpush1.bf16.msra.mxu1 %v4283_v35  ;;  %v2351_v17 = vld [vmem:[%s7447_s3 + $0xb8] sm:$0xff]  ;;  %v4319_v35 = vpack.c.bf16 %v2353_v5, %v2352_v44  ;;  %v2360_v44 = vld [vmem:[%s7447_s3 + $0x100] sm:$0xff]  ;;  %v2361_v5 = vld [vmem:[%s7447_s3 + $0x108] sm:$0xff] }
 0x1c8   : > { %1513 = vmatprep.mubr.f32.mxu0 %v599_v39  ;;  %4285 = vmatprep.subr.bf16.mxu1 %v7450_v3  ;;  %v2343_v39 = vld [vmem:[%s7447_s3 + $0x78] sm:$0xff] }
 0x1cb   : > { %5044 = vmatmul.mubr.msk.f32.gmra.mrb[60].mxu0 %vm343_vm0, %v5727_v52  ;;  %v2330_v52 = vld [vmem:[%s7447_s3 + $0x10] sm:$0xff] }
 0x1cc   : > { %1518 = vmatprep.mubr.f32.mxu0 %v600_v31  ;;  %v4286_v38 = vpack.c.bf16 %v2331_v60, %v2330_v52  ;;  %v4304_v31 = vpack.c.bf16 %v2343_v39, %v2342_v21  ;;  %v613_v52 = vld [vmem:[#allocation2 + $0xb0] sm:$0xff]  ;;  %v656_v39 = vld [vmem:[#allocation2 + $0x139] sm:$0xff] }
 0x1cd   : > { %v2354_v60 = vld [vmem:[%s7447_s3 + $0xd0] sm:$0xff] }
 0x1ce   : > { %4287 = vmatpush1.bf16.msra.mxu1 %v4286_v38  ;;  %v614_v38 = vld [vmem:[#allocation2 + $0xc0] sm:$0xff] }
 0x1cf   : > { %5045 = vmatmul.mubr.msk.f32.gmra.mrb[62].mxu0 %vm343_vm0, %v5737_v54  ;;  %v635_v54 = vld [vmem:[#allocation2 + $0x39] sm:$0xff]  ;;  %4288 = vmatprep.subr.bf16.mxu1 %v7450_v3 }
 0x1d0   : > { %1588 = vmatprep.mubr.f32.mxu0 %v634_v59  ;;  %v4316_v59 = vpack.c.bf16 %v2351_v17, %v2350_v7  ;;  %v2464_v7 = vld [vmem:[%s7447_s3 + $0x440] sm:$0xff]  ;;  %v2465_v17 = vld [vmem:[%s7447_s3 + $0x448] sm:$0xff] }
 0x1d2   : > { %4290 = vmatpush1.bf16.msra.mxu1 %v4289_v37  ;;  %v616_v37 = vld [vmem:[#allocation2 + $0xd8] sm:$0xff] }
 0x1d3   : > { %1589 = vmatmul.mubr.f32.vlgmr.msra.gmra.mrb[0].mxu0 %v602_v36  ;;  %4291 = vmatprep.subr.bf16.mxu1 %v7450_v3  ;;  %v646_v36 = vld [vmem:[#allocation2 + $0xc1] sm:$0xff] }
 0x1d4   : > { %1593 = vmatprep.mubr.f32.mxu0 %v635_v54  ;;  %4477 = vmatpush3.bf16.msra.mxu0 %v6241_v20  ;;  %v2355_v54 = vld [vmem:[%s7447_s3 + $0xd8] sm:$0xff] }
 0x1d5   : > { %v4322_v1 = vpack.c.bf16 %v2355_v54, %v2354_v60  ;;  %v627_v60 = vld [vmem:[#allocation2 + $0x158] sm:$0xff] }
 0x1d6   : > { %4293 = vmatpush1.bf16.msra.mxu1 %v4292_v0  ;;  %v652_v0 = vld [vmem:[#allocation2 + $0x109] sm:$0xff] }
 0x1d7   : > { %1594 = vmatmul.mubr.f32.gmra.mrb[2].mxu0 %v603_v42  ;;  %4294 = vmatprep.subr.bf16.mxu1 %v7450_v3  ;;  %v615_v42 = vld [vmem:[#allocation2 + $0xc8] sm:$0xff] }
 0x1d8   : > { %1598 = vmatprep.mubr.f32.mxu0 %v636_v9  ;;  %v648_v9 = vld [vmem:[#allocation2 + $0xd9] sm:$0xff] }
 0x1da   : > { %4296 = vmatpush1.bf16.msra.mxu1 %v4295_v4  ;;  %v2356_v4 = vld [vmem:[%s7447_s3 + $0xe0] sm:$0xff] }
 0x1db   : > { %1599 = vmatmul.mubr.f32.gmra.mrb[4].mxu0 %v604_v53  ;;  %4297 = vmatprep.subr.bf16.mxu1 %v7450_v3  ;;  %v618_v53 = vld [vmem:[#allocation2 + $0xf0] sm:$0xff]  ;;  %v4325_v12 = vpack.c.bf16 %v2357_v29, %v2356_v4  ;;  %v5011_v4 = vld [vmem:[#allocation2 + $0x181] sm:$0xff] }
 0x1dc   : > { %1603 = vmatprep.mubr.f32.mxu0 %v637_v18  ;;  %v619_v18 = vld [vmem:[#allocation2 + $0xf8] sm:$0xff]  ;;  %v2364_v29 = vld [vmem:[%s7447_s3 + $0x120] sm:$0xff] }
 0x1de   : > { %4299 = vmatpush1.bf16.msra.mxu1 %v4298_v27  ;;  %v2358_v27 = vld [vmem:[%s7447_s3 + $0xf0] sm:$0xff] }
 0x1df   : > { %1604 = vmatmul.mubr.f32.gmra.mrb[6].mxu0 %v605_v8  ;;  %4300 = vmatprep.subr.bf16.mxu1 %v7450_v3  ;;  %v621_v8 = vld [vmem:[#allocation2 + $0x110] sm:$0xff] }
 0x1e0   : > { %1608 = vmatprep.mubr.f32.mxu0 %v638_v26  ;;  %v654_v26 = vld [vmem:[#allocation2 + $0x121] sm:$0xff] }
 0x1e2   : > { %4302 = vmatpush1.bf16.msra.mxu1 %v4301_v30  ;;  %v623_v30 = vld [vmem:[#allocation2 + $0x128] sm:$0xff] }
 0x1e3   : > { %1609 = vmatmul.mubr.f32.gmra.mrb[8].mxu0 %v606_v6  ;;  %4303 = vmatprep.subr.bf16.mxu1 %v7450_v3  ;;  %v622_v6 = vld [vmem:[#allocation2 + $0x120] sm:$0xff] }
 0x1e4   : > { %1613 = vmatprep.mubr.f32.mxu0 %v639_v11  ;;  %v655_v11 = vld [vmem:[#allocation2 + $0x129] sm:$0xff] }
 0x1e6   : > { %4305 = vmatpush1.bf16.msra.mxu1 %v4304_v31 }
 0x1e7   : > { %1614 = vmatmul.mubr.f32.gmra.mrb[10].mxu0 %v607_v14  ;;  %4306 = vmatprep.subr.bf16.mxu1 %v7450_v3  ;;  %v2459_v14 = vld [vmem:[%s7447_s3 + $0x418] sm:$0xff] }
 0x1e8   : > { %1618 = vmatprep.mubr.f32.mxu0 %v640_v41  ;;  %v4328_v41 = vpack.c.bf16 %v2359_v33, %v2358_v27  ;;  %v6336_v21 = vpack.c.bf16 %v2459_v14, %v2458_v13  ;;  %v664_v27 = vld [vmem:[#allocation2 + $0x199] sm:$0xff] }
 0x1e9   : > { %v632_v14 = vld [vmem:[#allocation2 + $0x198] sm:$0xff] }
 0x1ea   : > { %4308 = vmatpush1.bf16.msra.mxu1 %v4307_v34  ;;  %7481 = vst [vmem:[#allocation5_spill] sm:$0xff] %v6336_v21  ;;  %4479 = vmatprep.subr.bf16.mxu0 %v6336_v21  ;;  %v6351_v34 = vpack.c.bf16 %v2461_v22, %v2460_v47  ;;  %v2368_v47 = vld [vmem:[%s7447_s3 + $0x140] sm:$0xff]  ;;  %v2369_v22 = vld [vmem:[%s7447_s3 + $0x148] sm:$0xff] }
 0x1eb   : > { %1619 = vmatmul.mubr.f32.gmra.mrb[12].mxu0 %v608_v15  ;;  %4309 = vmatprep.subr.bf16.mxu1 %v7450_v3 }
 0x1ec   : > { %1623 = vmatprep.mubr.f32.mxu0 %v641_v24  ;;  %v2071_v24 = vld [vmem:[#allocation3 + $0x1] sm:$0xff]  ;;  %4481 = vmatpush3.bf16.msra.mxu0 %v6336_v21  ;;  %7482 = vst [vmem:[#allocation6_spill] sm:$0xff] %v6351_v34 }
 0x1ed   : > { %2543 = vmatprep.mubr.f32.mxu1 %v2071_v24  ;;  %4483 = vmatprep.subr.bf16.mxu0 %v6351_v34 }
 0x1ee   : > { %4311 = vmatpush1.bf16.msra.mxu1 %v4310_v50  ;;  %v625_v50 = vld [vmem:[#allocation2 + $0x140] sm:$0xff] }
 0x1ef   : > { %1624 = vmatmul.mubr.f32.gmra.mrb[14].mxu0 %v609_v28  ;;  %4312 = vmatprep.subr.bf16.mxu1 %v7450_v3  ;;  %v2039_v28 = vld [vmem:[#allocation3] sm:$0xff] }
 0x1f0   : > { %1628 = vmatprep.mubr.f32.mxu0 %v642_v32  ;;  %v624_v32 = vld [vmem:[#allocation2 + $0x138] sm:$0xff]  ;;  %4485 = vmatpush3.bf16.msra.mxu0 %v6351_v34 }
 0x1f2   : > { %4314 = vmatpush1.bf16.msra.mxu1 %v4313_v61 }
 0x1f3   : > { %1629 = vmatmul.mubr.f32.gmra.mrb[16].mxu0 %v610_v55  ;;  %4315 = vmatprep.subr.bf16.mxu1 %v7450_v3  ;;  %v2462_v55 = vld [vmem:[%s7447_s3 + $0x430] sm:$0xff] }
 0x1f4   : > { %1633 = vmatprep.mubr.f32.mxu0 %v643_v23  ;;  %v2463_v23 = vld [vmem:[%s7447_s3 + $0x438] sm:$0xff] }
 0x1f5   : > { %v6361_v25 = vpack.c.bf16 %v2463_v23, %v2462_v55  ;;  %v2371_v55 = vld [vmem:[%s7447_s3 + $0x158] sm:$0xff] }
 0x1f6   : > { %4317 = vmatpush1.bf16.msra.mxu1 %v4316_v59  ;;  %v659_v59 = vld [vmem:[#allocation2 + $0x159] sm:$0xff] }
 0x1f7   : > { %1634 = vmatmul.mubr.f32.gmra.mrb[18].mxu0 %v611_v56  ;;  %4318 = vmatprep.subr.bf16.mxu1 %v7450_v3  ;;  %7483 = vst [vmem:[#allocation7_spill] sm:$0xff] %v6361_v25  ;;  %v6363_v56 = vld [vmem:[#allocation2 + $0x8] sm:$0xff] }
 0x1f8   : > { %1638 = vmatprep.mubr.f32.mxu0 %v644_v57  ;;  %4487 = vmatprep.subr.bf16.mxu0 %v6361_v25 }
 0x1f9   : > { %4489 = vmatpush3.bf16.msra.mxu0 %v6361_v25 }
 0x1fa   : > { %4320 = vmatpush1.bf16.msra.mxu1 %v4319_v35  ;;  %v2467_v35 = vld [vmem:[%s7447_s3 + $0x458] sm:$0xff] }
 0x1fb   : > { %1639 = vmatmul.mubr.f32.gmra.mrb[20].mxu0 %v612_v40  ;;  %4321 = vmatprep.subr.bf16.mxu1 %v7450_v3  ;;  %v626_v40 = vld [vmem:[#allocation2 + $0x150] sm:$0xff] }
 0x1fc   : > { %1643 = vmatprep.mubr.f32.mxu0 %v645_v16  ;;  %v6378_v16 = vpack.c.bf16 %v2465_v17, %v2464_v7  ;;  %v2373_v7 = vld [vmem:[%s7447_s3 + $0x168] sm:$0xff] }
 0x1fe   : > { %4323 = vmatpush1.bf16.msra.mxu1 %v4322_v1  ;;  %7484 = vst [vmem:[#allocation8_spill] sm:$0xff] %v6378_v16  ;;  %4491 = vmatprep.subr.bf16.mxu0 %v6378_v16 }
 0x1ff   : > { %1644 = vmatmul.mubr.f32.gmra.mrb[22].mxu0 %v613_v52  ;;  %4324 = vmatprep.subr.bf16.mxu1 %v7450_v3  ;;  %v4331_v52 = vpack.c.bf16 %v2361_v5, %v2360_v44  ;;  %v2374_v44 = vld [vmem:[%s7447_s3 + $0x170] sm:$0xff]  ;;  %v2375_v5 = vld [vmem:[%s7447_s3 + $0x178] sm:$0xff] }
 0x200   : > { %1648 = vmatprep.mubr.f32.mxu0 %v646_v36  ;;  %v2466_v36 = vld [vmem:[%s7447_s3 + $0x450] sm:$0xff]  ;;  %4493 = vmatpush3.bf16.msra.mxu0 %v6378_v16 }
 0x201   : > { %v6393_v54 = vpack.c.bf16 %v2467_v35, %v2466_v36 }
 0x202   : > { %4326 = vmatpush1.bf16.msra.mxu1 %v4325_v12  ;;  %v2365_v12 = vld [vmem:[%s7447_s3 + $0x128] sm:$0xff] }
 0x203   : > { %1649 = vmatmul.mubr.f32.gmra.mrb[24].mxu0 %v614_v38  ;;  %4327 = vmatprep.subr.bf16.mxu1 %v7450_v3  ;;  %7485 = vst [vmem:[#allocation9_spill] sm:$0xff] %v6393_v54  ;;  %v660_v38 = vld [vmem:[#allocation2 + $0x169] sm:$0xff] }
 0x204   : > { %1653 = vmatprep.mubr.f32.mxu0 %v647_v43  ;;  %4495 = vmatprep.subr.bf16.mxu0 %v6393_v54 }
 0x205   : > { %4497 = vmatpush3.bf16.msra.mxu0 %v6393_v54 }
 0x206   : > { %4329 = vmatpush1.bf16.msra.mxu1 %v4328_v41  ;;  %v665_v41 = vld [vmem:[#allocation2 + $0x1a1] sm:$0xff] }
 0x207   : > { %1654 = vmatmul.mubr.f32.gmra.mrb[26].mxu0 %v615_v42  ;;  %4330 = vmatprep.subr.bf16.mxu1 %v7450_v3  ;;  %v2468_v42 = vld [vmem:[%s7447_s3 + $0x460] sm:$0xff] }
 0x208   : > { %1658 = vmatprep.mubr.f32.mxu0 %v648_v9  ;;  %v2469_v9 = vld [vmem:[%s7447_s3 + $0x468] sm:$0xff] }
 0x209   : > { %2544 = vmatmul.mubr.f32.vlgmr.msra.gmra.mrb[32].mxu1 %v2039_v28  ;;  %v4343_v28 = vpack.c.bf16 %v2369_v22, %v2368_v47 }
 0x20a   : > { %2548 = vmatprep.mubr.f32.mxu1 %v2072_v49  ;;  %4332 = vmatpush1.bf16.msra.mxu1 %v4331_v52  ;;  %v2370_v49 = vld [vmem:[%s7447_s3 + $0x150] sm:$0xff]  ;;  %v4352_v52 = vpack.c.bf16 %v2375_v5, %v2374_v44  ;;  %v6578_v5 = vld [vmem:[%s7446_s2] ss:$0 sm:$0xff] }
 0x20b   : > { %1659 = vmatmul.mubr.f32.gmra.mrb[28].mxu0 %v616_v37  ;;  %4333 = vmatprep.subr.bf16.mxu1 %v7450_v3  ;;  %v628_v37 = vld [vmem:[#allocation2 + $0x168] sm:$0xff]  ;;  %v4346_v23 = vpack.c.bf16 %v2371_v55, %v2370_v49  ;;  %v2387_v49 = vld [vmem:[%s7447_s3 + $0x1d8] sm:$0xff] }
 0x20c   : > { %1663 = vmatprep.mubr.f32.mxu0 %v649_v45  ;;  %v6408_v45 = vpack.c.bf16 %v2469_v9, %v2468_v42 }
 0x20d   : > { %2549 = vmatmul.mubr.f32.gmra.mrb[34].mxu1 %v6363_v56 }
 0x20e   : > { %7486 = vst [vmem:[#allocation10_spill] sm:$0xff] %v6408_v45  ;;  %4499 = vmatprep.subr.bf16.mxu0 %v6408_v45 }
 0x20f   : > { %1664 = vmatmul.mubr.f32.gmra.mrb[30].mxu0 %v617_v10  ;;  %v661_v10 = vld [vmem:[#allocation2 + $0x171] sm:$0xff] }
 0x210   : > { %1668 = vmatprep.mubr.f32.mxu0 %v650_v19  ;;  %v2362_v19 = vld [vmem:[%s7447_s3 + $0x110] sm:$0xff]  ;;  %4501 = vmatpush3.bf16.msra.mxu0 %v6408_v45 }
 0x213   : > { %1669 = vmatmul.mubr.f32.gmra.mrb[32].mxu0 %v618_v53  ;;  %v2363_v53 = vld [vmem:[%s7447_s3 + $0x118] sm:$0xff] }
 0x214   : > { %1673 = vmatprep.mubr.f32.mxu0 %v651_v46  ;;  %v4334_v46 = vpack.c.bf16 %v2363_v53, %v2362_v19  ;;  %v2379_v19 = vld [vmem:[%s7447_s3 + $0x198] sm:$0xff] }
 0x216   : > { %4335 = vmatpush1.bf16.msra.mxu1 %v4334_v46 }
 0x217   : > { %1674 = vmatmul.mubr.f32.gmra.mrb[34].mxu0 %v619_v18  ;;  %v2470_v18 = vld [vmem:[%s7447_s3 + $0x470] sm:$0xff]  ;;  %4336 = vmatprep.subr.bf16.mxu1 %v7450_v3 }
 0x218   : > { %1678 = vmatprep.mubr.f32.mxu0 %v652_v0  ;;  %v2471_v0 = vld [vmem:[%s7447_s3 + $0x478] sm:$0xff] }
 0x21b   : > { %1679 = vmatmul.mubr.f32.gmra.mrb[36].mxu0 %v620_v48  ;;  %v629_v48 = vld [vmem:[#allocation2 + $0x170] sm:$0xff] }
 0x21c   : > { %1683 = vmatprep.mubr.f32.mxu0 %v653_v62  ;;  %v6424_v62 = vpack.c.bf16 %v2471_v0, %v2470_v18  ;;  %v2380_v0 = vld [vmem:[%s7447_s3 + $0x1a0] sm:$0xff] }
 0x21e   : > { %7487 = vst [vmem:[#allocation11_spill] sm:$0xff] %v6424_v62  ;;  %4503 = vmatprep.subr.bf16.mxu0 %v6424_v62 }
 0x21f   : > { %1684 = vmatmul.mubr.f32.gmra.mrb[38].mxu0 %v621_v8 }
 0x220   : > { %1688 = vmatprep.mubr.f32.mxu0 %v654_v26  ;;  %4505 = vmatpush3.bf16.msra.mxu0 %v6424_v62 }
 0x222   : > { %v6339_v15 = vpop.f32.mrb[0].mxu1 }
 0x223   : > { %1689 = vmatmul.mubr.f32.gmra.mrb[40].mxu0 %v622_v6  ;;  %v6342_v31 = vpop.f32.mrb[1].mxu1  ;;  %v4337_v6 = vpack.c.bf16 %v2365_v12, %v2364_v29 }
 0x224   : > { %1693 = vmatprep.mubr.f32.mxu0 %v655_v11  ;;  %v5012_v11 = vld [vmem:[#allocation2 + $0x189] sm:$0xff] }
 0x225   : > { %4338 = vmatpush1.bf16.msra.mxu1 %v4337_v6  ;;  %v2382_v6 = vld [vmem:[%s7447_s3 + $0x1b0] sm:$0xff] }
 0x226   : > { %v6367_v57 = vpop.f32.mrb[2].mxu1  ;;  %4339 = vmatprep.subr.bf16.mxu1 %v7450_v3 }
 0x227   : > { %1694 = vmatmul.mubr.f32.gmra.mrb[42].mxu0 %v623_v30  ;;  %v6369_v61 = vpop.f32.mrb[3].mxu1  ;;  %v2366_v30 = vld [vmem:[%s7447_s3 + $0x130] sm:$0xff] }
 0x228   : > { %1698 = vmatprep.mubr.f32.mxu0 %v656_v39 }
 0x22a   : > { %v6398_v43 = vpop.f32.mrb[4].mxu1 }
 0x22b   : > { %1699 = vmatmul.mubr.f32.gmra.mrb[44].mxu0 %v624_v32  ;;  %v6400_v1 = vpop.f32.mrb[5].mxu1 }
 0x22c   : > { %1703 = vmatprep.mubr.f32.mxu0 %v657_v58 }
 0x22e   : > { %v6429_v8 = vpop.f32.mrb[6].mxu1 }
 0x22f   : > { %1704 = vmatmul.mubr.f32.gmra.mrb[46].mxu0 %v625_v50  ;;  %v6431_v26 = vpop.f32.mrb[7].mxu1 }
 0x230   : > { %1708 = vmatprep.mubr.f32.mxu0 %v658_v51 }
 0x232   : > { %v6442_v33 = vpop.f32.mrb[8].mxu1 }
 0x233   : > { %1709 = vmatmul.mubr.f32.gmra.mrb[48].mxu0 %v626_v40  ;;  %v6445_v13 = vpop.f32.mrb[9].mxu1 }
 0x234   : > { %1713 = vmatprep.mubr.f32.mxu0 %v659_v59 }
 0x237   : > { %1714 = vmatmul.mubr.f32.gmra.mrb[50].mxu0 %v627_v60  ;;  %v2376_v60 = vld [vmem:[%s7447_s3 + $0x180] sm:$0xff] }
 0x238   : > { %1718 = vmatprep.mubr.f32.mxu0 %v660_v38  ;;  %v2377_v38 = vld [vmem:[%s7447_s3 + $0x188] sm:$0xff] }
 0x239   : > { %v4355_v42 = vpack.c.bf16 %v2377_v38, %v2376_v60 }
 0x23b   : > { %1719 = vmatmul.mubr.f32.gmra.mrb[52].mxu0 %v628_v37 }
 0x23c   : > { %1723 = vmatprep.mubr.f32.mxu0 %v661_v10  ;;  %v2378_v10 = vld [vmem:[%s7447_s3 + $0x190] sm:$0xff] }
 0x23d   : > { %v4358_v53 = vpack.c.bf16 %v2379_v19, %v2378_v10  ;;  %v2391_v10 = vld [vmem:[%s7447_s3 + $0x1f8] sm:$0xff] }
 0x23f   : > { %1724 = vmatmul.mubr.f32.gmra.mrb[54].mxu0 %v629_v48  ;;  %v2381_v48 = vld [vmem:[%s7447_s3 + $0x1a8] sm:$0xff] }
 0x240   : > { %1728 = vmatprep.mubr.f32.mxu0 %v5011_v4  ;;  %v4361_v4 = vpack.c.bf16 %v2381_v48, %v2380_v0 }
 0x243   : > { %1729 = vmatmul.mubr.f32.gmra.mrb[56].mxu0 %v6011_v63  ;;  %v2367_v63 = vld [vmem:[%s7447_s3 + $0x138] sm:$0xff] }
 0x244   : > { %1733 = vmatprep.mubr.f32.mxu0 %v5012_v11  ;;  %v4340_v39 = vpack.c.bf16 %v2367_v63, %v2366_v30  ;;  %v2383_v11 = vld [vmem:[%s7447_s3 + $0x1b8] sm:$0xff]  ;;  %v2384_v30 = vld [vmem:[%s7447_s3 + $0x1c0] sm:$0xff]  ;;  %v2385_v63 = vld [vmem:[%s7447_s3 + $0x1c8] sm:$0xff] }
 0x246   : > { %4341 = vmatpush1.bf16.msra.mxu1 %v4340_v39  ;;  %v4367_v39 = vpack.c.bf16 %v2385_v63, %v2384_v30 }
 0x247   : > { %1734 = vmatmul.mubr.f32.gmra.mrb[58].mxu0 %v6023_v2  ;;  %4342 = vmatprep.subr.bf16.mxu1 %v7450_v3  ;;  %v6454_v2 = vpop.f32.mrb[10].mxu1 }
 0x248   : > { %1738 = vmatprep.mubr.f32.mxu0 %v664_v27  ;;  %v6457_v24 = vpop.f32.mrb[11].mxu1  ;;  %v4364_v27 = vpack.c.bf16 %v2383_v11, %v2382_v6 }
 0x249   : > { %v6466_v32 = vpop.f32.mrb[12].mxu1 }
 0x24a   : > { %4344 = vmatpush1.bf16.msra.mxu1 %v4343_v28  ;;  %v6468_v58 = vpop.f32.mrb[13].mxu1  ;;  %v2386_v28 = vld [vmem:[%s7447_s3 + $0x1d0] sm:$0xff] }
 0x24b   : > { %1739 = vmatmul.mubr.f32.gmra.mrb[60].mxu0 %v632_v14  ;;  %4345 = vmatprep.subr.bf16.mxu1 %v7450_v3  ;;  %v6477_v50 = vpop.f32.mrb[14].mxu1  ;;  %v4370_v55 = vpack.c.bf16 %v2387_v49, %v2386_v28 }
 0x24c   : > { %1743 = vmatprep.mubr.f32.mxu0 %v665_v41  ;;  %v6479_v51 = vpop.f32.mrb[15].mxu1 }
 0x24d   : > { %v6488_v40 = vpop.f32.mrb[16].mxu1 }
 0x24e   : > { %4347 = vmatpush1.bf16.msra.mxu1 %v4346_v23  ;;  %v6490_v59 = vpop.f32.mrb[17].mxu1 }
 0x24f   : > { %1744 = vmatmul.mubr.f32.gmra.mrb[62].mxu0 %v6363_v56  ;;  %4348 = vmatprep.subr.bf16.mxu1 %v7450_v3  ;;  %v2372_v56 = vld [vmem:[%s7447_s3 + $0x160] sm:$0xff]  ;;  %v6499_v36 = vpop.f32.mrb[18].mxu1 }
 0x250   : > { %v4349_v17 = vpack.c.bf16 %v2373_v7, %v2372_v56  ;;  %v6501_v35 = vpop.f32.mrb[19].mxu1  ;;  %v2388_v7 = vld [vmem:[%s7447_s3 + $0x1e0] sm:$0xff] }
 0x251   : > { %v6510_v9 = vpop.f32.mrb[20].mxu1 }
 0x252   : > { %4350 = vmatpush1.bf16.msra.mxu1 %v4349_v17  ;;  %v6512_v37 = vpop.f32.mrb[21].mxu1  ;;  %v2389_v17 = vld [vmem:[%s7447_s3 + $0x1e8] sm:$0xff] }
 0x253   : > { %4351 = vmatprep.subr.bf16.mxu1 %v7450_v3  ;;  %v6521_v46 = vpop.f32.mrb[22].mxu1  ;;  %v4373_v44 = vpack.c.bf16 %v2389_v17, %v2388_v7 }
 0x254   : > { %v6523_v18 = vpop.f32.mrb[23].mxu1 }
 0x255   : > { %v6532_v29 = vpop.f32.mrb[24].mxu1 }
 0x256   : > { %4353 = vmatpush1.bf16.msra.mxu1 %v4352_v52  ;;  %v6534_v12 = vpop.f32.mrb[25].mxu1 }
 0x257   : > { %4354 = vmatprep.subr.bf16.mxu1 %v7450_v3  ;;  %v6543_v14 = vpop.f32.mrb[26].mxu1 }
 0x258   : > { %v6545_v41 = vpop.f32.mrb[27].mxu1 }
 0x25a   : > { %4356 = vmatpush1.bf16.msra.mxu1 %v4355_v42  ;;  %v6554_v47 = vpop.f32.mrb[28].mxu1  ;;  %v2390_v42 = vld [vmem:[%s7447_s3 + $0x1f0] sm:$0xff] }
 0x25b   : > { %4357 = vmatprep.subr.bf16.mxu1 %v7450_v3  ;;  %v6556_v22 = vpop.f32.mrb[29].mxu1  ;;  %v4376_v19 = vpack.c.bf16 %v2391_v10, %v2390_v42 }
 0x25e   : > { %4359 = vmatpush1.bf16.msra.mxu1 %v4358_v53 }
 0x25f   : > { %4360 = vmatprep.subr.bf16.mxu1 %v7450_v3 }
 0x262   : > { %4362 = vmatpush1.bf16.msra.mxu1 %v4361_v4 }
 0x263   : > { %4363 = vmatprep.subr.bf16.mxu1 %v7450_v3 }
 0x266   : > { %4365 = vmatpush1.bf16.msra.mxu1 %v4364_v27 }
 0x267   : > { %4366 = vmatprep.subr.bf16.mxu1 %v7450_v3 }
 0x26a   : > { %4368 = vmatpush1.bf16.msra.mxu1 %v4367_v39 }
 0x26b   : > { %4369 = vmatprep.subr.bf16.mxu1 %v7450_v3 }
 0x26e   : > { %4371 = vmatpush1.bf16.msra.mxu1 %v4370_v55 }
 0x26f   : > { %4372 = vmatprep.subr.bf16.mxu1 %v7450_v3 }
 0x272   : > { %4374 = vmatpush1.bf16.msra.mxu1 %v4373_v44 }
 0x273   : > { %4375 = vmatprep.subr.bf16.mxu1 %v7450_v3 }
 0x276   : > { %4377 = vmatpush1.bf16.msra.mxu1 %v4376_v19 }
 0x277   : > { %4378 = vmatprep.subr.bf16.mxu1 %v7450_v3 }
 0x28c   : > { %v6565_v23 = vpop.f32.mrb[30].mxu1 }
 0x28d   : > { %v6567_v56 = vpop.f32.mrb[31].mxu1 }
 0x2a6   : > { %v1590_v52 = vpop.f32.mrb[0].mxu0 }
 0x2a7   : > { %v4522_v60 = vadd.f32 %v6578_v5, %v1590_v52  ;;  %v1592_v38 = vpop.f32.mrb[1].mxu0 }
 0x2a9   : > { %v1816_v53 = vadd.f32 %v4522_v60, %v6342_v31 }
 0x2aa   : > { %v1595_v0 = vpop.f32.mrb[2].mxu0 }
 0x2ab   : > { %v1974_v48 = vmax.f32 %v1816_v53, 0.0  ;;  %v4523_v4 = vadd.f32 %v6578_v5, %v1595_v0  ;;  %v1597_v6 = vpop.f32.mrb[3].mxu0 }
 0x2ad   : > { %2007 = vst [vmem:[#allocation3 + $0x19] sm:$0xff] %v1974_v48  ;;  %v1821_v11 = vadd.f32 %v4523_v4, %v6339_v15  ;;  %2553 = vmatprep.mubr.f32.mxu1 %v1974_v48 }
 0x2ae   : > { %v1600_v27 = vpop.f32.mrb[4].mxu0 }
 0x2af   : > { %v1975_v30 = vmax.f32 %v1821_v11, 0.0  ;;  %v4524_v63 = vadd.f32 %v6578_v5, %v1600_v27  ;;  %v1602_v39 = vpop.f32.mrb[5].mxu0 }
 0x2b1   : > { %2008 = vst [vmem:[#allocation3 + $0x21] sm:$0xff] %v1975_v30  ;;  %v1826_v31 = vadd.f32 %v4524_v63, %v6369_v61 }
 0x2b2   : > { %v1605_v28 = vpop.f32.mrb[6].mxu0 }
 0x2b3   : > { %v1976_v49 = vmax.f32 %v1826_v31, 0.0  ;;  %v4525_v55 = vadd.f32 %v6578_v5, %v1605_v28  ;;  %v1607_v7 = vpop.f32.mrb[7].mxu0 }
 0x2b4   : > { %v6595_v17 = vld [vmem:[#allocation3 + $0x18] sm:$0xff] }
 0x2b5   : > { %2009 = vst [vmem:[#allocation3 + $0x31] sm:$0xff] %v1976_v49  ;;  %v1831_v44 = vadd.f32 %v4525_v55, %v6367_v57  ;;  %2554 = vmatmul.mubr.f32.gmra.mrb[36].mxu1 %v6595_v17 }
 0x2b6   : > { %v1610_v15 = vpop.f32.mrb[8].mxu0  ;;  %2558 = vmatprep.mubr.f32.mxu1 %v1975_v30 }
 0x2b7   : > { %v1977_v52 = vmax.f32 %v1831_v44, 0.0  ;;  %v4526_v60 = vadd.f32 %v6578_v5, %v1610_v15  ;;  %v1612_v38 = vpop.f32.mrb[9].mxu0 }
 0x2b8   : > { %v6600_v42 = vld [vmem:[#allocation3 + $0x20] sm:$0xff] }
 0x2b9   : > { %2010 = vst [vmem:[#allocation3 + $0x39] sm:$0xff] %v1977_v52  ;;  %v1836_v61 = vadd.f32 %v4526_v60, %v6400_v1  ;;  %2559 = vmatmul.mubr.f32.gmra.mrb[38].mxu1 %v6600_v42 }
 0x2ba   : > { %v1615_v10 = vpop.f32.mrb[10].mxu0  ;;  %2563 = vmatprep.mubr.f32.mxu1 %v1976_v49 }
 0x2bb   : > { %v1978_v19 = vmax.f32 %v1836_v61, 0.0  ;;  %v4527_v57 = vadd.f32 %v6578_v5, %v1615_v10  ;;  %v1617_v53 = vpop.f32.mrb[11].mxu0 }
 0x2bc   : > { %v6605_v0 = vld [vmem:[#allocation3 + $0x30] sm:$0xff] }
 0x2bd   : > { %2011 = vst [vmem:[#allocation3 + $0x49] sm:$0xff] %v1978_v19  ;;  %v1841_v48 = vadd.f32 %v4527_v57, %v6398_v43  ;;  %2564 = vmatmul.mubr.f32.gmra.mrb[40].mxu1 %v6605_v0 }
 0x2be   : > { %v1620_v4 = vpop.f32.mrb[12].mxu0  ;;  %2568 = vmatprep.mubr.f32.mxu1 %v1977_v52 }
 0x2bf   : > { %v1979_v6 = vmax.f32 %v1841_v48, 0.0  ;;  %v4528_v1 = vadd.f32 %v6578_v5, %v1620_v4  ;;  %v1622_v11 = vpop.f32.mrb[13].mxu0 }
 0x2c0   : > { %v6610_v27 = vld [vmem:[#allocation3 + $0x32] sm:$0xff]  ;;  %v6614_v63 = vld [vmem:[#allocation3 + $0x3a] sm:$0xff] }
 0x2c1   : > { %v6612_v30 = vld [vmem:[#allocation3 + $0x38] sm:$0xff]  ;;  %2012 = vst [vmem:[#allocation3 + $0x51] sm:$0xff] %v1979_v6  ;;  %v1846_v39 = vadd.f32 %v4528_v1, %v6431_v26  ;;  %4010 = vmatprep.mubr.f32.mxu0 %v6610_v27 }
 0x2c2   : > { %2569 = vmatmul.mubr.f32.gmra.mrb[42].mxu1 %v6612_v30  ;;  %v1625_v43 = vpop.f32.mrb[14].mxu0  ;;  %4011 = vmatmul.mubr.f32.vlgmr.msra.gmra.mrb[64].mxu0 %v6614_v63 }
 0x2c3   : > { %2573 = vmatprep.mubr.f32.mxu1 %v1978_v19  ;;  %v1980_v31 = vmax.f32 %v1846_v39, 0.0  ;;  %v4529_v28 = vadd.f32 %v6578_v5, %v1625_v43  ;;  %v1627_v49 = vpop.f32.mrb[15].mxu0 }
 0x2c4   : > { %v6621_v55 = vld [vmem:[#allocation3 + $0x48] sm:$0xff] }
 0x2c5   : > { %2013 = vst [vmem:[#allocation3 + $0x61] sm:$0xff] %v1980_v31  ;;  %v1851_v7 = vadd.f32 %v4529_v28, %v6429_v8 }
 0x2c6   : > { %2574 = vmatmul.mubr.f32.gmra.mrb[44].mxu1 %v6621_v55  ;;  %v1630_v26 = vpop.f32.mrb[16].mxu0 }
 0x2c7   : > { %2578 = vmatprep.mubr.f32.mxu1 %v1979_v6  ;;  %v1981_v44 = vmax.f32 %v1851_v7, 0.0  ;;  %v4530_v15 = vadd.f32 %v6578_v5, %v1630_v26  ;;  %v1632_v52 = vpop.f32.mrb[17].mxu0 }
 0x2c8   : > { %v6626_v60 = vld [vmem:[#allocation3 + $0x4a] sm:$0xff]  ;;  %v6630_v61 = vld [vmem:[#allocation3 + $0x52] sm:$0xff] }
 0x2c9   : > { %v6628_v38 = vld [vmem:[#allocation3 + $0x50] sm:$0xff]  ;;  %2014 = vst [vmem:[#allocation3 + $0x69] sm:$0xff] %v1981_v44  ;;  %v1856_v10 = vadd.f32 %v4530_v15, %v6445_v13  ;;  %4013 = vmatprep.mubr.f32.mxu0 %v6626_v60 }
 0x2ca   : > { %2579 = vmatmul.mubr.f32.gmra.mrb[46].mxu1 %v6628_v38  ;;  %v1635_v8 = vpop.f32.mrb[18].mxu0  ;;  %4014 = vmatmul.mubr.f32.gmra.mrb[66].mxu0 %v6630_v61 }
 0x2cb   : > { %2583 = vmatprep.mubr.f32.mxu1 %v1980_v31  ;;  %v1982_v19 = vmax.f32 %v1856_v10, 0.0  ;;  %v4531_v57 = vadd.f32 %v6578_v5, %v1635_v8  ;;  %v1637_v53 = vpop.f32.mrb[19].mxu0 }
 0x2cc   : > { %v6637_v48 = vld [vmem:[#allocation3 + $0x60] sm:$0xff] }
 0x2cd   : > { %2015 = vst [vmem:[#allocation3 + $0x79] sm:$0xff] %v1982_v19  ;;  %v1861_v4 = vadd.f32 %v4531_v57, %v6442_v33 }
 0x2ce   : > { %2584 = vmatmul.mubr.f32.gmra.mrb[48].mxu1 %v6637_v48  ;;  %v1640_v13 = vpop.f32.mrb[20].mxu0 }
 0x2cf   : > { %2588 = vmatprep.mubr.f32.mxu1 %v1981_v44  ;;  %v1983_v6 = vmax.f32 %v1861_v4, 0.0  ;;  %v4532_v1 = vadd.f32 %v6578_v5, %v1640_v13  ;;  %v1642_v11 = vpop.f32.mrb[21].mxu0 }
 0x2d0   : > { %v6642_v39 = vld [vmem:[#allocation3 + $0x62] sm:$0xff]  ;;  %v6646_v31 = vld [vmem:[#allocation3 + $0x6a] sm:$0xff] }
 0x2d1   : > { %v6644_v43 = vld [vmem:[#allocation3 + $0x68] sm:$0xff]  ;;  %2016 = vst [vmem:[#allocation3 + $0x81] sm:$0xff] %v1983_v6  ;;  %v1866_v28 = vadd.f32 %v4532_v1, %v6457_v24  ;;  %4016 = vmatprep.mubr.f32.mxu0 %v6642_v39 }
 0x2d2   : > { %2589 = vmatmul.mubr.f32.gmra.mrb[50].mxu1 %v6644_v43  ;;  %v1645_v33 = vpop.f32.mrb[22].mxu0  ;;  %4017 = vmatmul.mubr.f32.gmra.mrb[68].mxu0 %v6646_v31 }
 0x2d3   : > { %2593 = vmatprep.mubr.f32.mxu1 %v1982_v19  ;;  %v1984_v49 = vmax.f32 %v1866_v28, 0.0  ;;  %v4533_v7 = vadd.f32 %v6578_v5, %v1645_v33  ;;  %v1647_v26 = vpop.f32.mrb[23].mxu0 }
 0x2d4   : > { %v6653_v44 = vld [vmem:[#allocation3 + $0x78] sm:$0xff] }
 0x2d5   : > { %2017 = vst [vmem:[#allocation3 + $0x91] sm:$0xff] %v1984_v49  ;;  %v1871_v15 = vadd.f32 %v4533_v7, %v6454_v2 }
 0x2d6   : > { %2594 = vmatmul.mubr.f32.gmra.mrb[52].mxu1 %v6653_v44  ;;  %v1650_v24 = vpop.f32.mrb[24].mxu0 }
 0x2d7   : > { %2598 = vmatprep.mubr.f32.mxu1 %v1983_v6  ;;  %v1985_v52 = vmax.f32 %v1871_v15, 0.0  ;;  %v4534_v10 = vadd.f32 %v6578_v5, %v1650_v24  ;;  %v1652_v8 = vpop.f32.mrb[25].mxu0 }
 0x2d8   : > { %v6658_v57 = vld [vmem:[#allocation3 + $0x7a] sm:$0xff]  ;;  %v6662_v53 = vld [vmem:[#allocation3 + $0x82] sm:$0xff] }
 0x2d9   : > { %v6660_v19 = vld [vmem:[#allocation3 + $0x80] sm:$0xff]  ;;  %2018 = vst [vmem:[#allocation3 + $0x99] sm:$0xff] %v1985_v52  ;;  %v1876_v4 = vadd.f32 %v4534_v10, %v6468_v58  ;;  %4019 = vmatprep.mubr.f32.mxu0 %v6658_v57 }
 0x2da   : > { %2599 = vmatmul.mubr.f32.gmra.mrb[54].mxu1 %v6660_v19  ;;  %v1655_v2 = vpop.f32.mrb[26].mxu0  ;;  %4020 = vmatmul.mubr.f32.gmra.mrb[70].mxu0 %v6662_v53 }
 0x2db   : > { %2603 = vmatprep.mubr.f32.mxu1 %v1984_v49  ;;  %v1986_v13 = vmax.f32 %v1876_v4, 0.0  ;;  %v4535_v6 = vadd.f32 %v6578_v5, %v1655_v2  ;;  %v1657_v1 = vpop.f32.mrb[27].mxu0 }
 0x2dc   : > { %v6669_v11 = vld [vmem:[#allocation3 + $0x90] sm:$0xff] }
 0x2dd   : > { %2019 = vst [vmem:[#allocation3 + $0xa9] sm:$0xff] %v1986_v13  ;;  %v1881_v28 = vadd.f32 %v4535_v6, %v6466_v32 }
 0x2de   : > { %2604 = vmatmul.mubr.f32.gmra.mrb[56].mxu1 %v6669_v11  ;;  %v1660_v58 = vpop.f32.mrb[28].mxu0 }
 0x2df   : > { %2608 = vmatprep.mubr.f32.mxu1 %v1985_v52  ;;  %v1987_v33 = vmax.f32 %v1881_v28, 0.0  ;;  %v4536_v7 = vadd.f32 %v6578_v5, %v1660_v58  ;;  %v1662_v26 = vpop.f32.mrb[29].mxu0 }
 0x2e0   : > { %v6674_v15 = vld [vmem:[#allocation3 + $0x92] sm:$0xff]  ;;  %v6678_v24 = vld [vmem:[#allocation3 + $0x9a] sm:$0xff] }
 0x2e1   : > { %v6676_v49 = vld [vmem:[#allocation3 + $0x98] sm:$0xff]  ;;  %2020 = vst [vmem:[#allocation3 + $0xb1] sm:$0xff] %v1987_v33  ;;  %v1886_v10 = vadd.f32 %v4536_v7, %v6479_v51  ;;  %4022 = vmatprep.mubr.f32.mxu0 %v6674_v15 }
 0x2e2   : > { %2609 = vmatmul.mubr.f32.gmra.mrb[58].mxu1 %v6676_v49  ;;  %v1665_v32 = vpop.f32.mrb[30].mxu0  ;;  %4023 = vmatmul.mubr.f32.gmra.mrb[72].mxu0 %v6678_v24 }
 0x2e3   : > { %2613 = vmatprep.mubr.f32.mxu1 %v1986_v13  ;;  %v1988_v52 = vmax.f32 %v1886_v10, 0.0  ;;  %v4537_v8 = vadd.f32 %v6578_v5, %v1665_v32  ;;  %v1667_v4 = vpop.f32.mrb[31].mxu0 }
 0x2e4   : > { %v6685_v2 = vld [vmem:[#allocation3 + $0xa8] sm:$0xff] }
 0x2e5   : > { %2021 = vst [vmem:[#allocation3 + $0xc1] sm:$0xff] %v1988_v52  ;;  %v1891_v6 = vadd.f32 %v4537_v8, %v6477_v50 }
 0x2e6   : > { %2614 = vmatmul.mubr.f32.gmra.mrb[60].mxu1 %v6685_v2  ;;  %v1670_v51 = vpop.f32.mrb[32].mxu0 }
 0x2e7   : > { %2618 = vmatprep.mubr.f32.mxu1 %v1987_v33  ;;  %v1989_v1 = vmax.f32 %v1891_v6, 0.0  ;;  %v4538_v28 = vadd.f32 %v6578_v5, %v1670_v51  ;;  %v1672_v58 = vpop.f32.mrb[33].mxu0 }
 0x2e8   : > { %v6690_v7 = vld [vmem:[#allocation3 + $0xaa] sm:$0xff]  ;;  %v6694_v26 = vld [vmem:[#allocation3 + $0xb2] sm:$0xff] }
 0x2e9   : > { %v6692_v13 = vld [vmem:[#allocation3 + $0xb0] sm:$0xff]  ;;  %2022 = vst [vmem:[#allocation3 + $0xc9] sm:$0xff] %v1989_v1  ;;  %v1896_v10 = vadd.f32 %v4538_v28, %v6490_v59  ;;  %4025 = vmatprep.mubr.f32.mxu0 %v6690_v7 }
 0x2ea   : > { %2619 = vmatmul.mubr.f32.gmra.mrb[62].mxu1 %v6692_v13  ;;  %v1675_v50 = vpop.f32.mrb[34].mxu0  ;;  %4026 = vmatmul.mubr.f32.gmra.mrb[74].mxu0 %v6694_v26 }
 0x2eb   : > { %2623 = vmatprep.mubr.f32.mxu1 %v1988_v52  ;;  %v1990_v33 = vmax.f32 %v1896_v10, 0.0  ;;  %v4539_v32 = vadd.f32 %v6578_v5, %v1675_v50  ;;  %v1677_v8 = vpop.f32.mrb[35].mxu0 }
 0x2ec   : > { %v6701_v4 = vld [vmem:[#allocation3 + $0xc0] sm:$0xff] }
 0x2ed   : > { %2023 = vst [vmem:[#allocation3 + $0xd9] sm:$0xff] %v1990_v33  ;;  %v1901_v6 = vadd.f32 %v4539_v32, %v6488_v40 }
 0x2ee   : > { %2624 = vmatmul.mubr.f32.gmra.mrb[64].mxu1 %v6701_v4  ;;  %v1680_v59 = vpop.f32.mrb[36].mxu0 }
 0x2ef   : > { %2628 = vmatprep.mubr.f32.mxu1 %v1989_v1  ;;  %v1991_v51 = vmax.f32 %v1901_v6, 0.0  ;;  %v4540_v28 = vadd.f32 %v6578_v5, %v1680_v59  ;;  %v1682_v58 = vpop.f32.mrb[37].mxu0 }
 0x2f0   : > { %v6706_v3 = vld [vmem:[#allocation3 + $0xc2] sm:$0xff]  ;;  %v6710_v10 = vld [vmem:[#allocation3 + $0xca] sm:$0xff] }
 0x2f1   : > { %v6708_v52 = vld [vmem:[#allocation3 + $0xc8] sm:$0xff]  ;;  %2024 = vst [vmem:[#allocation3 + $0xe1] sm:$0xff] %v1991_v51  ;;  %v1906_v50 = vadd.f32 %v4540_v28, %v6501_v35  ;;  %4028 = vmatprep.mubr.f32.mxu0 %v6706_v3 }
 0x2f2   : > { %2629 = vmatmul.mubr.f32.gmra.mrb[66].mxu1 %v6708_v52  ;;  %v1685_v40 = vpop.f32.mrb[38].mxu0  ;;  %4029 = vmatmul.mubr.f32.gmra.mrb[76].mxu0 %v6710_v10 }
 0x2f3   : > { %2633 = vmatprep.mubr.f32.mxu1 %v1990_v33  ;;  %v1992_v1 = vmax.f32 %v1906_v50, 0.0  ;;  %v4541_v32 = vadd.f32 %v6578_v5, %v1685_v40  ;;  %v1687_v8 = vpop.f32.mrb[39].mxu0 }
 0x2f4   : > { %v6717_v6 = vld [vmem:[#allocation3 + $0xd8] sm:$0xff] }
 0x2f5   : > { %2025 = vst [vmem:[#allocation3 + $0xf1] sm:$0xff] %v1992_v1  ;;  %v1911_v59 = vadd.f32 %v4541_v32, %v6499_v36 }
 0x2f6   : > { %2634 = vmatmul.mubr.f32.gmra.mrb[68].mxu1 %v6717_v6  ;;  %v1690_v35 = vpop.f32.mrb[40].mxu0 }
 0x2f7   : > { %2638 = vmatprep.mubr.f32.mxu1 %v1991_v51  ;;  %v1993_v28 = vmax.f32 %v1911_v59, 0.0  ;;  %v4542_v58 = vadd.f32 %v6578_v5, %v1690_v35  ;;  %v1692_v62 = vpop.f32.mrb[41].mxu0 }
 0x2f8   : > { %v6722_v45 = vld [vmem:[#allocation3 + $0xda] sm:$0xff]  ;;  %v6726_v50 = vld [vmem:[#allocation3 + $0xe2] sm:$0xff] }
 0x2f9   : > { %v6724_v33 = vld [vmem:[#allocation3 + $0xe0] sm:$0xff]  ;;  %2026 = vst [vmem:[#allocation3 + $0xf9] sm:$0xff] %v1993_v28  ;;  %v1916_v40 = vadd.f32 %v4542_v58, %v6512_v37  ;;  %4031 = vmatprep.mubr.f32.mxu0 %v6722_v45 }
 0x2fa   : > { %2639 = vmatmul.mubr.f32.gmra.mrb[70].mxu1 %v6724_v33  ;;  %v1695_v36 = vpop.f32.mrb[42].mxu0  ;;  %4032 = vmatmul.mubr.f32.gmra.mrb[78].mxu0 %v6726_v50 }
 0x2fb   : > { %2643 = vmatprep.mubr.f32.mxu1 %v1992_v1  ;;  %v1994_v51 = vmax.f32 %v1916_v40, 0.0  ;;  %v4543_v62 = vadd.f32 %v6578_v5, %v1695_v36  ;;  %v1697_v32 = vpop.f32.mrb[43].mxu0 }
 0x2fc   : > { %v6733_v8 = vld [vmem:[#allocation3 + $0xf0] sm:$0xff] }
 0x2fd   : > { %2027 = vst [vmem:[#allocation3 + $0x109] sm:$0xff] %v1994_v51  ;;  %v1921_v59 = vadd.f32 %v4543_v62, %v6510_v9 }
 0x2fe   : > { %2644 = vmatmul.mubr.f32.gmra.mrb[72].mxu1 %v6733_v8  ;;  %v1700_v37 = vpop.f32.mrb[44].mxu0 }
 0x2ff   : > { %2648 = vmatprep.mubr.f32.mxu1 %v1993_v28  ;;  %v1995_v35 = vmax.f32 %v1921_v59, 0.0  ;;  %v4544_v58 = vadd.f32 %v6578_v5, %v1700_v37  ;;  %v1702_v54 = vpop.f32.mrb[45].mxu0 }
 0x300   : > { %v6738_v16 = vld [vmem:[#allocation3 + $0xf2] sm:$0xff]  ;;  %v6742_v40 = vld [vmem:[#allocation3 + $0xfa] sm:$0xff] }
 0x301   : > { %v6740_v1 = vld [vmem:[#allocation3 + $0xf8] sm:$0xff]  ;;  %2028 = vst [vmem:[#allocation3 + $0x111] sm:$0xff] %v1995_v35  ;;  %v1926_v36 = vadd.f32 %v4544_v58, %v6523_v18  ;;  %4034 = vmatprep.mubr.f32.mxu0 %v6738_v16 }
 0x302   : > { %2649 = vmatmul.mubr.f32.gmra.mrb[74].mxu1 %v6740_v1  ;;  %v1705_v9 = vpop.f32.mrb[46].mxu0  ;;  %4035 = vmatmul.mubr.f32.gmra.mrb[80].mxu0 %v6742_v40 }
 0x303   : > { %2653 = vmatprep.mubr.f32.mxu1 %v1994_v51  ;;  %v1996_v28 = vmax.f32 %v1926_v36, 0.0  ;;  %v4545_v54 = vadd.f32 %v6578_v5, %v1705_v9  ;;  %v1707_v62 = vpop.f32.mrb[47].mxu0 }
 0x304   : > { %v6749_v32 = vld [vmem:[#allocation3 + $0x108] sm:$0xff] }
 0x305   : > { %2029 = vst [vmem:[#allocation3 + $0x121] sm:$0xff] %v1996_v28  ;;  %v1931_v59 = vadd.f32 %v4545_v54, %v6521_v46 }
 0x306   : > { %2654 = vmatmul.mubr.f32.gmra.mrb[76].mxu1 %v6749_v32  ;;  %v1710_v18 = vpop.f32.mrb[48].mxu0 }
 0x307   : > { %2658 = vmatprep.mubr.f32.mxu1 %v1995_v35  ;;  %v1997_v37 = vmax.f32 %v1931_v59, 0.0  ;;  %v4546_v58 = vadd.f32 %v6578_v5, %v1710_v18  ;;  %v1712_v25 = vpop.f32.mrb[49].mxu0 }
 0x308   : > { %v6754_v34 = vld [vmem:[#allocation3 + $0x10a] sm:$0xff]  ;;  %v6758_v36 = vld [vmem:[#allocation3 + $0x112] sm:$0xff] }
 0x309   : > { %v6756_v51 = vld [vmem:[#allocation3 + $0x110] sm:$0xff]  ;;  %2030 = vst [vmem:[#allocation3 + $0x129] sm:$0xff] %v1997_v37  ;;  %v1936_v9 = vadd.f32 %v4546_v58, %v6534_v12  ;;  %4037 = vmatprep.mubr.f32.mxu0 %v6754_v34 }
 0x30a   : > { %2659 = vmatmul.mubr.f32.gmra.mrb[78].mxu1 %v6756_v51  ;;  %v1715_v46 = vpop.f32.mrb[50].mxu0  ;;  %4038 = vmatmul.mubr.f32.gmra.mrb[82].mxu0 %v6758_v36 }
 0x30b   : > { %2663 = vmatprep.mubr.f32.mxu1 %v1996_v28  ;;  %v6764_v35 = vmax.f32 %v1936_v9, 0.0  ;;  %v4547_v25 = vadd.f32 %v6578_v5, %v1715_v46  ;;  %v1717_v54 = vpop.f32.mrb[51].mxu0 }
 0x30c   : > { %v6767_v62 = vld [vmem:[#allocation3 + $0x120] sm:$0xff] }
 0x30d   : > { %7488 = vst [vmem:[#allocation12_spill] sm:$0xff] %v6764_v35  ;;  %2031 = vst [vmem:[#allocation3 + $0x139] sm:$0xff] %v6764_v35  ;;  %v1941_v59 = vadd.f32 %v4547_v25, %v6532_v29 }
 0x30e   : > { %2664 = vmatmul.mubr.f32.gmra.mrb[80].mxu1 %v6767_v62  ;;  %v1720_v12 = vpop.f32.mrb[52].mxu0 }
 0x30f   : > { %2668 = vmatprep.mubr.f32.mxu1 %v1997_v37  ;;  %v6772_v18 = vmax.f32 %v1941_v59, 0.0  ;;  %v4548_v58 = vadd.f32 %v6578_v5, %v1720_v12  ;;  %v1722_v28 = vpop.f32.mrb[53].mxu0 }
 0x310   : > { %v6775_v9 = vld [vmem:[#allocation3 + $0x122] sm:$0xff]  ;;  %v6779_v46 = vld [vmem:[#allocation3 + $0x12a] sm:$0xff] }
 0x311   : > { %7489 = vst [vmem:[#allocation13_spill] sm:$0xff] %v6772_v18  ;;  %v6777_v21 = vld [vmem:[#allocation3 + $0x128] sm:$0xff]  ;;  %2032 = vst [vmem:[#allocation3 + $0x141] sm:$0xff] %v6772_v18  ;;  %v1946_v54 = vadd.f32 %v4548_v58, %v6545_v41  ;;  %4040 = vmatprep.mubr.f32.mxu0 %v6775_v9 }
 0x312   : > { %2669 = vmatmul.mubr.f32.gmra.mrb[82].mxu1 %v6777_v21  ;;  %v1725_v29 = vpop.f32.mrb[54].mxu0  ;;  %4041 = vmatmul.mubr.f32.gmra.mrb[84].mxu0 %v6779_v46 }
 0x313   : > { %2673 = vmatprep.mubr.f32.mxu1 %v6764_v35  ;;  %v6787_v37 = vmax.f32 %v1946_v54, 0.0  ;;  %v4549_v25 = vadd.f32 %v6578_v5, %v1725_v29  ;;  %v1727_v59 = vpop.f32.mrb[55].mxu0 }
 0x314   : > { %v6790_v12 = vld [vmem:[#allocation3 + $0x138] sm:$0xff] }
 0x315   : > { %7490 = vst [vmem:[#allocation14_spill] sm:$0xff] %v6787_v37  ;;  %2033 = vst [vmem:[#allocation3 + $0x151] sm:$0xff] %v6787_v37  ;;  %v1951_v41 = vadd.f32 %v4549_v25, %v6543_v14 }
 0x316   : > { %2674 = vmatmul.mubr.f32.gmra.mrb[84].mxu1 %v6790_v12  ;;  %v1730_v58 = vpop.f32.mrb[56].mxu0 }
 0x317   : > { %2678 = vmatprep.mubr.f32.mxu1 %v6772_v18  ;;  %v6796_v28 = vmax.f32 %v1951_v41, 0.0  ;;  %v4550_v35 = vadd.f32 %v6578_v5, %v1730_v58  ;;  %v1732_v54 = vpop.f32.mrb[57].mxu0 }
 0x318   : > { %v6799_v20 = vld [vmem:[#allocation3 + $0x13a] sm:$0xff]  ;;  %v6803_v59 = vld [vmem:[#allocation3 + $0x142] sm:$0xff] }
 0x319   : > { %7491 = vst [vmem:[#allocation15_spill] sm:$0xff] %v6796_v28  ;;  %7492 = vst [vmem:[#allocation16_spill] sm:$0xff] %v6799_v20  ;;  %v6801_v29 = vld [vmem:[#allocation3 + $0x140] sm:$0xff]  ;;  %v1956_v14 = vadd.f32 %v4550_v35, %v6556_v22  ;;  %4043 = vmatprep.mubr.f32.mxu0 %v6799_v20 }
 0x31a   : > { %7493 = vst [vmem:[#allocation17_spill] sm:$0xff] %v6803_v59  ;;  %2034 = vst [vmem:[#allocation3 + $0x159] sm:$0xff] %v6796_v28  ;;  %2679 = vmatmul.mubr.f32.gmra.mrb[86].mxu1 %v6801_v29  ;;  %v1735_v25 = vpop.f32.mrb[58].mxu0  ;;  %4044 = vmatmul.mubr.f32.gmra.mrb[86].mxu0 %v6803_v59 }
 0x31b   : > { %2683 = vmatprep.mubr.f32.mxu1 %v6787_v37  ;;  %v6811_v41 = vmax.f32 %v1956_v14, 0.0  ;;  %v4551_v58 = vadd.f32 %v6578_v5, %v1735_v25  ;;  %v1737_v54 = vpop.f32.mrb[59].mxu0 }
 0x31c   : > { %v6814_v18 = vld [vmem:[#allocation3 + $0x150] sm:$0xff] }
 0x31d   : > { %2035 = vst [vmem:[#allocation3 + $0x169] sm:$0xff] %v6811_v41  ;;  %v1961_v22 = vadd.f32 %v4551_v58, %v6554_v47 }
 0x31e   : > { %2684 = vmatmul.mubr.f32.gmra.mrb[88].mxu1 %v6814_v18  ;;  %v1740_v35 = vpop.f32.mrb[60].mxu0 }
 0x31f   : > { %2688 = vmatprep.mubr.f32.mxu1 %v6796_v28  ;;  %v6820_v20 = vmax.f32 %v1961_v22, 0.0  ;;  %v4552_v37 = vadd.f32 %v6578_v5, %v1740_v35  ;;  %v1742_v14 = vpop.f32.mrb[61].mxu0 }
 0x321   : > { %v6823_v59 = vld [vmem:[#allocation3 + $0x158] sm:$0xff]  ;;  %2036 = vst [vmem:[#allocation3 + $0x171] sm:$0xff] %v6820_v20  ;;  %v6827_v25 = vadd.f32 %v4552_v37, %v6567_v56  ;;  %v2392_v37 = vld [vmem:[%s7447_s3 + $0x200] sm:$0xff] }
 0x322   : > { %2689 = vmatmul.mubr.f32.gmra.mrb[90].mxu1 %v6823_v59  ;;  %v1745_v47 = vpop.f32.mrb[62].mxu0 }
 0x323   : > { %2693 = vmatprep.mubr.f32.mxu1 %v6811_v41  ;;  %v7476_v58 = vmax.f32 %v6827_v25, 0.0  ;;  %v4553_v54 = vadd.f32 %v6578_v5, %v1745_v47  ;;  %v1747_v22 = vpop.f32.mrb[63].mxu0  ;;  %v2393_v5 = vld [vmem:[%s7447_s3 + $0x208] sm:$0xff] }
 0x324   : > { %v6833_v28 = vld [vmem:[#allocation3 + $0x168] sm:$0xff]  ;;  %v4379_v47 = vpack.c.bf16 %v2393_v5, %v2392_v37  ;;  %v2397_v37 = vld [vmem:[%s7447_s3 + $0x228] sm:$0xff] }
 0x325   : > { %2037 = vst [vmem:[#allocation3 + $0x181] sm:$0xff] %v7476_v58  ;;  %v6838_v35 = vadd.f32 %v4553_v54, %v6565_v23  ;;  %v2103_v23 = vld [vmem:[#allocation3 + $0x2] sm:$0xff]  ;;  %v2104_v58 = vld [vmem:[#allocation3 + $0xa] sm:$0xff] }
 0x326   : > { %2694 = vmatmul.mubr.f32.gmra.mrb[92].mxu1 %v6833_v28  ;;  %v2394_v54 = vld [vmem:[%s7447_s3 + $0x210] sm:$0xff]  ;;  %v2395_v22 = vld [vmem:[%s7447_s3 + $0x218] sm:$0xff] }
 0x327   : > { %7494 = vst [vmem:[#allocation18_spill] sm:$0xff] %v6838_v35  ;;  %2698 = vmatprep.mubr.f32.mxu1 %v6820_v20  ;;  %v7477_v56 = vmax.f32 %v6838_v35, 0.0  ;;  %v7495_v35 = vmov 0.0|0.0  }
 0x328   : > { %v6849_v14 = vld [vmem:[#allocation3 + $0x170] sm:$0xff] }
 0x329   : > { %2038 = vst [vmem:[#allocation3 + $0x189] sm:$0xff] %v7477_v56  ;;  %v4382_v56 = vpack.c.bf16 %v2395_v22, %v2394_v54  ;;  %v6888_v54 = vld [vmem:[#allocation3 + $0x22] sm:$0xff] }
 0x32a   : > { %2699 = vmatmul.mubr.f32.gmra.mrb[94].mxu1 %v6849_v14  ;;  %v2402_v22 = vld [vmem:[%s7447_s3 + $0x250] sm:$0xff] }
 0x32b   : > { %2768 = vmatprep.mubr.f32.mxu1 %v6595_v17  ;;  %v2396_v17 = vld [vmem:[%s7447_s3 + $0x220] sm:$0xff] }
 0x32c   : > { %v4385_v5 = vpack.c.bf16 %v2397_v37, %v2396_v17  ;;  %v2403_v17 = vld [vmem:[%s7447_s3 + $0x258] sm:$0xff] }
 0x32d   : > { %v4394_v37 = vpack.c.bf16 %v2403_v17, %v2402_v22  ;;  %v2419_v22 = vld [vmem:[%s7447_s3 + $0x2d8] sm:$0xff]  ;;  %v2421_v17 = vld [vmem:[%s7447_s3 + $0x2e8] sm:$0xff] }
 0x32e   : > { %2769 = vmatmul.mubr.f32.vlgmr.msra.gmra.mrb[32].mxu1 %v2103_v23  ;;  %v2399_v23 = vld [vmem:[%s7447_s3 + $0x238] sm:$0xff] }
 0x32f   : > { %2773 = vmatprep.mubr.f32.mxu1 %v6600_v42  ;;  %4380 = vmatpush1.bf16.msra.mxu1 %v4379_v47  ;;  %v2398_v42 = vld [vmem:[%s7447_s3 + $0x230] sm:$0xff] }
 0x330   : > { %4381 = vmatprep.subr.bf16.mxu1 %v7495_v35  ;;  %v6877_v47 = vld [vmem:[#allocation3 + $0x1a] sm:$0xff] }
 0x332   : > { %2774 = vmatmul.mubr.f32.gmra.mrb[34].mxu1 %v2104_v58  ;;  %v2400_v58 = vld [vmem:[%s7447_s3 + $0x240] sm:$0xff] }
 0x333   : > { %2778 = vmatprep.mubr.f32.mxu1 %v6605_v0  ;;  %4383 = vmatpush1.bf16.msra.mxu1 %v4382_v56  ;;  %v4388_v0 = vpack.c.bf16 %v2399_v23, %v2398_v42  ;;  %v2401_v56 = vld [vmem:[%s7447_s3 + $0x248] sm:$0xff]  ;;  %v2407_v42 = vld [vmem:[%s7447_s3 + $0x278] sm:$0xff] }
 0x334   : > { %4384 = vmatprep.subr.bf16.mxu1 %v7495_v35  ;;  %v2409_v23 = vld [vmem:[%s7447_s3 + $0x288] sm:$0xff] }
 0x336   : > { %2779 = vmatmul.mubr.f32.gmra.mrb[36].mxu1 %v6877_v47 }
 0x337   : > { %2783 = vmatprep.mubr.f32.mxu1 %v6612_v30  ;;  %4386 = vmatpush1.bf16.msra.mxu1 %v4385_v5  ;;  %v4391_v30 = vpack.c.bf16 %v2401_v56, %v2400_v58  ;;  %v2405_v5 = vld [vmem:[%s7447_s3 + $0x268] sm:$0xff]  ;;  %v2415_v56 = vld [vmem:[%s7447_s3 + $0x2b8] sm:$0xff] }
 0x338   : > { %4387 = vmatprep.subr.bf16.mxu1 %v7495_v35  ;;  %v2413_v58 = vld [vmem:[%s7447_s3 + $0x2a8] sm:$0xff] }
 0x33a   : > { %2784 = vmatmul.mubr.f32.gmra.mrb[38].mxu1 %v6888_v54 }
 0x33b   : > { %2788 = vmatprep.mubr.f32.mxu1 %v6621_v55  ;;  %4389 = vmatpush1.bf16.msra.mxu1 %v4388_v0  ;;  %v2404_v55 = vld [vmem:[%s7447_s3 + $0x260] sm:$0xff]  ;;  %v2411_v0 = vld [vmem:[%s7447_s3 + $0x298] sm:$0xff] }
 0x33c   : > { %4390 = vmatprep.subr.bf16.mxu1 %v7495_v35 }
 0x33e   : > { %2789 = vmatmul.mubr.f32.gmra.mrb[40].mxu1 %v6610_v27  ;;  %v4397_v27 = vpack.c.bf16 %v2405_v5, %v2404_v55 }
 0x33f   : > { %2793 = vmatprep.mubr.f32.mxu1 %v6628_v38  ;;  %4392 = vmatpush1.bf16.msra.mxu1 %v4391_v30  ;;  %v2406_v38 = vld [vmem:[%s7447_s3 + $0x270] sm:$0xff]  ;;  %v2417_v30 = vld [vmem:[%s7447_s3 + $0x2c8] sm:$0xff] }
 0x340   : > { %4393 = vmatprep.subr.bf16.mxu1 %v7495_v35 }
 0x342   : > { %2794 = vmatmul.mubr.f32.gmra.mrb[42].mxu1 %v6614_v63  ;;  %v4400_v63 = vpack.c.bf16 %v2407_v42, %v2406_v38  ;;  %v2429_v38 = vld [vmem:[%s7447_s3 + $0x328] sm:$0xff]  ;;  %v2168_v42 = vld [vmem:[#allocation3 + $0x21] sm:$0xff] }
 0x343   : > { %2798 = vmatprep.mubr.f32.mxu1 %v6637_v48  ;;  %4395 = vmatpush1.bf16.msra.mxu1 %v4394_v37  ;;  %v2408_v48 = vld [vmem:[%s7447_s3 + $0x280] sm:$0xff]  ;;  %v2423_v37 = vld [vmem:[%s7447_s3 + $0x2f8] sm:$0xff] }
 0x344   : > { %4396 = vmatprep.subr.bf16.mxu1 %v7495_v35 }
 0x346   : > { %2799 = vmatmul.mubr.f32.gmra.mrb[44].mxu1 %v6626_v60  ;;  %v4403_v60 = vpack.c.bf16 %v2409_v23, %v2408_v48  ;;  %v2431_v23 = vld [vmem:[%s7447_s3 + $0x338] sm:$0xff] }
 0x347   : > { %2803 = vmatprep.mubr.f32.mxu1 %v6644_v43  ;;  %4398 = vmatpush1.bf16.msra.mxu1 %v4397_v27  ;;  %v2410_v43 = vld [vmem:[%s7447_s3 + $0x290] sm:$0xff] }
 0x348   : > { %4399 = vmatprep.subr.bf16.mxu1 %v7495_v35 }
 0x34a   : > { %2804 = vmatmul.mubr.f32.gmra.mrb[46].mxu1 %v6630_v61  ;;  %v4406_v61 = vpack.c.bf16 %v2411_v0, %v2410_v43  ;;  %v2202_v0 = vld [vmem:[#allocation3 + $0x3a] sm:$0xff] }
 0x34b   : > { %2808 = vmatprep.mubr.f32.mxu1 %v6653_v44  ;;  %4401 = vmatpush1.bf16.msra.mxu1 %v4400_v63  ;;  %v2412_v44 = vld [vmem:[%s7447_s3 + $0x2a0] sm:$0xff] }
 0x34c   : > { %4402 = vmatprep.subr.bf16.mxu1 %v7495_v35  ;;  %v2201_v63 = vld [vmem:[#allocation3 + $0x32] sm:$0xff] }
 0x34e   : > { %2809 = vmatmul.mubr.f32.gmra.mrb[48].mxu1 %v6642_v39  ;;  %v4409_v39 = vpack.c.bf16 %v2413_v58, %v2412_v44  ;;  %v2432_v58 = vld [vmem:[%s7447_s3 + $0x340] sm:$0xff] }
 0x34f   : > { %2813 = vmatprep.mubr.f32.mxu1 %v6660_v19  ;;  %4404 = vmatpush1.bf16.msra.mxu1 %v4403_v60  ;;  %v2414_v19 = vld [vmem:[%s7447_s3 + $0x2b0] sm:$0xff]  ;;  %v7082_v60 = vld [vmem:[#allocation3 + $0x31] sm:$0xff] }
 0x350   : > { %4405 = vmatprep.subr.bf16.mxu1 %v7495_v35 }
 0x352   : > { %2814 = vmatmul.mubr.f32.gmra.mrb[50].mxu1 %v6646_v31  ;;  %v4412_v31 = vpack.c.bf16 %v2415_v56, %v2414_v19  ;;  %v7096_v19 = vld [vmem:[#allocation3 + $0x39] sm:$0xff]  ;;  %v2203_v56 = vld [vmem:[#allocation3 + $0x4a] sm:$0xff] }
 0x353   : > { %2818 = vmatprep.mubr.f32.mxu1 %v6669_v11  ;;  %4407 = vmatpush1.bf16.msra.mxu1 %v4406_v61  ;;  %v2416_v11 = vld [vmem:[%s7447_s3 + $0x2c0] sm:$0xff] }
 0x354   : > { %4408 = vmatprep.subr.bf16.mxu1 %v7495_v35 }
 0x356   : > { %2819 = vmatmul.mubr.f32.gmra.mrb[52].mxu1 %v6658_v57  ;;  %v4415_v57 = vpack.c.bf16 %v2417_v30, %v2416_v11  ;;  %v2434_v11 = vld [vmem:[%s7447_s3 + $0x350] sm:$0xff]  ;;  %v2435_v30 = vld [vmem:[%s7447_s3 + $0x358] sm:$0xff] }
 0x357   : > { %2823 = vmatprep.mubr.f32.mxu1 %v6676_v49  ;;  %4410 = vmatpush1.bf16.msra.mxu1 %v4409_v39  ;;  %v2418_v49 = vld [vmem:[%s7447_s3 + $0x2d0] sm:$0xff]  ;;  %v2433_v39 = vld [vmem:[%s7447_s3 + $0x348] sm:$0xff] }
 0x358   : > { %4411 = vmatprep.subr.bf16.mxu1 %v7495_v35 }
 0x35a   : > { %2824 = vmatmul.mubr.f32.gmra.mrb[54].mxu1 %v6662_v53  ;;  %v4418_v53 = vpack.c.bf16 %v2419_v22, %v2418_v49  ;;  %v2204_v22 = vld [vmem:[#allocation3 + $0x52] sm:$0xff] }
 0x35b   : > { %2828 = vmatprep.mubr.f32.mxu1 %v6685_v2  ;;  %4413 = vmatpush1.bf16.msra.mxu1 %v4412_v31  ;;  %v2420_v2 = vld [vmem:[%s7447_s3 + $0x2e0] sm:$0xff]  ;;  %v4439_v31 = vpack.c.bf16 %v2433_v39, %v2432_v58  ;;  %v2208_v58 = vld [vmem:[#allocation3 + $0x82] sm:$0xff] }
 0x35c   : > { %4414 = vmatprep.subr.bf16.mxu1 %v7495_v35 }
 0x35e   : > { %2829 = vmatmul.mubr.f32.gmra.mrb[56].mxu1 %v6674_v15  ;;  %v4421_v15 = vpack.c.bf16 %v2421_v17, %v2420_v2  ;;  %v4442_v2 = vpack.c.bf16 %v2435_v30, %v2434_v11  ;;  %v2436_v17 = vld [vmem:[%s7447_s3 + $0x360] sm:$0xff]  ;;  %v2445_v11 = vld [vmem:[%s7447_s3 + $0x3a8] sm:$0xff]  ;;  %v7168_v30 = vld [vmem:[#allocation3 + $0x81] sm:$0xff] }
 0x35f   : > { %2833 = vmatprep.mubr.f32.mxu1 %v6692_v13  ;;  %4416 = vmatpush1.bf16.msra.mxu1 %v4415_v57  ;;  %v2422_v13 = vld [vmem:[%s7447_s3 + $0x2f0] sm:$0xff]  ;;  %v7106_v57 = vld [vmem:[#allocation3 + $0x49] sm:$0xff] }
 0x360   : > { %4417 = vmatprep.subr.bf16.mxu1 %v7495_v35 }
 0x362   : > { %2834 = vmatmul.mubr.f32.gmra.mrb[58].mxu1 %v6678_v24  ;;  %v4424_v24 = vpack.c.bf16 %v2423_v37, %v2422_v13  ;;  %v7120_v13 = vld [vmem:[#allocation3 + $0x51] sm:$0xff]  ;;  %v2205_v37 = vld [vmem:[#allocation3 + $0x62] sm:$0xff] }
 0x363   : > { %2838 = vmatprep.mubr.f32.mxu1 %v6701_v4  ;;  %4419 = vmatpush1.bf16.msra.mxu1 %v4418_v53  ;;  %v7023_v4 = vld [vmem:[#allocation3 + $0x152] sm:$0xff] }
 0x364   : > { %4420 = vmatprep.subr.bf16.mxu1 %v7495_v35 }
 0x366   : > { %2839 = vmatmul.mubr.f32.gmra.mrb[60].mxu1 %v6690_v7  ;;  %v7496_v7 = vld [vmem:[#allocation16_spill] sm:$0xff] }
 0x367   : > { %2843 = vmatprep.mubr.f32.mxu1 %v6708_v52  ;;  %4422 = vmatpush1.bf16.msra.mxu1 %v4421_v15  ;;  %v2437_v15 = vld [vmem:[%s7447_s3 + $0x368] sm:$0xff] }
 0x368   : > { %4423 = vmatprep.subr.bf16.mxu1 %v7495_v35 }
 0x36a   : > { %2844 = vmatmul.mubr.f32.gmra.mrb[62].mxu1 %v6694_v26 }
 0x36b   : > { %2848 = vmatprep.mubr.f32.mxu1 %v6717_v6  ;;  %4425 = vmatpush1.bf16.msra.mxu1 %v4424_v24  ;;  %v7031_v6 = vld [vmem:[#allocation3 + $0x15a] sm:$0xff]  ;;  %v4445_v24 = vpack.c.bf16 %v2437_v15, %v2436_v17  ;;  %v2447_v15 = vld [vmem:[%s7447_s3 + $0x3b8] sm:$0xff] }
 0x36c   : > { %4426 = vmatprep.subr.bf16.mxu1 %v7495_v35  ;;  %v2446_v17 = vld [vmem:[%s7447_s3 + $0x3b0] sm:$0xff] }
 0x36e   : > { %2849 = vmatmul.mubr.f32.gmra.mrb[64].mxu1 %v6706_v3 }
 0x36f   : > { %2853 = vmatprep.mubr.f32.mxu1 %v6724_v33  ;;  %v7034_v33 = vld [vmem:[#allocation3 + $0x180] sm:$0xff] }
 0x372   : > { %2854 = vmatmul.mubr.f32.gmra.mrb[66].mxu1 %v6710_v10 }
 0x373   : > { %2858 = vmatprep.mubr.f32.mxu1 %v6733_v8  ;;  %v7037_v8 = vld [vmem:[#allocation3 + $0x16a] sm:$0xff] }
 0x376   : > { %2859 = vmatmul.mubr.f32.gmra.mrb[68].mxu1 %v6722_v45 }
 0x377   : > { %2863 = vmatprep.mubr.f32.mxu1 %v6740_v1 }
 0x37a   : > { %2864 = vmatmul.mubr.f32.gmra.mrb[70].mxu1 %v6726_v50 }
 0x37b   : > { %2868 = vmatprep.mubr.f32.mxu1 %v6749_v32  ;;  %v7042_v32 = vld [vmem:[#allocation3 + $0x188] sm:$0xff] }
 0x37e   : > { %2869 = vmatmul.mubr.f32.gmra.mrb[72].mxu1 %v6738_v16 }
 0x37f   : > { %2873 = vmatprep.mubr.f32.mxu1 %v6756_v51 }
 0x382   : > { %2874 = vmatmul.mubr.f32.gmra.mrb[74].mxu1 %v6742_v40 }
 0x383   : > { %2878 = vmatprep.mubr.f32.mxu1 %v6767_v62  ;;  %v2424_v62 = vld [vmem:[%s7447_s3 + $0x300] sm:$0xff] }
 0x386   : > { %2879 = vmatmul.mubr.f32.gmra.mrb[76].mxu1 %v6754_v34 }
 0x387   : > { %2883 = vmatprep.mubr.f32.mxu1 %v6777_v21  ;;  %v7497_v21 = vld [vmem:[#allocation17_spill] sm:$0xff] }
 0x38a   : > { %2884 = vmatmul.mubr.f32.gmra.mrb[78].mxu1 %v6758_v36 }
 0x38b   : > { %2888 = vmatprep.mubr.f32.mxu1 %v6790_v12  ;;  %v7053_v12 = vld [vmem:[#allocation3 + $0x172] sm:$0xff] }
 0x38e   : > { %2889 = vmatmul.mubr.f32.gmra.mrb[80].mxu1 %v6775_v9 }
 0x38f   : > { %2893 = vmatprep.mubr.f32.mxu1 %v6801_v29  ;;  %v2426_v29 = vld [vmem:[%s7447_s3 + $0x310] sm:$0xff] }
 0x392   : > { %2894 = vmatmul.mubr.f32.gmra.mrb[82].mxu1 %v6779_v46 }
 0x393   : > { %2898 = vmatprep.mubr.f32.mxu1 %v6814_v18  ;;  %v2425_v18 = vld [vmem:[%s7447_s3 + $0x308] sm:$0xff] }
 0x395   : > { %v7015_v3 = vpop.f32.mrb[64].mxu0 }
 0x396   : > { %2899 = vmatmul.mubr.f32.gmra.mrb[84].mxu1 %v7496_v7  ;;  %v7018_v26 = vpop.f32.mrb[65].mxu0 }
 0x397   : > { %2903 = vmatprep.mubr.f32.mxu1 %v6823_v59  ;;  %v2427_v59 = vld [vmem:[%s7447_s3 + $0x318] sm:$0xff] }
 0x398   : > { %v4430_v27 = vpack.c.bf16 %v2427_v59, %v2426_v29  ;;  %v2206_v59 = vld [vmem:[#allocation3 + $0x6a] sm:$0xff] }
 0x39a   : > { %2904 = vmatmul.mubr.f32.gmra.mrb[86].mxu1 %v7497_v21 }
 0x39b   : > { %2908 = vmatprep.mubr.f32.mxu1 %v6833_v28  ;;  %v4427_v28 = vpack.c.bf16 %v2425_v18, %v2424_v62  ;;  %v2438_v62 = vld [vmem:[%s7447_s3 + $0x370] sm:$0xff]  ;;  %v2439_v18 = vld [vmem:[%s7447_s3 + $0x378] sm:$0xff] }
 0x39d   : > { %v7025_v52 = vpop.f32.mrb[66].mxu0 }
 0x39e   : > { %2909 = vmatmul.mubr.f32.gmra.mrb[88].mxu1 %v7023_v4  ;;  %v7028_v10 = vpop.f32.mrb[67].mxu0 }
 0x39f   : > { %2913 = vmatprep.mubr.f32.mxu1 %v6849_v14  ;;  %v2167_v14 = vld [vmem:[#allocation3 + $0x19] sm:$0xff] }
 0x3a2   : > { %2914 = vmatmul.mubr.f32.gmra.mrb[90].mxu1 %v7031_v6 }
 0x3a3   : > { %2918 = vmatprep.mubr.f32.mxu1 %v7034_v33 }
 0x3a5   : > { %v7039_v1 = vpop.f32.mrb[68].mxu0 }
 0x3a6   : > { %2919 = vmatmul.mubr.f32.gmra.mrb[92].mxu1 %v7037_v8  ;;  %v7044_v51 = vpop.f32.mrb[69].mxu0 }
 0x3a7   : > { %2923 = vmatprep.mubr.f32.mxu1 %v7042_v32 }
 0x3aa   : > { %2924 = vmatmul.mubr.f32.gmra.mrb[94].mxu1 %v7053_v12 }
 0x3ab   : > { %2993 = vmatprep.mubr.f32.mxu1 %v6877_v47  ;;  %v2428_v47 = vld [vmem:[%s7447_s3 + $0x320] sm:$0xff] }
 0x3ac   : > { %v4433_v48 = vpack.c.bf16 %v2429_v38, %v2428_v47  ;;  %v2440_v47 = vld [vmem:[%s7447_s3 + $0x380] sm:$0xff]  ;;  %v2441_v38 = vld [vmem:[%s7447_s3 + $0x388] sm:$0xff] }
 0x3ad   : > { %v7063_v55 = vpop.f32.mrb[70].mxu0 }
 0x3ae   : > { %2994 = vmatmul.mubr.f32.vlgmr.msra.gmra.mrb[32].mxu1 %v2167_v14  ;;  %v7065_v5 = vpop.f32.mrb[71].mxu0 }
 0x3af   : > { %2998 = vmatprep.mubr.f32.mxu1 %v6888_v54  ;;  %4428 = vmatpush1.bf16.msra.mxu1 %v4427_v28  ;;  %v2430_v54 = vld [vmem:[%s7447_s3 + $0x330] sm:$0xff] }
 0x3b0   : > { %4429 = vmatprep.subr.bf16.mxu1 %v7495_v35  ;;  %v4436_v44 = vpack.c.bf16 %v2431_v23, %v2430_v54  ;;  %v7130_v28 = vld [vmem:[#allocation3 + $0x61] sm:$0xff] }
 0x3b1   : > { %v2442_v54 = vld [vmem:[%s7447_s3 + $0x390] sm:$0xff]  ;;  %v2443_v23 = vld [vmem:[%s7447_s3 + $0x398] sm:$0xff] }
 0x3b2   : > { %2999 = vmatmul.mubr.f32.gmra.mrb[34].mxu1 %v2168_v42  ;;  %v7144_v42 = vld [vmem:[#allocation3 + $0x69] sm:$0xff] }
 0x3b3   : > { %3003 = vmatprep.mubr.f32.mxu1 %v2201_v63  ;;  %4431 = vmatpush1.bf16.msra.mxu1 %v4430_v27  ;;  %v4448_v27 = vpack.c.bf16 %v2439_v18, %v2438_v62  ;;  %v2207_v63 = vld [vmem:[#allocation3 + $0x7a] sm:$0xff] }
 0x3b4   : > { %4432 = vmatprep.subr.bf16.mxu1 %v7495_v35  ;;  %v2210_v62 = vld [vmem:[#allocation3 + $0x9a] sm:$0xff] }
 0x3b5   : > { %v7084_v43 = vpop.f32.mrb[72].mxu0 }
 0x3b6   : > { %3004 = vmatmul.mubr.f32.gmra.mrb[36].mxu1 %v7082_v60  ;;  %v7087_v61 = vpop.f32.mrb[73].mxu0 }
 0x3b7   : > { %3008 = vmatprep.mubr.f32.mxu1 %v2202_v0  ;;  %4434 = vmatpush1.bf16.msra.mxu1 %v4433_v48  ;;  %v4451_v48 = vpack.c.bf16 %v2441_v38, %v2440_v47  ;;  %v7154_v0 = vld [vmem:[#allocation3 + $0x79] sm:$0xff] }
 0x3b8   : > { %4435 = vmatprep.subr.bf16.mxu1 %v7495_v35  ;;  %v2449_v47 = vld [vmem:[%s7447_s3 + $0x3c8] sm:$0xff] }
 0x3b9   : > { %v7192_v38 = vld [vmem:[#allocation3 + $0x99] sm:$0xff] }
 0x3ba   : > { %3009 = vmatmul.mubr.f32.gmra.mrb[38].mxu1 %v7096_v19 }
 0x3bb   : > { %3013 = vmatprep.mubr.f32.mxu1 %v2203_v56  ;;  %4437 = vmatpush1.bf16.msra.mxu1 %v4436_v44  ;;  %v4454_v56 = vpack.c.bf16 %v2443_v23, %v2442_v54  ;;  %v2450_v54 = vld [vmem:[%s7447_s3 + $0x3d0] sm:$0xff]  ;;  %v2451_v23 = vld [vmem:[%s7447_s3 + $0x3d8] sm:$0xff] }
 0x3bc   : > { %4438 = vmatprep.subr.bf16.mxu1 %v7495_v35 }
 0x3bd   : > { %v7108_v49 = vpop.f32.mrb[74].mxu0 }
 0x3be   : > { %3014 = vmatmul.mubr.f32.gmra.mrb[40].mxu1 %v7106_v57  ;;  %v7111_v53 = vpop.f32.mrb[75].mxu0 }
 0x3bf   : > { %3018 = vmatprep.mubr.f32.mxu1 %v2204_v22  ;;  %4440 = vmatpush1.bf16.msra.mxu1 %v4439_v31  ;;  %v2444_v31 = vld [vmem:[%s7447_s3 + $0x3a0] sm:$0xff] }
 0x3c0   : > { %4441 = vmatprep.subr.bf16.mxu1 %v7495_v35  ;;  %v2209_v22 = vld [vmem:[#allocation3 + $0x92] sm:$0xff] }
 0x3c2   : > { %3019 = vmatmul.mubr.f32.gmra.mrb[42].mxu1 %v7120_v13 }
 0x3c3   : > { %3023 = vmatprep.mubr.f32.mxu1 %v2205_v37  ;;  %4443 = vmatpush1.bf16.msra.mxu1 %v4442_v2  ;;  %v4457_v2 = vpack.c.bf16 %v2445_v11, %v2444_v31  ;;  %v7178_v37 = vld [vmem:[#allocation3 + $0x91] sm:$0xff] }
 0x3c4   : > { %4444 = vmatprep.subr.bf16.mxu1 %v7495_v35  ;;  %v2212_v31 = vld [vmem:[#allocation3 + $0xb2] sm:$0xff] }
 0x3c5   : > { %v7132_v29 = vpop.f32.mrb[76].mxu0 }
 0x3c6   : > { %3024 = vmatmul.mubr.f32.gmra.mrb[44].mxu1 %v7130_v28  ;;  %v7135_v14 = vpop.f32.mrb[77].mxu0 }
 0x3c7   : > { %3028 = vmatprep.mubr.f32.mxu1 %v2206_v59  ;;  %4446 = vmatpush1.bf16.msra.mxu1 %v4445_v24  ;;  %v4460_v59 = vpack.c.bf16 %v2447_v15, %v2446_v17  ;;  %v2453_v17 = vld [vmem:[%s7447_s3 + $0x3e8] sm:$0xff] }
 0x3c8   : > { %4447 = vmatprep.subr.bf16.mxu1 %v7495_v35  ;;  %v7216_v15 = vld [vmem:[#allocation3 + $0xb1] sm:$0xff] }
 0x3ca   : > { %3029 = vmatmul.mubr.f32.gmra.mrb[46].mxu1 %v7144_v42 }
 0x3cb   : > { %3033 = vmatprep.mubr.f32.mxu1 %v2207_v63  ;;  %4449 = vmatpush1.bf16.msra.mxu1 %v4448_v27  ;;  %v2448_v27 = vld [vmem:[%s7447_s3 + $0x3c0] sm:$0xff] }
 0x3cc   : > { %4450 = vmatprep.subr.bf16.mxu1 %v7495_v35  ;;  %v2211_v63 = vld [vmem:[#allocation3 + $0xaa] sm:$0xff] }
 0x3cd   : > { %v7156_v44 = vpop.f32.mrb[78].mxu0 }
 0x3ce   : > { %3034 = vmatmul.mubr.f32.gmra.mrb[48].mxu1 %v7154_v0  ;;  %v7159_v39 = vpop.f32.mrb[79].mxu0 }
 0x3cf   : > { %3038 = vmatprep.mubr.f32.mxu1 %v2208_v58  ;;  %4452 = vmatpush1.bf16.msra.mxu1 %v4451_v48  ;;  %v4463_v48 = vpack.c.bf16 %v2449_v47, %v2448_v27  ;;  %v7202_v58 = vld [vmem:[#allocation3 + $0xa9] sm:$0xff]  ;;  %v2454_v27 = vld [vmem:[%s7447_s3 + $0x3f0] sm:$0xff] }
 0x3d0   : > { %4453 = vmatprep.subr.bf16.mxu1 %v7495_v35  ;;  %v2455_v47 = vld [vmem:[%s7447_s3 + $0x3f8] sm:$0xff] }
 0x3d2   : > { %3039 = vmatmul.mubr.f32.gmra.mrb[50].mxu1 %v7168_v30 }
 0x3d3   : > { %3043 = vmatprep.mubr.f32.mxu1 %v2209_v22  ;;  %4455 = vmatpush1.bf16.msra.mxu1 %v4454_v56  ;;  %v4466_v22 = vpack.c.bf16 %v2451_v23, %v2450_v54  ;;  %v2214_v54 = vld [vmem:[#allocation3 + $0xca] sm:$0xff] }
 0x3d4   : > { %4456 = vmatprep.subr.bf16.mxu1 %v7495_v35 }
 0x3d5   : > { %v7180_v24 = vpop.f32.mrb[80].mxu0 }
 0x3d6   : > { %3044 = vmatmul.mubr.f32.gmra.mrb[52].mxu1 %v7178_v37  ;;  %v7183_v18 = vpop.f32.mrb[81].mxu0 }
 0x3d7   : > { %3048 = vmatprep.mubr.f32.mxu1 %v2210_v62  ;;  %4458 = vmatpush1.bf16.msra.mxu1 %v4457_v2  ;;  %v2452_v2 = vld [vmem:[%s7447_s3 + $0x3e0] sm:$0xff]  ;;  %v2213_v62 = vld [vmem:[#allocation3 + $0xc2] sm:$0xff] }
 0x3d8   : > { %4459 = vmatprep.subr.bf16.mxu1 %v7495_v35 }
 0x3da   : > { %3049 = vmatmul.mubr.f32.gmra.mrb[54].mxu1 %v7192_v38 }
 0x3db   : > { %3053 = vmatprep.mubr.f32.mxu1 %v2211_v63  ;;  %4461 = vmatpush1.bf16.msra.mxu1 %v4460_v59  ;;  %v4469_v59 = vpack.c.bf16 %v2453_v17, %v2452_v2  ;;  %v7226_v63 = vld [vmem:[#allocation3 + $0xc1] sm:$0xff]  ;;  %v7498_v2 = vld [vmem:[#allocation4_spill] sm:$0xff]  ;;  %v7239_v17 = vld [vmem:[#allocation3 + $0xd9] sm:$0xff] }
 0x3dc   : > { %4462 = vmatprep.subr.bf16.mxu1 %v7495_v35 }
 0x3dd   : > { %v7204_v56 = vpop.f32.mrb[82].mxu0 }
 0x3de   : > { %3054 = vmatmul.mubr.f32.gmra.mrb[56].mxu1 %v7202_v58  ;;  %v7207_v11 = vpop.f32.mrb[83].mxu0 }
 0x3df   : > { %3058 = vmatprep.mubr.f32.mxu1 %v2212_v31  ;;  %4464 = vmatpush1.bf16.msra.mxu1 %v4463_v48  ;;  %v4472_v31 = vpack.c.bf16 %v2455_v47, %v2454_v27  ;;  %v7259_v27 = vld [vmem:[#allocation3 + $0x109] sm:$0xff] }
 0x3e0   : > { %4465 = vmatprep.subr.bf16.mxu1 %v7495_v35  ;;  %v7502_v47 = vld [vmem:[#allocation15_spill] sm:$0xff] }
 0x3e2   : > { %3059 = vmatmul.mubr.f32.gmra.mrb[58].mxu1 %v7216_v15 }
 0x3e3   : > { %3063 = vmatprep.mubr.f32.mxu1 %v2213_v62  ;;  %4467 = vmatpush1.bf16.msra.mxu1 %v4466_v22  ;;  %v7234_v22 = vld [vmem:[#allocation3 + $0xc9] sm:$0xff] }
 0x3e4   : > { %4468 = vmatprep.subr.bf16.mxu1 %v7495_v35 }
 0x3e5   : > { %v7228_v48 = vpop.f32.mrb[84].mxu0 }
 0x3e6   : > { %3064 = vmatmul.mubr.f32.gmra.mrb[60].mxu1 %v7226_v63  ;;  %v7231_v23 = vpop.f32.mrb[85].mxu0 }
 0x3e7   : > { %3068 = vmatprep.mubr.f32.mxu1 %v2214_v54  ;;  %4470 = vmatpush1.bf16.msra.mxu1 %v4469_v59  ;;  %v7255_v59 = vld [vmem:[#allocation3 + $0xf9] sm:$0xff] }
 0x3e8   : > { %4471 = vmatprep.subr.bf16.mxu1 %v7495_v35  ;;  %v7247_v35 = vld [vmem:[#allocation3 + $0xe1] sm:$0xff] }
 0x3ea   : > { %3069 = vmatmul.mubr.f32.gmra.mrb[62].mxu1 %v7234_v22 }
 0x3eb   : > { %3073 = vmatprep.mubr.f32.mxu1 %v6722_v45  ;;  %4473 = vmatpush1.bf16.msra.mxu1 %v4472_v31  ;;  %v7251_v45 = vld [vmem:[#allocation3 + $0xf1] sm:$0xff]  ;;  %v7504_v31 = vld [vmem:[#allocation18_spill] sm:$0xff] }
 0x3ec   : > { %4506 = vmatprep.subr.bf16.mxu1 %v7498_v2 }
 0x3ed   : > { %v7241_v62 = vpop.f32.mrb[86].mxu0 }
 0x3ee   : > { %3074 = vmatmul.mubr.f32.gmra.mrb[64].mxu1 %v7239_v17  ;;  %v7244_v54 = vpop.f32.mrb[87].mxu0 }
 0x3ef   : > { %3078 = vmatprep.mubr.f32.mxu1 %v6726_v50  ;;  %v7263_v50 = vld [vmem:[#allocation3 + $0x111] sm:$0xff] }
 0x3f2   : > { %3079 = vmatmul.mubr.f32.gmra.mrb[66].mxu1 %v7247_v35 }
 0x3f3   : > { %3083 = vmatprep.mubr.f32.mxu1 %v6738_v16  ;;  %v7267_v16 = vld [vmem:[#allocation3 + $0x121] sm:$0xff] }
 0x3f6   : > { %3084 = vmatmul.mubr.f32.gmra.mrb[68].mxu1 %v7251_v45 }
 0x3f7   : > { %3088 = vmatprep.mubr.f32.mxu1 %v6742_v40  ;;  %v7271_v40 = vld [vmem:[#allocation3 + $0x129] sm:$0xff] }
 0x3fa   : > { %3089 = vmatmul.mubr.f32.gmra.mrb[70].mxu1 %v7255_v59 }
 0x3fb   : > { %3093 = vmatprep.mubr.f32.mxu1 %v6754_v34  ;;  %v7499_v34 = vld [vmem:[#allocation12_spill] sm:$0xff] }
 0x3fe   : > { %3094 = vmatmul.mubr.f32.gmra.mrb[72].mxu1 %v7259_v27 }
 0x3ff   : > { %3098 = vmatprep.mubr.f32.mxu1 %v6758_v36  ;;  %v7500_v36 = vld [vmem:[#allocation13_spill] sm:$0xff] }
 0x402   : > { %3099 = vmatmul.mubr.f32.gmra.mrb[74].mxu1 %v7263_v50 }
 0x403   : > { %3103 = vmatprep.mubr.f32.mxu1 %v6775_v9  ;;  %v7501_v9 = vld [vmem:[#allocation14_spill] sm:$0xff] }
 0x406   : > { %3104 = vmatmul.mubr.f32.gmra.mrb[76].mxu1 %v7267_v16 }
 0x407   : > { %3108 = vmatprep.mubr.f32.mxu1 %v6779_v46  ;;  %v7286_v46 = vld [vmem:[#allocation3 + $0x182] sm:$0xff] }
 0x40a   : > { %3109 = vmatmul.mubr.f32.gmra.mrb[78].mxu1 %v7271_v40 }
 0x40b   : > { %3113 = vmatprep.mubr.f32.mxu1 %v7496_v7  ;;  %v7503_v7 = vmax.f32 %v6827_v25, 0.0  ;;  %v7507_v25 = vld [vmem:[#allocation6_spill] sm:$0xff] }
 0x40e   : > { %3114 = vmatmul.mubr.f32.gmra.mrb[80].mxu1 %v7499_v34  ;;  %v7505_v34 = vmax.f32 %v7504_v31, 0.0  ;;  %v7512_v31 = vld [vmem:[#allocation11_spill] sm:$0xff] }
 0x40f   : > { %3118 = vmatprep.mubr.f32.mxu1 %v7497_v21  ;;  %v7291_v21 = vld [vmem:[#allocation3 + $0x18a] sm:$0xff] }
 0x412   : > { %3119 = vmatmul.mubr.f32.gmra.mrb[82].mxu1 %v7500_v36  ;;  %v2233_v36 = vld [vmem:[#allocation3 + $0x38] sm:$0xff] }
 0x413   : > { %3123 = vmatprep.mubr.f32.mxu1 %v7023_v4 }
 0x416   : > { %3124 = vmatmul.mubr.f32.gmra.mrb[84].mxu1 %v7501_v9  ;;  %v2234_v9 = vld [vmem:[#allocation3 + $0x48] sm:$0xff] }
 0x417   : > { %3128 = vmatprep.mubr.f32.mxu1 %v7031_v6 }
 0x41a   : > { %3129 = vmatmul.mubr.f32.gmra.mrb[86].mxu1 %v7502_v47  ;;  %v7510_v47 = vld [vmem:[#allocation9_spill] sm:$0xff] }
 0x41b   : > { %3133 = vmatprep.mubr.f32.mxu1 %v7037_v8 }
 0x41e   : > { %3134 = vmatmul.mubr.f32.gmra.mrb[88].mxu1 %v6811_v41  ;;  %v2232_v41 = vld [vmem:[#allocation3 + $0x30] sm:$0xff] }
 0x41f   : > { %3138 = vmatprep.mubr.f32.mxu1 %v7053_v12 }
 0x422   : > { %3139 = vmatmul.mubr.f32.gmra.mrb[90].mxu1 %v6820_v20  ;;  %v7506_v20 = vld [vmem:[#allocation5_spill] sm:$0xff] }
 0x423   : > { %3143 = vmatprep.mubr.f32.mxu1 %v7286_v46 }
 0x426   : > { %3144 = vmatmul.mubr.f32.gmra.mrb[92].mxu1 %v7503_v7  ;;  %v7511_v7 = vld [vmem:[#allocation10_spill] sm:$0xff] }
 0x427   : > { %3148 = vmatprep.mubr.f32.mxu1 %v7291_v21 }
 0x42a   : > { %3149 = vmatmul.mubr.f32.gmra.mrb[94].mxu1 %v7505_v34  ;;  %v2240_v34 = vld [vmem:[#allocation3 + $0x90] sm:$0xff] }
 0x42b   : > { %3218 = vmatprep.mubr.f32.mxu1 %v7082_v60  ;;  %v7508_v60 = vld [vmem:[#allocation7_spill] sm:$0xff] }
 0x42e   : > { %3219 = vmatmul.mubr.f32.vlgmr.msra.gmra.mrb[32].mxu1 %v2232_v41  ;;  %v2242_v41 = vld [vmem:[#allocation3 + $0xa8] sm:$0xff] }
 0x42f   : > { %3223 = vmatprep.mubr.f32.mxu1 %v7096_v19  ;;  %4514 = vmatpush3.bf16.msra.mxu1 %v7498_v2  ;;  %v2235_v19 = vld [vmem:[#allocation3 + $0x50] sm:$0xff] }
 0x430   : > { %4507 = vmatprep.subr.bf16.mxu1 %v7506_v20  ;;  %v7509_v2 = vld [vmem:[#allocation8_spill] sm:$0xff] }
 0x432   : > { %3224 = vmatmul.mubr.f32.gmra.mrb[34].mxu1 %v2233_v36  ;;  %v2286_v36 = vld [vmem:[#allocation3 + $0x139] sm:$0xff] }
 0x433   : > { %3228 = vmatprep.mubr.f32.mxu1 %v7106_v57  ;;  %4515 = vmatpush3.bf16.msra.mxu1 %v7506_v20  ;;  %v2236_v57 = vld [vmem:[#allocation3 + $0x60] sm:$0xff] }
 0x434   : > { %4508 = vmatprep.subr.bf16.mxu1 %v7507_v25  ;;  %v2244_v20 = vld [vmem:[#allocation3 + $0xc0] sm:$0xff] }
 0x436   : > { %3229 = vmatmul.mubr.f32.gmra.mrb[36].mxu1 %v2234_v9  ;;  %v2288_v9 = vld [vmem:[#allocation3 + $0x151] sm:$0xff] }
 0x437   : > { %3233 = vmatprep.mubr.f32.mxu1 %v7120_v13  ;;  %4516 = vmatpush3.bf16.msra.mxu1 %v7507_v25  ;;  %v2237_v13 = vld [vmem:[#allocation3 + $0x68] sm:$0xff] }
 0x438   : > { %4509 = vmatprep.subr.bf16.mxu1 %v7508_v60  ;;  %v2287_v25 = vld [vmem:[#allocation3 + $0x141] sm:$0xff] }
 0x43a   : > { %3234 = vmatmul.mubr.f32.gmra.mrb[38].mxu1 %v2235_v19  ;;  %v2290_v19 = vld [vmem:[#allocation3 + $0x169] sm:$0xff] }
 0x43b   : > { %3238 = vmatprep.mubr.f32.mxu1 %v7130_v28  ;;  %4517 = vmatpush3.bf16.msra.mxu1 %v7508_v60  ;;  %v2238_v28 = vld [vmem:[#allocation3 + $0x78] sm:$0xff] }
 0x43c   : > { %4510 = vmatprep.subr.bf16.mxu1 %v7509_v2  ;;  %v2289_v60 = vld [vmem:[#allocation3 + $0x159] sm:$0xff] }
 0x43e   : > { %3239 = vmatmul.mubr.f32.gmra.mrb[40].mxu1 %v2236_v57  ;;  %v2259_v57 = vld [vmem:[#allocation3 + $0x170] sm:$0xff] }
 0x43f   : > { %3243 = vmatprep.mubr.f32.mxu1 %v7144_v42  ;;  %4518 = vmatpush3.bf16.msra.mxu1 %v7509_v2  ;;  %v2239_v42 = vld [vmem:[#allocation3 + $0x80] sm:$0xff]  ;;  %v2291_v2 = vld [vmem:[#allocation3 + $0x171] sm:$0xff] }
 0x440   : > { %4511 = vmatprep.subr.bf16.mxu1 %v7510_v47 }
 0x442   : > { %3244 = vmatmul.mubr.f32.gmra.mrb[42].mxu1 %v2237_v13  ;;  %v2293_v13 = vld [vmem:[#allocation3 + $0x189] sm:$0xff] }
 0x443   : > { %3248 = vmatprep.mubr.f32.mxu1 %v7154_v0  ;;  %4519 = vmatpush3.bf16.msra.mxu1 %v7510_v47  ;;  %v2241_v0 = vld [vmem:[#allocation3 + $0x98] sm:$0xff]  ;;  %v2292_v47 = vld [vmem:[#allocation3 + $0x181] sm:$0xff] }
 0x444   : > { %4512 = vmatprep.subr.bf16.mxu1 %v7511_v7 }
 0x446   : > { %3249 = vmatmul.mubr.f32.gmra.mrb[44].mxu1 %v2238_v28  ;;  %v2262_v28 = vld [vmem:[#allocation3 + $0x198] sm:$0xff] }
 0x447   : > { %3253 = vmatprep.mubr.f32.mxu1 %v7168_v30  ;;  %4520 = vmatpush3.bf16.msra.mxu1 %v7511_v7  ;;  %v2243_v30 = vld [vmem:[#allocation3 + $0xb0] sm:$0xff]  ;;  %v2294_v7 = vld [vmem:[#allocation3 + $0x199] sm:$0xff] }
 0x448   : > { %4513 = vmatprep.subr.bf16.mxu1 %v7512_v31 }
 0x44a   : > { %3254 = vmatmul.mubr.f32.gmra.mrb[46].mxu1 %v2239_v42  ;;  %v5013_v42 = vld [vmem:[#allocation2 + $0x8] sm:$0xff] }
 0x44b   : > { %3258 = vmatprep.mubr.f32.mxu1 %v7178_v37  ;;  %4521 = vmatpush3.bf16.msra.mxu1 %v7512_v31  ;;  %v2245_v37 = vld [vmem:[#allocation3 + $0xc8] sm:$0xff] }
 0x44c   : > { %v2295_v31 = vld [vmem:[#allocation3 + $0x1a1] sm:$0xff] }
 0x44e   : > { %3259 = vmatmul.mubr.f32.gmra.mrb[48].mxu1 %v2240_v34  ;;  %v7344_v34 = vld [vmem:[%s7448_s4] ss:$0 sm:$0xff] }
 0x44f   : > { %3263 = vmatprep.mubr.f32.mxu1 %v7192_v38  ;;  %v2246_v38 = vld [vmem:[#allocation3 + $0xd8] sm:$0xff] }
 0x452   : > { %3264 = vmatmul.mubr.f32.gmra.mrb[50].mxu1 %v2241_v0  ;;  %v3604_v0 = vld [vmem:[#allocation2 + $0x19] sm:$0xff] }
 0x453   : > { %3268 = vmatprep.mubr.f32.mxu1 %v7202_v58  ;;  %v2247_v58 = vld [vmem:[#allocation3 + $0xe0] sm:$0xff] }
 0x456   : > { %3269 = vmatmul.mubr.f32.gmra.mrb[52].mxu1 %v2242_v41 }
 0x457   : > { %3273 = vmatprep.mubr.f32.mxu1 %v7216_v15  ;;  %v2248_v15 = vld [vmem:[#allocation3 + $0xf0] sm:$0xff] }
 0x45a   : > { %3274 = vmatmul.mubr.f32.gmra.mrb[54].mxu1 %v2243_v30 }
 0x45b   : > { %3278 = vmatprep.mubr.f32.mxu1 %v7226_v63  ;;  %v2249_v63 = vld [vmem:[#allocation3 + $0xf8] sm:$0xff] }
 0x45e   : > { %3279 = vmatmul.mubr.f32.gmra.mrb[56].mxu1 %v2244_v20  ;;  %v3605_v20 = vld [vmem:[#allocation2 + $0x21] sm:$0xff] }
 0x45f   : > { %3283 = vmatprep.mubr.f32.mxu1 %v7234_v22  ;;  %v2250_v22 = vld [vmem:[#allocation3 + $0x108] sm:$0xff] }
 0x462   : > { %3284 = vmatmul.mubr.f32.gmra.mrb[58].mxu1 %v2245_v37 }
 0x463   : > { %3288 = vmatprep.mubr.f32.mxu1 %v7239_v17  ;;  %v2251_v17 = vld [vmem:[#allocation3 + $0x110] sm:$0xff] }
 0x466   : > { %3289 = vmatmul.mubr.f32.gmra.mrb[60].mxu1 %v2246_v38 }
 0x467   : > { %3293 = vmatprep.mubr.f32.mxu1 %v7247_v35  ;;  %v2252_v35 = vld [vmem:[#allocation3 + $0x120] sm:$0xff] }
 0x46a   : > { %3294 = vmatmul.mubr.f32.gmra.mrb[62].mxu1 %v2247_v58 }
 0x46b   : > { %3298 = vmatprep.mubr.f32.mxu1 %v7251_v45  ;;  %v2253_v45 = vld [vmem:[#allocation3 + $0x128] sm:$0xff] }
 0x46e   : > { %3299 = vmatmul.mubr.f32.gmra.mrb[64].mxu1 %v2248_v15 }
 0x46f   : > { %3303 = vmatprep.mubr.f32.mxu1 %v7255_v59  ;;  %v2254_v59 = vld [vmem:[#allocation3 + $0x138] sm:$0xff] }
 0x472   : > { %3304 = vmatmul.mubr.f32.gmra.mrb[66].mxu1 %v2249_v63 }
 0x473   : > { %3308 = vmatprep.mubr.f32.mxu1 %v7259_v27  ;;  %v2255_v27 = vld [vmem:[#allocation3 + $0x140] sm:$0xff] }
 0x476   : > { %3309 = vmatmul.mubr.f32.gmra.mrb[68].mxu1 %v2250_v22  ;;  %v3606_v22 = vld [vmem:[#allocation2 + $0x31] sm:$0xff] }
 0x477   : > { %3313 = vmatprep.mubr.f32.mxu1 %v7263_v50  ;;  %v2256_v50 = vld [vmem:[#allocation3 + $0x150] sm:$0xff] }
 0x47a   : > { %3314 = vmatmul.mubr.f32.gmra.mrb[70].mxu1 %v2251_v17 }
 0x47b   : > { %3318 = vmatprep.mubr.f32.mxu1 %v7267_v16  ;;  %v2257_v16 = vld [vmem:[#allocation3 + $0x158] sm:$0xff] }
 0x47e   : > { %3319 = vmatmul.mubr.f32.gmra.mrb[72].mxu1 %v2252_v35 }
 0x47f   : > { %3323 = vmatprep.mubr.f32.mxu1 %v7271_v40  ;;  %v2258_v40 = vld [vmem:[#allocation3 + $0x168] sm:$0xff] }
 0x482   : > { %3324 = vmatmul.mubr.f32.gmra.mrb[74].mxu1 %v2253_v45 }
 0x483   : > { %3328 = vmatprep.mubr.f32.mxu1 %v2286_v36 }
 0x486   : > { %3329 = vmatmul.mubr.f32.gmra.mrb[76].mxu1 %v2254_v59 }
 0x487   : > { %3333 = vmatprep.mubr.f32.mxu1 %v2287_v25 }
 0x48a   : > { %3334 = vmatmul.mubr.f32.gmra.mrb[78].mxu1 %v2255_v27  ;;  %v3607_v27 = vld [vmem:[#allocation2 + $0x39] sm:$0xff] }
 0x48b   : > { %3338 = vmatprep.mubr.f32.mxu1 %v2288_v9 }
 0x48e   : > { %3339 = vmatmul.mubr.f32.gmra.mrb[80].mxu1 %v2256_v50 }
 0x48f   : > { %3343 = vmatprep.mubr.f32.mxu1 %v2289_v60 }
 0x492   : > { %3344 = vmatmul.mubr.f32.gmra.mrb[82].mxu1 %v2257_v16 }
 0x493   : > { %3348 = vmatprep.mubr.f32.mxu1 %v2290_v19 }
 0x496   : > { %3349 = vmatmul.mubr.f32.gmra.mrb[84].mxu1 %v2258_v40  ;;  %v3608_v40 = vld [vmem:[#allocation2 + $0x49] sm:$0xff] }
 0x497   : > { %3353 = vmatprep.mubr.f32.mxu1 %v2291_v2 }
 0x49a   : > { %3354 = vmatmul.mubr.f32.gmra.mrb[86].mxu1 %v2259_v57 }
 0x49b   : > { %3358 = vmatprep.mubr.f32.mxu1 %v2292_v47 }
 0x49e   : > { %3359 = vmatmul.mubr.f32.gmra.mrb[88].mxu1 %v7034_v33  ;;  %v2326_v33 = vld [vmem:[#allocation3 + $0x19a] sm:$0xff] }
 0x49f   : > { %3363 = vmatprep.mubr.f32.mxu1 %v2293_v13 }
 0x4a2   : > { %3364 = vmatmul.mubr.f32.gmra.mrb[90].mxu1 %v7042_v32  ;;  %v2327_v32 = vld [vmem:[#allocation3 + $0x1a2] sm:$0xff] }
 0x4a3   : > { %3368 = vmatprep.mubr.f32.mxu1 %v2294_v7 }
 0x4a6   : > { %3369 = vmatmul.mubr.f32.gmra.mrb[92].mxu1 %v2262_v28  ;;  %v3609_v28 = vld [vmem:[#allocation2 + $0x51] sm:$0xff] }
 0x4a7   : > { %3373 = vmatprep.mubr.f32.mxu1 %v2295_v31 }
 0x4aa   : > { %3374 = vmatmul.mubr.f32.gmra.mrb[94].mxu1 %v5013_v42 }
 0x4ab   : > { %4046 = vmatprep.mubr.f32.mxu1 %v7023_v4 }
 0x4ae   : > { %4047 = vmatmul.mubr.f32.vlgmr.msra.gmra.mrb[96].mxu1 %v7031_v6 }
 0x4af   : > { %4049 = vmatprep.mubr.f32.mxu1 %v7037_v8 }
 0x4b2   : > { %4050 = vmatmul.mubr.f32.gmra.mrb[98].mxu1 %v7053_v12 }
 0x4b3   : > { %4052 = vmatprep.mubr.f32.mxu1 %v7286_v46 }
 0x4b6   : > { %4053 = vmatmul.mubr.f32.gmra.mrb[100].mxu1 %v7291_v21 }
 0x4b7   : > { %4055 = vmatprep.mubr.f32.mxu1 %v2326_v33 }
 0x4ba   : > { %4056 = vmatmul.mubr.f32.gmra.mrb[102].mxu1 %v2327_v32 }
 0x501   : > { %v3220_v4 = vpop.f32.mrb[32].mxu1 }
 0x502   : > { %v4554_v6 = vadd.f32 %v7344_v34, %v3220_v4  ;;  %v3222_v8 = vpop.f32.mrb[33].mxu1 }
 0x504   : > { %v3446_v12 = vadd.f32 %v4554_v6, %v7018_v26  ;;  %v3610_v6 = vld [vmem:[#allocation2 + $0x61] sm:$0xff] }
 0x505   : > { %v3225_v46 = vpop.f32.mrb[34].mxu1 }
 0x506   : > { %v3636_v41 = vadd.f32 %v3604_v0, %v3446_v12  ;;  %v4555_v30 = vadd.f32 %v7344_v34, %v3225_v46  ;;  %v3227_v21 = vpop.f32.mrb[35].mxu1 }
 0x508   : > { %v3668_v37 = vmax.f32 %v3636_v41, 0.0  ;;  %v3451_v38 = vadd.f32 %v4555_v30, %v7015_v3  ;;  %v3611_v30 = vld [vmem:[#allocation2 + $0x69] sm:$0xff] }
 0x509   : > { %v3230_v58 = vpop.f32.mrb[36].mxu1 }
 0x50a   : > { %3700 = vst [vmem:[%s7354_s14] sm:$0xff] %v3668_v37  ;;  %v3637_v26 = vadd.f32 %v3605_v20, %v3451_v38  ;;  %v4556_v15 = vadd.f32 %v7344_v34, %v3230_v58  ;;  %v3232_v63 = vpop.f32.mrb[37].mxu1 }
 0x50c   : > { %v3669_v17 = vmax.f32 %v3637_v26, 0.0  ;;  %v3456_v35 = vadd.f32 %v4556_v15, %v7028_v10  ;;  %v3612_v26 = vld [vmem:[#allocation2 + $0x79] sm:$0xff] }
 0x50d   : > { %v3235_v45 = vpop.f32.mrb[38].mxu1 }
 0x50e   : > { %3701 = vst [vmem:[%s7354_s14 + $0x8] sm:$0xff] %v3669_v17  ;;  %v3638_v36 = vadd.f32 %v3606_v22, %v3456_v35  ;;  %v4557_v59 = vadd.f32 %v7344_v34, %v3235_v45  ;;  %v3237_v25 = vpop.f32.mrb[39].mxu1  ;;  %v3613_v45 = vld [vmem:[#allocation2 + $0x81] sm:$0xff] }
 0x510   : > { %v3670_v3 = vmax.f32 %v3638_v36, 0.0  ;;  %v3461_v9 = vadd.f32 %v4557_v59, %v7025_v52 }
 0x511   : > { %v3240_v50 = vpop.f32.mrb[40].mxu1 }
 0x512   : > { %3702 = vst [vmem:[%s7354_s14 + $0x10] sm:$0xff] %v3670_v3  ;;  %v3639_v60 = vadd.f32 %v3607_v27, %v3461_v9  ;;  %v4558_v16 = vadd.f32 %v7344_v34, %v3240_v50  ;;  %v3242_v19 = vpop.f32.mrb[41].mxu1  ;;  %v3614_v9 = vld [vmem:[#allocation2 + $0x91] sm:$0xff] }
 0x514   : > { %v3671_v10 = vmax.f32 %v3639_v60, 0.0  ;;  %v3466_v2 = vadd.f32 %v4558_v16, %v7044_v51 }
 0x515   : > { %v3245_v57 = vpop.f32.mrb[42].mxu1 }
 0x516   : > { %3703 = vst [vmem:[%s7354_s14 + $0x18] sm:$0xff] %v3671_v10  ;;  %v3640_v47 = vadd.f32 %v3608_v40, %v3466_v2  ;;  %v4559_v13 = vadd.f32 %v7344_v34, %v3245_v57  ;;  %v3247_v7 = vpop.f32.mrb[43].mxu1  ;;  %v3615_v10 = vld [vmem:[#allocation2 + $0x99] sm:$0xff] }
 0x518   : > { %v3672_v52 = vmax.f32 %v3640_v47, 0.0  ;;  %v3471_v31 = vadd.f32 %v4559_v13, %v7039_v1 }
 0x519   : > { %v3250_v42 = vpop.f32.mrb[44].mxu1 }
 0x51a   : > { %3704 = vst [vmem:[%s7354_s14 + $0x20] sm:$0xff] %v3672_v52  ;;  %v3641_v33 = vadd.f32 %v3609_v28, %v3471_v31  ;;  %v4560_v32 = vadd.f32 %v7344_v34, %v3250_v42  ;;  %v3252_v4 = vpop.f32.mrb[45].mxu1  ;;  %v3616_v28 = vld [vmem:[#allocation2 + $0xa9] sm:$0xff] }
 0x51b   : > { %v3617_v4 = vld [vmem:[#allocation2 + $0xb1] sm:$0xff] }
 0x51c   : > { %v3673_v51 = vmax.f32 %v3641_v33, 0.0  ;;  %v3476_v8 = vadd.f32 %v4560_v32, %v7065_v5 }
 0x51d   : > { %v3255_v0 = vpop.f32.mrb[46].mxu1 }
 0x51e   : > { %3705 = vst [vmem:[%s7354_s14 + $0x28] sm:$0xff] %v3673_v51  ;;  %v3642_v12 = vadd.f32 %v3610_v6, %v3476_v8  ;;  %v4561_v46 = vadd.f32 %v7344_v34, %v3255_v0  ;;  %v3257_v41 = vpop.f32.mrb[47].mxu1 }
 0x520   : > { %v3674_v1 = vmax.f32 %v3642_v12, 0.0  ;;  %v3481_v21 = vadd.f32 %v4561_v46, %v7063_v55  ;;  %v3618_v46 = vld [vmem:[#allocation2 + $0xc1] sm:$0xff] }
 0x521   : > { %v3260_v20 = vpop.f32.mrb[48].mxu1 }
 0x522   : > { %3706 = vst [vmem:[%s7354_s14 + $0x30] sm:$0xff] %v3674_v1  ;;  %v3643_v37 = vadd.f32 %v3611_v30, %v3481_v21  ;;  %v4562_v38 = vadd.f32 %v7344_v34, %v3260_v20  ;;  %v3262_v58 = vpop.f32.mrb[49].mxu1 }
 0x524   : > { %v3675_v5 = vmax.f32 %v3643_v37, 0.0  ;;  %v3486_v15 = vadd.f32 %v4562_v38, %v7087_v61  ;;  %v3619_v37 = vld [vmem:[#allocation2 + $0xc9] sm:$0xff] }
 0x525   : > { %v3265_v63 = vpop.f32.mrb[50].mxu1 }
 0x526   : > { %3707 = vst [vmem:[%s7354_s14 + $0x38] sm:$0xff] %v3675_v5  ;;  %v3644_v22 = vadd.f32 %v3612_v26, %v3486_v15  ;;  %v4563_v17 = vadd.f32 %v7344_v34, %v3265_v63  ;;  %v3267_v35 = vpop.f32.mrb[51].mxu1  ;;  %v3620_v63 = vld [vmem:[#allocation2 + $0xd9] sm:$0xff] }
 0x528   : > { %v3676_v55 = vmax.f32 %v3644_v22, 0.0  ;;  %v3491_v36 = vadd.f32 %v4563_v17, %v7084_v43 }
 0x529   : > { %v3270_v59 = vpop.f32.mrb[52].mxu1 }
 0x52a   : > { %3708 = vst [vmem:[%s7354_s14 + $0x40] sm:$0xff] %v3676_v55  ;;  %v3645_v25 = vadd.f32 %v3613_v45, %v3491_v36  ;;  %v4564_v27 = vadd.f32 %v7344_v34, %v3270_v59  ;;  %v3272_v3 = vpop.f32.mrb[53].mxu1  ;;  %v3621_v36 = vld [vmem:[#allocation2 + $0xe1] sm:$0xff] }
 0x52c   : > { %v3677_v61 = vmax.f32 %v3645_v25, 0.0  ;;  %v3496_v50 = vadd.f32 %v4564_v27, %v7111_v53 }
 0x52d   : > { %v3275_v60 = vpop.f32.mrb[54].mxu1 }
 0x52e   : > { %3709 = vst [vmem:[%s7354_s14 + $0x48] sm:$0xff] %v3677_v61  ;;  %v3646_v16 = vadd.f32 %v3614_v9, %v3496_v50  ;;  %v4565_v19 = vadd.f32 %v7344_v34, %v3275_v60  ;;  %v3277_v40 = vpop.f32.mrb[55].mxu1  ;;  %v3622_v61 = vld [vmem:[#allocation2 + $0xf1] sm:$0xff] }
 0x530   : > { %v3678_v43 = vmax.f32 %v3646_v16, 0.0  ;;  %v3501_v2 = vadd.f32 %v4565_v19, %v7108_v49 }
 0x531   : > { %v3280_v57 = vpop.f32.mrb[56].mxu1 }
 0x532   : > { %3710 = vst [vmem:[%s7354_s14 + $0x50] sm:$0xff] %v3678_v43  ;;  %v3647_v47 = vadd.f32 %v3615_v10, %v3501_v2  ;;  %v4566_v13 = vadd.f32 %v7344_v34, %v3280_v57  ;;  %v3282_v7 = vpop.f32.mrb[57].mxu1  ;;  %v3623_v10 = vld [vmem:[#allocation2 + $0xf9] sm:$0xff] }
 0x533   : > { %v3624_v7 = vld [vmem:[#allocation2 + $0x109] sm:$0xff] }
 0x534   : > { %v3679_v53 = vmax.f32 %v3647_v47, 0.0  ;;  %v3506_v52 = vadd.f32 %v4566_v13, %v7135_v14 }
 0x535   : > { %v3285_v31 = vpop.f32.mrb[58].mxu1 }
 0x536   : > { %3711 = vst [vmem:[%s7354_s14 + $0x58] sm:$0xff] %v3679_v53  ;;  %v3648_v42 = vadd.f32 %v3616_v28, %v3506_v52  ;;  %v4567_v33 = vadd.f32 %v7344_v34, %v3285_v31  ;;  %v3287_v32 = vpop.f32.mrb[59].mxu1 }
 0x538   : > { %v3680_v49 = vmax.f32 %v3648_v42, 0.0  ;;  %v3511_v6 = vadd.f32 %v4567_v33, %v7132_v29  ;;  %v3625_v33 = vld [vmem:[#allocation2 + $0x111] sm:$0xff] }
 0x539   : > { %v3290_v51 = vpop.f32.mrb[60].mxu1 }
 0x53a   : > { %3712 = vst [vmem:[%s7354_s14 + $0x60] sm:$0xff] %v3680_v49  ;;  %v3649_v8 = vadd.f32 %v3617_v4, %v3511_v6  ;;  %v4568_v0 = vadd.f32 %v7344_v34, %v3290_v51  ;;  %v3292_v12 = vpop.f32.mrb[61].mxu1 }
 0x53c   : > { %v3681_v14 = vmax.f32 %v3649_v8, 0.0  ;;  %v3516_v41 = vadd.f32 %v4568_v0, %v7159_v39  ;;  %v3626_v8 = vld [vmem:[#allocation2 + $0x121] sm:$0xff] }
 0x53d   : > { %v3295_v30 = vpop.f32.mrb[62].mxu1 }
 0x53e   : > { %3713 = vst [vmem:[%s7354_s14 + $0x68] sm:$0xff] %v3681_v14  ;;  %v3650_v1 = vadd.f32 %v3618_v46, %v3516_v41  ;;  %v4569_v21 = vadd.f32 %v7344_v34, %v3295_v30  ;;  %v3297_v20 = vpop.f32.mrb[63].mxu1  ;;  %v3627_v30 = vld [vmem:[#allocation2 + $0x129] sm:$0xff] }
 0x540   : > { %v3682_v29 = vmax.f32 %v3650_v1, 0.0  ;;  %v3521_v38 = vadd.f32 %v4569_v21, %v7156_v44 }
 0x541   : > { %v3300_v58 = vpop.f32.mrb[64].mxu1 }
 0x542   : > { %3714 = vst [vmem:[%s7354_s14 + $0x70] sm:$0xff] %v3682_v29  ;;  %v3651_v26 = vadd.f32 %v3619_v37, %v3521_v38  ;;  %v4570_v5 = vadd.f32 %v7344_v34, %v3300_v58  ;;  %v3302_v15 = vpop.f32.mrb[65].mxu1 }
 0x544   : > { %v3683_v39 = vmax.f32 %v3651_v26, 0.0  ;;  %v3526_v22 = vadd.f32 %v4570_v5, %v7183_v18 }
 0x545   : > { %v3305_v17 = vpop.f32.mrb[66].mxu1 }
 0x546   : > { %3715 = vst [vmem:[%s7354_s14 + $0x78] sm:$0xff] %v3683_v39  ;;  %v3652_v35 = vadd.f32 %v3620_v63, %v3526_v22  ;;  %v4571_v45 = vadd.f32 %v7344_v34, %v3305_v17  ;;  %v3307_v55 = vpop.f32.mrb[67].mxu1 }
 0x548   : > { %v3684_v44 = vmax.f32 %v3652_v35, 0.0  ;;  %v3531_v59 = vadd.f32 %v4571_v45, %v7180_v24 }
 0x549   : > { %v3310_v25 = vpop.f32.mrb[68].mxu1 }
 0x54a   : > { %3716 = vst [vmem:[%s7354_s14 + $0x80] sm:$0xff] %v3684_v44  ;;  %v3653_v27 = vadd.f32 %v3621_v36, %v3531_v59  ;;  %v4572_v3 = vadd.f32 %v7344_v34, %v3310_v25  ;;  %v3312_v9 = vpop.f32.mrb[69].mxu1  ;;  %v3629_v25 = vld [vmem:[#allocation2 + $0x141] sm:$0xff] }
 0x54b   : > { %v3628_v9 = vld [vmem:[#allocation2 + $0x139] sm:$0xff] }
 0x54c   : > { %v3685_v18 = vmax.f32 %v3653_v27, 0.0  ;;  %v3536_v50 = vadd.f32 %v4572_v3, %v7207_v11 }
 0x54d   : > { %v3315_v60 = vpop.f32.mrb[70].mxu1 }
 0x54e   : > { %3717 = vst [vmem:[%s7354_s14 + $0x88] sm:$0xff] %v3685_v18  ;;  %v3654_v16 = vadd.f32 %v3622_v61, %v3536_v50  ;;  %v4573_v19 = vadd.f32 %v7344_v34, %v3315_v60  ;;  %v3317_v40 = vpop.f32.mrb[71].mxu1 }
 0x54f   : > { %v3631_v40 = vld [vmem:[#allocation2 + $0x159] sm:$0xff] }
 0x550   : > { %v3686_v24 = vmax.f32 %v3654_v16, 0.0  ;;  %v3541_v43 = vadd.f32 %v4573_v19, %v7204_v56 }
 0x551   : > { %v3320_v2 = vpop.f32.mrb[72].mxu1 }
 0x552   : > { %3718 = vst [vmem:[%s7354_s14 + $0x90] sm:$0xff] %v3686_v24  ;;  %v3655_v57 = vadd.f32 %v3623_v10, %v3541_v43  ;;  %v4574_v47 = vadd.f32 %v7344_v34, %v3320_v2  ;;  %v3322_v13 = vpop.f32.mrb[73].mxu1  ;;  %v3630_v2 = vld [vmem:[#allocation2 + $0x151] sm:$0xff] }
 0x554   : > { %v3687_v11 = vmax.f32 %v3655_v57, 0.0  ;;  %v3546_v28 = vadd.f32 %v4574_v47, %v7231_v23 }
 0x555   : > { %v3325_v53 = vpop.f32.mrb[74].mxu1 }
 0x556   : > { %3719 = vst [vmem:[%s7354_s14 + $0x98] sm:$0xff] %v3687_v11  ;;  %v3656_v52 = vadd.f32 %v3624_v7, %v3546_v28  ;;  %v4575_v31 = vadd.f32 %v7344_v34, %v3325_v53  ;;  %v3327_v42 = vpop.f32.mrb[75].mxu1 }
 0x558   : > { %v3688_v56 = vmax.f32 %v3656_v52, 0.0  ;;  %v3551_v32 = vadd.f32 %v4575_v31, %v7228_v48  ;;  %v3633_v52 = vld [vmem:[#allocation2 + $0x171] sm:$0xff] }
 0x559   : > { %v3330_v4 = vpop.f32.mrb[76].mxu1 }
 0x55a   : > { %3720 = vst [vmem:[%s7354_s14 + $0xa0] sm:$0xff] %v3688_v56  ;;  %v3657_v49 = vadd.f32 %v3625_v33, %v3551_v32  ;;  %v4576_v6 = vadd.f32 %v7344_v34, %v3330_v4  ;;  %v3332_v51 = vpop.f32.mrb[77].mxu1  ;;  %v3632_v56 = vld [vmem:[#allocation2 + $0x169] sm:$0xff] }
 0x55c   : > { %v3689_v23 = vmax.f32 %v3657_v49, 0.0  ;;  %v3556_v0 = vadd.f32 %v4576_v6, %v7244_v54 }
 0x55d   : > { %v3335_v12 = vpop.f32.mrb[78].mxu1 }
 0x55e   : > { %3721 = vst [vmem:[%s7354_s14 + $0xa8] sm:$0xff] %v3689_v23  ;;  %v3658_v46 = vadd.f32 %v3626_v8, %v3556_v0  ;;  %v4577_v14 = vadd.f32 %v7344_v34, %v3335_v12  ;;  %v3337_v41 = vpop.f32.mrb[79].mxu1  ;;  %v3635_v0 = vld [vmem:[#allocation2 + $0x189] sm:$0xff] }
 0x55f   : > { %v3634_v41 = vld [vmem:[#allocation2 + $0x181] sm:$0xff] }
 0x560   : > { %v3690_v48 = vmax.f32 %v3658_v46, 0.0  ;;  %v3561_v1 = vadd.f32 %v4577_v14, %v7241_v62 }
 0x561   : > { %v3340_v21 = vpop.f32.mrb[80].mxu1 }
 0x562   : > { %3722 = vst [vmem:[%s7354_s14 + $0xb0] sm:$0xff] %v3690_v48  ;;  %v3659_v20 = vadd.f32 %v3627_v30, %v3561_v1  ;;  %v3342_v37 = vpop.f32.mrb[81].mxu1  ;;  %v4578_v44 = vadd.f32 %v7344_v34, %v3340_v21 }
 0x564   : > { %v3691_v29 = vmax.f32 %v3659_v20, 0.0 }
 0x565   : > { %v3345_v38 = vpop.f32.mrb[82].mxu1 }
 0x566   : > { %3723 = vst [vmem:[%s7354_s14 + $0xb8] sm:$0xff] %v3691_v29  ;;  %v3347_v58 = vpop.f32.mrb[83].mxu1  ;;  %v4579_v36 = vadd.f32 %v7344_v34, %v3345_v38 }
 0x569   : > { %v3350_v26 = vpop.f32.mrb[84].mxu1 }
 0x56a   : > { %v3352_v54 = vpop.f32.mrb[85].mxu1  ;;  %v4580_v60 = vadd.f32 %v7344_v34, %v3350_v26 }
 0x56d   : > { %v3355_v5 = vpop.f32.mrb[86].mxu1 }
 0x56e   : > { %v3357_v15 = vpop.f32.mrb[87].mxu1  ;;  %v4581_v18 = vadd.f32 %v7344_v34, %v3355_v5 }
 0x571   : > { %v3360_v63 = vpop.f32.mrb[88].mxu1 }
 0x572   : > { %v3362_v39 = vpop.f32.mrb[89].mxu1  ;;  %v4582_v11 = vadd.f32 %v7344_v34, %v3360_v63 }
 0x575   : > { %v3365_v22 = vpop.f32.mrb[90].mxu1 }
 0x576   : > { %v3367_v17 = vpop.f32.mrb[91].mxu1  ;;  %v4583_v13 = vadd.f32 %v7344_v34, %v3365_v22 }
 0x579   : > { %v3370_v35 = vpop.f32.mrb[92].mxu1 }
 0x57a   : > { %v3372_v45 = vpop.f32.mrb[93].mxu1  ;;  %v4584_v51 = vadd.f32 %v7344_v34, %v3370_v35 }
 0x57d   : > { %v3375_v55 = vpop.f32.mrb[94].mxu1 }
 0x57e   : > { %v3377_v62 = vpop.f32.mrb[95].mxu1  ;;  %v4585_v49 = vadd.f32 %v7344_v34, %v3375_v55 }
 0x581   : > { %v4048_v59 = vpop.f32.mrb[96].mxu1 }
 0x582   : > { %v3571_v27 = vadd.f32 %v4579_v36, %v4048_v59  ;;  %v3565_v3 = vpop.f32.mrb[97].mxu1 }
 0x583   : > { %v3566_v61 = vadd.f32 %v4578_v44, %v3565_v3 }
 0x584   : > { %v3661_v50 = vadd.f32 %v3629_v25, %v3571_v27 }
 0x585   : > { %v3660_v16 = vadd.f32 %v3628_v9, %v3566_v61  ;;  %v4051_v19 = vpop.f32.mrb[98].mxu1 }
 0x586   : > { %v3693_v10 = vmax.f32 %v3661_v50, 0.0  ;;  %v3581_v24 = vadd.f32 %v4581_v18, %v4051_v19  ;;  %v3575_v43 = vpop.f32.mrb[99].mxu1 }
 0x587   : > { %v3692_v57 = vmax.f32 %v3660_v16, 0.0  ;;  %v3576_v47 = vadd.f32 %v4580_v60, %v3575_v43 }
 0x588   : > { %3725 = vst [vmem:[%s7354_s14 + $0xc8] sm:$0xff] %v3693_v10  ;;  %v3663_v7 = vadd.f32 %v3631_v40, %v3581_v24 }
 0x589   : > { %3724 = vst [vmem:[%s7354_s14 + $0xc0] sm:$0xff] %v3692_v57  ;;  %v3662_v28 = vadd.f32 %v3630_v2, %v3576_v47  ;;  %v4054_v53 = vpop.f32.mrb[100].mxu1 }
 0x58a   : > { %v3695_v31 = vmax.f32 %v3663_v7, 0.0  ;;  %v3591_v42 = vadd.f32 %v4583_v13, %v4054_v53  ;;  %v3585_v33 = vpop.f32.mrb[101].mxu1 }
 0x58b   : > { %v3694_v32 = vmax.f32 %v3662_v28, 0.0  ;;  %v3586_v4 = vadd.f32 %v4582_v11, %v3585_v33 }
 0x58c   : > { %3727 = vst [vmem:[%s7354_s14 + $0xd8] sm:$0xff] %v3695_v31  ;;  %v3665_v6 = vadd.f32 %v3633_v52, %v3591_v42 }
 0x58d   : > { %3726 = vst [vmem:[%s7354_s14 + $0xd0] sm:$0xff] %v3694_v32  ;;  %v3664_v8 = vadd.f32 %v3632_v56, %v3586_v4  ;;  %v4057_v23 = vpop.f32.mrb[102].mxu1 }
 0x58e   : > { %v3697_v12 = vmax.f32 %v3665_v6, 0.0  ;;  %v3601_v46 = vadd.f32 %v4585_v49, %v4057_v23  ;;  %v3595_v14 = vpop.f32.mrb[103].mxu1 }
 0x58f   : > { %v3696_v30 = vmax.f32 %v3664_v8, 0.0  ;;  %v3596_v48 = vadd.f32 %v4584_v51, %v3595_v14 }
 0x590   : > { %3729 = vst [vmem:[%s7354_s14 + $0xe8] sm:$0xff] %v3697_v12  ;;  %v3667_v1 = vadd.f32 %v3635_v0, %v3601_v46 }
 0x591   : > { %3728 = vst [vmem:[%s7354_s14 + $0xe0] sm:$0xff] %v3696_v30  ;;  %v3666_v21 = vadd.f32 %v3634_v41, %v3596_v48 }
 0x592   : > { %v3699_v20 = vmax.f32 %v3667_v1, 0.0 }
 0x593   : > { %v3698_v37 = vmax.f32 %v3666_v21, 0.0 }
 0x594   : > { %3731 = vst [vmem:[%s7354_s14 + $0xf8] sm:$0xff] %v3699_v20 }
 0x595   : > { %3730 = vst [vmem:[%s7354_s14 + $0xf0] sm:$0xff] %v3698_v37 }
 0x596 PF: > { %s15_s18 = sadd.s32 1, %s5052_s18  }
 0x597   : > { %p12_p4 = scmp.ge.s32.totalorder %s15_s18, 4  }
 0x599   :  { %14 = sbr.rel (!%p12_p4) target bundleno = 1 (0x1), region = 76 }

</bundles_post_ra>
